<compile_context>
chip_gen: v5e
topology: v5e:2x2
jax: 0.10.0
libtpu: 0.0.40
codegen_flags: <defaults>
</compile_context>

<pallas_src>
import jax
import jax.numpy as jnp
from jax import lax
from jax.experimental import pallas as pl
from jax.experimental.pallas import tpu as pltpu

B = 2             # batch
O = 4             # n_options (multi_module = Linear(4, 16) fixes this to 4)
S = 8             # sequence length
D = 32            # d_hidden (= args.max_option_length)
N = B * O         # flattened batch*options
N_TOKENS = 64     # stand-in for pandas.read_csv(TOKEN2ID_PATH).shape[0]
N_CLASSES = 16    # multi_module output dim
NEG = -1e30       # additive mask value (avoids inf-inf NaNs)


# ------------------------------ fused kernel ------------------------------
def _fused_kernel(ctx_ids_ref, q_ids_ref, lbl_ref, emb_ref,
                  wih_ref, whh_ref, b_ref, wr_ref, br_ref,
                  wm_ref, bm_ref, mask_ref, psel_ref,
                  logits_ref, loss_ref,
                  zx_scr, h_scr, c_scr, enc_scr):
    # ---- embedding gather (one-hot matmul), time-major rows: row = s*N + n ----
    emb = emb_ref[...]                                               # [T, D]
    tok = lax.broadcasted_iota(jnp.int32, (S, N, N_TOKENS), 2)
    oh_c = (ctx_ids_ref[...][:, :, None] == tok).astype(jnp.float32).reshape(S * N, N_TOKENS)
    oh_q = (q_ids_ref[...][:, :, None] == tok).astype(jnp.float32).reshape(S * N, N_TOKENS)
    x_c = jnp.dot(oh_c, emb, preferred_element_type=jnp.float32)     # [S*N, D]
    x_q = jnp.dot(oh_q, emb, preferred_element_type=jnp.float32)     # [S*N, D]
    x_comb = jnp.concatenate([x_c, x_q], axis=1)                     # [S*N, 2D]

    # ---- hoisted input projection for BOTH streams: one [S*N,2D]x[2D,8D] matmul ----
    zx = jnp.dot(x_comb.astype(jnp.bfloat16),
                 wih_ref[...].astype(jnp.bfloat16),
                 preferred_element_type=jnp.float32) + b_ref[...]    # [S*N, 8D]
    zx_scr[...] = zx.reshape(S, N, 8 * D)

    # ---- merged (block-diagonal) LSTM recurrence: only h @ W_hh in the loop ----
    whh_bf = whh_ref[...].astype(jnp.bfloat16)                       # [2D, 8D]
    h_scr[...] = jnp.zeros_like(h_scr)
    c_scr[...] = jnp.zeros_like(c_scr)

    def step(t, carry):
        z = zx_scr[t] + jnp.dot(h_scr[...].astype(jnp.bfloat16), whh_bf,
                                preferred_element_type=jnp.float32)  # [N, 8D]
        # gate (lane) layout: [ i(2D) | f(2D) | o(2D) | g(2D) ], each = [ctx(D)|q(D)]
        s_act = jax.nn.sigmoid(z[:, 0:6 * D])                        # i | f | o in one EUP pass
        g_act = jnp.tanh(z[:, 6 * D:8 * D])
        i_g = s_act[:, 0:2 * D]
        f_g = s_act[:, 2 * D:4 * D]
        o_g = s_act[:, 4 * D:6 * D]
        c_new = f_g * c_scr[...] + i_g * g_act
        h_new = o_g * jnp.tanh(c_new)
        c_scr[...] = c_new
        h_scr[...] = h_new
        enc_scr[t] = h_new                                           # [N, 2D]
        return carry

    lax.fori_loop(0, S, step, 0, unroll=True)

    # ---- bilinear co-attention: one dense score matmul, masked, transpose reuse ----
    enc = enc_scr[...]                                               # [S, N, 2D]
    c_tm = enc[:, :, 0:D].reshape(S * N, D)                          # ctx enc, time-major
    q_tm = enc[:, :, D:2 * D].reshape(S * N, D)                      # q   enc, time-major
    c_bf = c_tm.astype(jnp.bfloat16)
    q_bf = q_tm.astype(jnp.bfloat16)
    scores = lax.dot_general(c_bf, q_bf, (((1,), (1,)), ((), ())),
                             preferred_element_type=jnp.float32)     # [S*N, S*N]
    sm = scores + mask_ref[...]                                      # mask cross-sample pairs
    a_c = jax.nn.softmax(sm, axis=-1)                                # ctx -> q
    a_q = jax.nn.softmax(sm.T, axis=-1)                              # q -> ctx (transpose reuse)
    ctx_att = jnp.dot(a_c.astype(jnp.bfloat16), q_bf, preferred_element_type=jnp.float32)
    q_att = jnp.dot(a_q.astype(jnp.bfloat16), c_bf, preferred_element_type=jnp.float32)

    # ---- max over sequence (PyTorch dim=1) + rank_module (Linear(2D, 1)) ----
    ctx_max = jnp.max(ctx_att.reshape(S, N, D), axis=0)              # [N, D]
    q_max = jnp.max(q_att.reshape(S, N, D), axis=0)                  # [N, D]
    feat = jnp.concatenate([ctx_max, q_max], axis=1)                 # [N, 2D]
    y = jnp.sum(feat * wr_ref[...], axis=-1, keepdims=True) + br_ref[...]   # [N, 1]

    # ---- multi_module (Linear(4,16)) as [B,N] x [N,16] matmul; no reshape of y ----
    logits = jnp.dot(psel_ref[...], y * wm_ref[...],
                     preferred_element_type=jnp.float32) + bm_ref[...]      # [B, 16]
    logits_ref[...] = logits

    # ---- CrossEntropyLoss (mean reduction) ----
    m = jnp.max(logits, axis=-1, keepdims=True)
    lse = m + jnp.log(jnp.sum(jnp.exp(logits - m), axis=-1, keepdims=True))
    classes = lax.broadcasted_iota(jnp.int32, (B, N_CLASSES), 1)
    onehot = (classes == lbl_ref[...]).astype(jnp.float32)
    picked = jnp.sum(logits * onehot, axis=-1, keepdims=True)
    # Single scalar epilogue store; negligible even though it is lane-narrow.
    loss_ref[...] = jnp.mean(lse - picked).reshape(1, 1)


# --------------------------------- forward ---------------------------------
def forward(params, context, question, label):
    # tiny int id transposes ([N,S] -> [S,N]) so the kernel works time-major
    ctx_ids_t = jnp.transpose(context.reshape(N, S)).astype(jnp.int32)
    q_ids_t = jnp.transpose(question.reshape(N, S)).astype(jnp.int32)
    lbl = label.reshape(B, 1).astype(jnp.int32)

    # static constants (folded under jit): same-sample attention mask, option->batch selector
    sid = jnp.arange(S * N, dtype=jnp.int32) % N
    neg_mask = jnp.where(sid[:, None] == sid[None, :], 0.0, NEG).astype(jnp.float32)
    p_sel = (jnp.arange(N, dtype=jnp.int32)[None, :] // O
             == jnp.arange(B, dtype=jnp.int32)[:, None]).astype(jnp.float32)

    logits, loss = pl.pallas_call(
        _fused_kernel,
        out_shape=(jax.ShapeDtypeStruct((B, N_CLASSES), jnp.float32),
                   jax.ShapeDtypeStruct((1, 1), jnp.float32)),
        grid=(1,),
        in_specs=[
            pl.BlockSpec((S, N), lambda i: (0, 0)),                  # ctx ids (time-major)
            pl.BlockSpec((S, N), lambda i: (0, 0)),                  # q ids (time-major)
            pl.BlockSpec((B, 1), lambda i: (0, 0)),                  # labels
            pl.BlockSpec((N_TOKENS, D), lambda i: (0, 0)),           # embedding table
            pl.BlockSpec((2 * D, 8 * D), lambda i: (0, 0)),          # W_ih block-diag
            pl.BlockSpec((2 * D, 8 * D), lambda i: (0, 0)),          # W_hh block-diag
            pl.BlockSpec((1, 8 * D), lambda i: (0, 0)),              # bias
            pl.BlockSpec((1, 2 * D), lambda i: (0, 0)),              # w_rank
            pl.BlockSpec((1, 1), lambda i: (0, 0)),                  # b_rank
            pl.BlockSpec((N, N_CLASSES), lambda i: (0, 0)),          # w_multi (tiled)
            pl.BlockSpec((1, N_CLASSES), lambda i: (0, 0)),          # b_multi
            pl.BlockSpec((S * N, S * N), lambda i: (0, 0)),          # additive attn mask
            pl.BlockSpec((B, N), lambda i: (0, 0)),                  # option->batch selector
        ],
        out_specs=(pl.BlockSpec((B, N_CLASSES), lambda i: (0, 0)),
                   pl.BlockSpec((1, 1), lambda i: (0, 0))),
        scratch_shapes=[
            pltpu.VMEM((S, N, 8 * D), jnp.float32),                  # hoisted x-projection
            pltpu.VMEM((N, 2 * D), jnp.float32),                     # h (ctx|q)
            pltpu.VMEM((N, 2 * D), jnp.float32),                     # c (ctx|q)
            pltpu.VMEM((S, N, 2 * D), jnp.float32),                  # encoder outputs
        ],
        compiler_params=pltpu.CompilerParams(
            dimension_semantics=("arbitrary",)),
    )(ctx_ids_t, q_ids_t, lbl,
      params['embedding'], params['w_ih_bd'], params['w_hh_bd'], params['b_bd'],
      params['w_rank'], params['b_rank'], params['w_multi_exp'], params['b_multi'],
      neg_mask, p_sel)
    # TODO(synk): confusion-matrix bookkeeping and test-mode answer decoding are
    # host-side Python side-effects with no Pallas equivalent; omitted.
    return logits, loss[0, 0]


# --------------------------------- params ---------------------------------
def init_params(key):
    ks = jax.random.split(key, 11)
    k_lstm = 1.0 / jnp.sqrt(jnp.float32(D))
    k_rank = 1.0 / jnp.sqrt(jnp.float32(2 * D))
    k_multi = 1.0 / jnp.sqrt(jnp.float32(O))

    def u(kk, shape, scale):
        return jax.random.uniform(kk, shape, jnp.float32, -scale, scale)

    # per-stream single-layer LSTM weights, gate (column) order [i | f | o | g]
    w_ih_c = u(ks[1], (D, 4 * D), k_lstm)
    w_hh_c = u(ks[2], (D, 4 * D), k_lstm)
    b_c = u(ks[3], (1, 4 * D), k_lstm)
    w_ih_q = u(ks[4], (D, 4 * D), k_lstm)
    w_hh_q = u(ks[5], (D, 4 * D), k_lstm)
    b_q = u(ks[6], (1, 4 * D), k_lstm)

    def blockdiag(w_c, w_q):
        # combined columns per gate g: [ctx gate g (D) | q gate g (D)]
        out = jnp.zeros((2 * D, 8 * D), jnp.float32)
        for g in range(4):
            out = out.at[0:D, g * 2 * D:g * 2 * D + D].set(w_c[:, g * D:(g + 1) * D])
            out = out.at[D:2 * D, g * 2 * D + D:(g + 1) * 2 * D].set(w_q[:, g * D:(g + 1) * D])
        return out

    def combine_bias(bc, bq):
        out = jnp.zeros((1, 8 * D), jnp.float32)
        for g in range(4):
            out = out.at[:, g * 2 * D:g * 2 * D + D].set(bc[:, g * D:(g + 1) * D])
            out = out.at[:, g * 2 * D + D:(g + 1) * 2 * D].set(bq[:, g * D:(g + 1) * D])
        return out

    w_multi = u(ks[9], (O, N_CLASSES), k_multi)

    return {
        'embedding': jax.random.normal(ks[0], (N_TOKENS, D), jnp.float32),
        # TODO(synk): single LSTM bias per stream (PyTorch nn.LSTM has b_ih + b_hh).
        'w_ih_bd': blockdiag(w_ih_c, w_ih_q),
        'w_hh_bd': blockdiag(w_hh_c, w_hh_q),
        'b_bd': combine_bias(b_c, b_q),
        'w_rank': u(ks[7], (1, 2 * D), k_rank),
        'b_rank': u(ks[8], (1, 1), k_rank),
        # multi_module weight pre-tiled to [N, 16] so row n == w_multi[n % O]
        'w_multi_exp': jnp.tile(w_multi, (B, 1)),
        'b_multi': u(ks[10], (1, N_CLASSES), k_multi),
    }


if __name__ == "__main__":
    key = jax.random.PRNGKey(0)
    pk, dk1, dk2, dk3 = jax.random.split(key, 4)
    params = init_params(pk)
    context = jax.random.randint(dk1, (B, O, S), 0, N_TOKENS)
    question = jax.random.randint(dk2, (B, O, S), 0, N_TOKENS)
    label = jax.random.randint(dk3, (B,), 0, N_CLASSES)

    logits, loss = jax.jit(forward)(params, context, question, label)
    jax.block_until_ready((logits, loss))
    assert logits.shape == (B, N_CLASSES) and loss.shape == ()
    print("KERNEL_OK")
</pallas_src>

<mosaic_0001>
module attributes {stable_mosaic.version = 11 : i64} {
  func.func @_fused_kernel(%arg0: i32, %arg1: memref<8x8xi32, #tpu.memory_space<vmem>>, %arg2: memref<8x8xi32, #tpu.memory_space<vmem>>, %arg3: memref<2x1xi32, #tpu.memory_space<vmem>>, %arg4: memref<64x32xf32, #tpu.memory_space<vmem>>, %arg5: memref<64x256xf32, #tpu.memory_space<vmem>>, %arg6: memref<64x256xf32, #tpu.memory_space<vmem>>, %arg7: memref<1x256xf32, #tpu.memory_space<vmem>>, %arg8: memref<1x64xf32, #tpu.memory_space<vmem>>, %arg9: memref<1x1xf32, #tpu.memory_space<vmem>>, %arg10: memref<8x16xf32, #tpu.memory_space<vmem>>, %arg11: memref<1x16xf32, #tpu.memory_space<vmem>>, %arg12: memref<64x64xf32, #tpu.memory_space<vmem>>, %arg13: memref<2x8xf32, #tpu.memory_space<vmem>>, %arg14: memref<2x16xf32, #tpu.memory_space<vmem>>, %arg15: memref<1x1xf32, #tpu.memory_space<vmem>>, %arg16: memref<8x8x256xf32, #tpu.memory_space<vmem>>, %arg17: memref<8x64xf32, #tpu.memory_space<vmem>>, %arg18: memref<8x64xf32, #tpu.memory_space<vmem>>, %arg19: memref<8x8x64xf32, #tpu.memory_space<vmem>>) attributes {dimension_semantics = [#tpu.dimension_semantics<arbitrary>], iteration_bounds = array<i64: 1>, scalar_prefetch = 0 : i64, scratch_operands = 4 : i64, tpu.core_type = #tpu.core_type<tc>, window_params = [{pipeline_mode = #tpu.pipeline_mode<synchronous>, transform_indices = @transform_0, window_bounds = array<i64: 8, 8>}, {pipeline_mode = #tpu.pipeline_mode<synchronous>, transform_indices = @transform_1, window_bounds = array<i64: 8, 8>}, {pipeline_mode = #tpu.pipeline_mode<synchronous>, transform_indices = @transform_2, window_bounds = array<i64: 2, 1>}, {pipeline_mode = #tpu.pipeline_mode<synchronous>, transform_indices = @transform_3, window_bounds = array<i64: 64, 32>}, {pipeline_mode = #tpu.pipeline_mode<synchronous>, transform_indices = @transform_4, window_bounds = array<i64: 64, 256>}, {pipeline_mode = #tpu.pipeline_mode<synchronous>, transform_indices = @transform_5, window_bounds = array<i64: 64, 256>}, {pipeline_mode = #tpu.pipeline_mode<synchronous>, transform_indices = @transform_6, window_bounds = array<i64: 1, 256>}, {pipeline_mode = #tpu.pipeline_mode<synchronous>, transform_indices = @transform_7, window_bounds = array<i64: 1, 64>}, {pipeline_mode = #tpu.pipeline_mode<synchronous>, transform_indices = @transform_8, window_bounds = array<i64: 1, 1>}, {pipeline_mode = #tpu.pipeline_mode<synchronous>, transform_indices = @transform_9, window_bounds = array<i64: 8, 16>}, {pipeline_mode = #tpu.pipeline_mode<synchronous>, transform_indices = @transform_10, window_bounds = array<i64: 1, 16>}, {pipeline_mode = #tpu.pipeline_mode<synchronous>, transform_indices = @transform_11, window_bounds = array<i64: 64, 64>}, {pipeline_mode = #tpu.pipeline_mode<synchronous>, transform_indices = @transform_12, window_bounds = array<i64: 2, 8>}, {pipeline_mode = #tpu.pipeline_mode<synchronous>, transform_indices = @transform_13, window_bounds = array<i64: 2, 16>}, {pipeline_mode = #tpu.pipeline_mode<synchronous>, transform_indices = @transform_14, window_bounds = array<i64: 1, 1>}]} {
    %c0 = arith.constant 0 : index
    %c0_0 = arith.constant 0 : index
    %0 = vector.load %arg4[%c0, %c0_0] : memref<64x32xf32, #tpu.memory_space<vmem>>, vector<64x32xf32>
    %1 = tpu.iota {dimensions = array<i32: 2>} : vector<8x8x64xi32>
    %c0_1 = arith.constant 0 : index
    %c0_2 = arith.constant 0 : index
    %2 = vector.load %arg1[%c0_1, %c0_2] : memref<8x8xi32, #tpu.memory_space<vmem>>, vector<8x8xi32>
    %3 = vector.shape_cast %2 : vector<8x8xi32> to vector<8x8x1xi32>
    %4 = vector.broadcast %3 : vector<8x8x1xi32> to vector<8x8x64xi32>
    %5 = arith.cmpi eq, %4, %1 : vector<8x8x64xi32>
    %6 = arith.extui %5 : vector<8x8x64xi1> to vector<8x8x64xi32>
    %7 = arith.sitofp %6 : vector<8x8x64xi32> to vector<8x8x64xf32>
    %8 = vector.shape_cast %7 : vector<8x8x64xf32> to vector<64x64xf32>
    %c0_3 = arith.constant 0 : index
    %c0_4 = arith.constant 0 : index
    %9 = vector.load %arg2[%c0_3, %c0_4] : memref<8x8xi32, #tpu.memory_space<vmem>>, vector<8x8xi32>
    %10 = vector.shape_cast %9 : vector<8x8xi32> to vector<8x8x1xi32>
    %11 = vector.broadcast %10 : vector<8x8x1xi32> to vector<8x8x64xi32>
    %12 = arith.cmpi eq, %11, %1 : vector<8x8x64xi32>
    %13 = arith.extui %12 : vector<8x8x64xi1> to vector<8x8x64xi32>
    %14 = arith.sitofp %13 : vector<8x8x64xi32> to vector<8x8x64xf32>
    %15 = vector.shape_cast %14 : vector<8x8x64xf32> to vector<64x64xf32>
    %cst = arith.constant dense<0.000000e+00> : vector<64x32xf32>
    %16 = tpu.matmul %8, %0, %cst {dimension_numbers = #tpu.dot_dimension_numbers<[1], [0], [0], [1], [0, 0, 1, 1], [], []>} : vector<64x64xf32>, vector<64x32xf32>, vector<64x32xf32> -> vector<64x32xf32>
    %cst_5 = arith.constant dense<0.000000e+00> : vector<64x32xf32>
    %17 = tpu.matmul %15, %0, %cst_5 {dimension_numbers = #tpu.dot_dimension_numbers<[1], [0], [0], [1], [0, 0, 1, 1], [], []>} : vector<64x64xf32>, vector<64x32xf32>, vector<64x32xf32> -> vector<64x32xf32>
    %18 = tpu.concatenate %16, %17 in 1 : vector<64x32xf32>, vector<64x32xf32> -> vector<64x64xf32>
    %19 = arith.truncf %18 : vector<64x64xf32> to vector<64x64xbf16>
    %c0_6 = arith.constant 0 : index
    %c0_7 = arith.constant 0 : index
    %20 = vector.load %arg5[%c0_6, %c0_7] : memref<64x256xf32, #tpu.memory_space<vmem>>, vector<64x256xf32>
    %21 = arith.truncf %20 : vector<64x256xf32> to vector<64x256xbf16>
    %cst_8 = arith.constant dense<0.000000e+00> : vector<64x256xf32>
    %22 = tpu.matmul %19, %21, %cst_8 {dimension_numbers = #tpu.dot_dimension_numbers<[1], [0], [0], [1], [0, 0, 1, 1], [], []>} : vector<64x64xbf16>, vector<64x256xbf16>, vector<64x256xf32> -> vector<64x256xf32>
    %c0_9 = arith.constant 0 : index
    %c0_10 = arith.constant 0 : index
    %23 = vector.load %arg7[%c0_9, %c0_10] : memref<1x256xf32, #tpu.memory_space<vmem>>, vector<1x256xf32>
    %24 = vector.broadcast %23 : vector<1x256xf32> to vector<64x256xf32>
    %25 = arith.addf %22, %24 : vector<64x256xf32>
    %26 = vector.shape_cast %25 : vector<64x256xf32> to vector<8x8x256xf32>
    %c0_11 = arith.constant 0 : index
    %c0_12 = arith.constant 0 : index
    %c0_13 = arith.constant 0 : index
    %27 = vector.load %arg16[%c0_11, %c0_12, %c0_13] : memref<8x8x256xf32, #tpu.memory_space<vmem>>, vector<8x8x256xf32>
    tpu.vector_store %arg16[%c0_11, %c0_12, %c0_13], %26 {strides = array<i32>} : memref<8x8x256xf32, #tpu.memory_space<vmem>>, vector<8x8x256xf32>,
    %c0_14 = arith.constant 0 : index
    %c0_15 = arith.constant 0 : index
    %28 = vector.load %arg6[%c0_14, %c0_15] : memref<64x256xf32, #tpu.memory_space<vmem>>, vector<64x256xf32>
    %29 = arith.truncf %28 : vector<64x256xf32> to vector<64x256xbf16>
    %cst_16 = arith.constant 0.000000e+00 : f32
    %30 = vector.broadcast %cst_16 : f32 to vector<8x64xf32>
    %c0_17 = arith.constant 0 : index
    %c0_18 = arith.constant 0 : index
    %31 = vector.load %arg17[%c0_17, %c0_18] : memref<8x64xf32, #tpu.memory_space<vmem>>, vector<8x64xf32>
    tpu.vector_store %arg17[%c0_17, %c0_18], %30 {strides = array<i32>} : memref<8x64xf32, #tpu.memory_space<vmem>>, vector<8x64xf32>,
    %cst_19 = arith.constant 0.000000e+00 : f32
    %32 = vector.broadcast %cst_19 : f32 to vector<8x64xf32>
    %c0_20 = arith.constant 0 : index
    %c0_21 = arith.constant 0 : index
    %33 = vector.load %arg18[%c0_20, %c0_21] : memref<8x64xf32, #tpu.memory_space<vmem>>, vector<8x64xf32>
    tpu.vector_store %arg18[%c0_20, %c0_21], %32 {strides = array<i32>} : memref<8x64xf32, #tpu.memory_space<vmem>>, vector<8x64xf32>,
    %c0_i32 = arith.constant 0 : i32
    %34 = arith.index_cast %c0_i32 : i32 to index
    %c0_22 = arith.constant 0 : index
    %c0_23 = arith.constant 0 : index
    %35 = vector.load %arg16[%34, %c0_22, %c0_23] : memref<8x8x256xf32, #tpu.memory_space<vmem>>, vector<1x8x256xf32>
    %36 = vector.shape_cast %35 : vector<1x8x256xf32> to vector<8x256xf32>
    %c0_24 = arith.constant 0 : index
    %c0_25 = arith.constant 0 : index
    %37 = vector.load %arg17[%c0_24, %c0_25] : memref<8x64xf32, #tpu.memory_space<vmem>>, vector<8x64xf32>
    %38 = arith.truncf %37 : vector<8x64xf32> to vector<8x64xbf16>
    %cst_26 = arith.constant dense<0.000000e+00> : vector<8x256xf32>
    %39 = tpu.matmul %38, %29, %cst_26 {dimension_numbers = #tpu.dot_dimension_numbers<[1], [0], [0], [1], [0, 0, 1, 1], [], []>} : vector<8x64xbf16>, vector<64x256xbf16>, vector<8x256xf32> -> vector<8x256xf32>
    %40 = arith.addf %36, %39 : vector<8x256xf32>
    %41 = vector.extract_strided_slice %40 {offsets = [0, 0], sizes = [8, 192], strides = [1, 1]} : vector<8x256xf32> to vector<8x192xf32>
    %42 = arith.negf %41 : vector<8x192xf32>
    %43 = math.exp %42 : vector<8x192xf32>
    %cst_27 = arith.constant 1.000000e+00 : f32
    %44 = vector.broadcast %cst_27 : f32 to vector<8x192xf32>
    %45 = arith.addf %44, %43 : vector<8x192xf32>
    %46 = arith.divf %44, %45 : vector<8x192xf32>
    %47 = vector.extract_strided_slice %40 {offsets = [0, 192], sizes = [8, 64], strides = [1, 1]} : vector<8x256xf32> to vector<8x64xf32>
    %48 = math.tanh %47 : vector<8x64xf32>
    %49 = vector.extract_strided_slice %46 {offsets = [0, 0], sizes = [8, 64], strides = [1, 1]} : vector<8x192xf32> to vector<8x64xf32>
    %50 = vector.extract_strided_slice %46 {offsets = [0, 64], sizes = [8, 64], strides = [1, 1]} : vector<8x192xf32> to vector<8x64xf32>
    %51 = vector.extract_strided_slice %46 {offsets = [0, 128], sizes = [8, 64], strides = [1, 1]} : vector<8x192xf32> to vector<8x64xf32>
    %c0_28 = arith.constant 0 : index
    %c0_29 = arith.constant 0 : index
    %52 = vector.load %arg18[%c0_28, %c0_29] : memref<8x64xf32, #tpu.memory_space<vmem>>, vector<8x64xf32>
    %53 = arith.mulf %50, %52 : vector<8x64xf32>
    %54 = arith.mulf %49, %48 : vector<8x64xf32>
    %55 = arith.addf %53, %54 : vector<8x64xf32>
    %56 = math.tanh %55 : vector<8x64xf32>
    %57 = arith.mulf %51, %56 : vector<8x64xf32>
    %c0_30 = arith.constant 0 : index
    %c0_31 = arith.constant 0 : index
    %58 = vector.load %arg18[%c0_30, %c0_31] : memref<8x64xf32, #tpu.memory_space<vmem>>, vector<8x64xf32>
    tpu.vector_store %arg18[%c0_30, %c0_31], %55 {strides = array<i32>} : memref<8x64xf32, #tpu.memory_space<vmem>>, vector<8x64xf32>,
    %c0_32 = arith.constant 0 : index
    %c0_33 = arith.constant 0 : index
    %59 = vector.load %arg17[%c0_32, %c0_33] : memref<8x64xf32, #tpu.memory_space<vmem>>, vector<8x64xf32>
    tpu.vector_store %arg17[%c0_32, %c0_33], %57 {strides = array<i32>} : memref<8x64xf32, #tpu.memory_space<vmem>>, vector<8x64xf32>,
    %60 = arith.index_cast %c0_i32 : i32 to index
    %c0_34 = arith.constant 0 : index
    %c0_35 = arith.constant 0 : index
    %61 = vector.load %arg19[%60, %c0_34, %c0_35] : memref<8x8x64xf32, #tpu.memory_space<vmem>>, vector<1x8x64xf32>
    %62 = vector.shape_cast %61 : vector<1x8x64xf32> to vector<8x64xf32>
    %63 = vector.shape_cast %57 : vector<8x64xf32> to vector<1x8x64xf32>
    tpu.vector_store %arg19[%60, %c0_34, %c0_35], %63 {strides = array<i32>} : memref<8x8x64xf32, #tpu.memory_space<vmem>>, vector<1x8x64xf32>,
    %c1_i32 = arith.constant 1 : i32
    %64 = arith.index_cast %c1_i32 : i32 to index
    %c0_36 = arith.constant 0 : index
    %c0_37 = arith.constant 0 : index
    %65 = vector.load %arg16[%64, %c0_36, %c0_37] : memref<8x8x256xf32, #tpu.memory_space<vmem>>, vector<1x8x256xf32>
    %66 = vector.shape_cast %65 : vector<1x8x256xf32> to vector<8x256xf32>
    %c0_38 = arith.constant 0 : index
    %c0_39 = arith.constant 0 : index
    %67 = vector.load %arg17[%c0_38, %c0_39] : memref<8x64xf32, #tpu.memory_space<vmem>>, vector<8x64xf32>
    %68 = arith.truncf %67 : vector<8x64xf32> to vector<8x64xbf16>
    %cst_40 = arith.constant dense<0.000000e+00> : vector<8x256xf32>
    %69 = tpu.matmul %68, %29, %cst_40 {dimension_numbers = #tpu.dot_dimension_numbers<[1], [0], [0], [1], [0, 0, 1, 1], [], []>} : vector<8x64xbf16>, vector<64x256xbf16>, vector<8x256xf32> -> vector<8x256xf32>
    %70 = arith.addf %66, %69 : vector<8x256xf32>
    %71 = vector.extract_strided_slice %70 {offsets = [0, 0], sizes = [8, 192], strides = [1, 1]} : vector<8x256xf32> to vector<8x192xf32>
    %72 = arith.negf %71 : vector<8x192xf32>
    %73 = math.exp %72 : vector<8x192xf32>
    %cst_41 = arith.constant 1.000000e+00 : f32
    %74 = vector.broadcast %cst_41 : f32 to vector<8x192xf32>
    %75 = arith.addf %74, %73 : vector<8x192xf32>
    %76 = arith.divf %74, %75 : vector<8x192xf32>
    %77 = vector.extract_strided_slice %70 {offsets = [0, 192], sizes = [8, 64], strides = [1, 1]} : vector<8x256xf32> to vector<8x64xf32>
    %78 = math.tanh %77 : vector<8x64xf32>
    %79 = vector.extract_strided_slice %76 {offsets = [0, 0], sizes = [8, 64], strides = [1, 1]} : vector<8x192xf32> to vector<8x64xf32>
    %80 = vector.extract_strided_slice %76 {offsets = [0, 64], sizes = [8, 64], strides = [1, 1]} : vector<8x192xf32> to vector<8x64xf32>
    %81 = vector.extract_strided_slice %76 {offsets = [0, 128], sizes = [8, 64], strides = [1, 1]} : vector<8x192xf32> to vector<8x64xf32>
    %c0_42 = arith.constant 0 : index
    %c0_43 = arith.constant 0 : index
    %82 = vector.load %arg18[%c0_42, %c0_43] : memref<8x64xf32, #tpu.memory_space<vmem>>, vector<8x64xf32>
    %83 = arith.mulf %80, %82 : vector<8x64xf32>
    %84 = arith.mulf %79, %78 : vector<8x64xf32>
    %85 = arith.addf %83, %84 : vector<8x64xf32>
    %86 = math.tanh %85 : vector<8x64xf32>
    %87 = arith.mulf %81, %86 : vector<8x64xf32>
    %c0_44 = arith.constant 0 : index
    %c0_45 = arith.constant 0 : index
    %88 = vector.load %arg18[%c0_44, %c0_45] : memref<8x64xf32, #tpu.memory_space<vmem>>, vector<8x64xf32>
    tpu.vector_store %arg18[%c0_44, %c0_45], %85 {strides = array<i32>} : memref<8x64xf32, #tpu.memory_space<vmem>>, vector<8x64xf32>,
    %c0_46 = arith.constant 0 : index
    %c0_47 = arith.constant 0 : index
    %89 = vector.load %arg17[%c0_46, %c0_47] : memref<8x64xf32, #tpu.memory_space<vmem>>, vector<8x64xf32>
    tpu.vector_store %arg17[%c0_46, %c0_47], %87 {strides = array<i32>} : memref<8x64xf32, #tpu.memory_space<vmem>>, vector<8x64xf32>,
    %90 = arith.index_cast %c1_i32 : i32 to index
    %c0_48 = arith.constant 0 : index
    %c0_49 = arith.constant 0 : index
    %91 = vector.load %arg19[%90, %c0_48, %c0_49] : memref<8x8x64xf32, #tpu.memory_space<vmem>>, vector<1x8x64xf32>
    %92 = vector.shape_cast %91 : vector<1x8x64xf32> to vector<8x64xf32>
    %93 = vector.shape_cast %87 : vector<8x64xf32> to vector<1x8x64xf32>
    tpu.vector_store %arg19[%90, %c0_48, %c0_49], %93 {strides = array<i32>} : memref<8x8x64xf32, #tpu.memory_space<vmem>>, vector<1x8x64xf32>,
    %c2_i32 = arith.constant 2 : i32
    %94 = arith.index_cast %c2_i32 : i32 to index
    %c0_50 = arith.constant 0 : index
    %c0_51 = arith.constant 0 : index
    %95 = vector.load %arg16[%94, %c0_50, %c0_51] : memref<8x8x256xf32, #tpu.memory_space<vmem>>, vector<1x8x256xf32>
    %96 = vector.shape_cast %95 : vector<1x8x256xf32> to vector<8x256xf32>
    %c0_52 = arith.constant 0 : index
    %c0_53 = arith.constant 0 : index
    %97 = vector.load %arg17[%c0_52, %c0_53] : memref<8x64xf32, #tpu.memory_space<vmem>>, vector<8x64xf32>
    %98 = arith.truncf %97 : vector<8x64xf32> to vector<8x64xbf16>
    %cst_54 = arith.constant dense<0.000000e+00> : vector<8x256xf32>
    %99 = tpu.matmul %98, %29, %cst_54 {dimension_numbers = #tpu.dot_dimension_numbers<[1], [0], [0], [1], [0, 0, 1, 1], [], []>} : vector<8x64xbf16>, vector<64x256xbf16>, vector<8x256xf32> -> vector<8x256xf32>
    %100 = arith.addf %96, %99 : vector<8x256xf32>
    %101 = vector.extract_strided_slice %100 {offsets = [0, 0], sizes = [8, 192], strides = [1, 1]} : vector<8x256xf32> to vector<8x192xf32>
    %102 = arith.negf %101 : vector<8x192xf32>
    %103 = math.exp %102 : vector<8x192xf32>
    %cst_55 = arith.constant 1.000000e+00 : f32
    %104 = vector.broadcast %cst_55 : f32 to vector<8x192xf32>
    %105 = arith.addf %104, %103 : vector<8x192xf32>
    %106 = arith.divf %104, %105 : vector<8x192xf32>
    %107 = vector.extract_strided_slice %100 {offsets = [0, 192], sizes = [8, 64], strides = [1, 1]} : vector<8x256xf32> to vector<8x64xf32>
    %108 = math.tanh %107 : vector<8x64xf32>
    %109 = vector.extract_strided_slice %106 {offsets = [0, 0], sizes = [8, 64], strides = [1, 1]} : vector<8x192xf32> to vector<8x64xf32>
    %110 = vector.extract_strided_slice %106 {offsets = [0, 64], sizes = [8, 64], strides = [1, 1]} : vector<8x192xf32> to vector<8x64xf32>
    %111 = vector.extract_strided_slice %106 {offsets = [0, 128], sizes = [8, 64], strides = [1, 1]} : vector<8x192xf32> to vector<8x64xf32>
    %c0_56 = arith.constant 0 : index
    %c0_57 = arith.constant 0 : index
    %112 = vector.load %arg18[%c0_56, %c0_57] : memref<8x64xf32, #tpu.memory_space<vmem>>, vector<8x64xf32>
    %113 = arith.mulf %110, %112 : vector<8x64xf32>
    %114 = arith.mulf %109, %108 : vector<8x64xf32>
    %115 = arith.addf %113, %114 : vector<8x64xf32>
    %116 = math.tanh %115 : vector<8x64xf32>
    %117 = arith.mulf %111, %116 : vector<8x64xf32>
    %c0_58 = arith.constant 0 : index
    %c0_59 = arith.constant 0 : index
    %118 = vector.load %arg18[%c0_58, %c0_59] : memref<8x64xf32, #tpu.memory_space<vmem>>, vector<8x64xf32>
    tpu.vector_store %arg18[%c0_58, %c0_59], %115 {strides = array<i32>} : memref<8x64xf32, #tpu.memory_space<vmem>>, vector<8x64xf32>,
    %c0_60 = arith.constant 0 : index
    %c0_61 = arith.constant 0 : index
    %119 = vector.load %arg17[%c0_60, %c0_61] : memref<8x64xf32, #tpu.memory_space<vmem>>, vector<8x64xf32>
    tpu.vector_store %arg17[%c0_60, %c0_61], %117 {strides = array<i32>} : memref<8x64xf32, #tpu.memory_space<vmem>>, vector<8x64xf32>,
    %120 = arith.index_cast %c2_i32 : i32 to index
    %c0_62 = arith.constant 0 : index
    %c0_63 = arith.constant 0 : index
    %121 = vector.load %arg19[%120, %c0_62, %c0_63] : memref<8x8x64xf32, #tpu.memory_space<vmem>>, vector<1x8x64xf32>
    %122 = vector.shape_cast %121 : vector<1x8x64xf32> to vector<8x64xf32>
    %123 = vector.shape_cast %117 : vector<8x64xf32> to vector<1x8x64xf32>
    tpu.vector_store %arg19[%120, %c0_62, %c0_63], %123 {strides = array<i32>} : memref<8x8x64xf32, #tpu.memory_space<vmem>>, vector<1x8x64xf32>,
    %c3_i32 = arith.constant 3 : i32
    %124 = arith.index_cast %c3_i32 : i32 to index
    %c0_64 = arith.constant 0 : index
    %c0_65 = arith.constant 0 : index
    %125 = vector.load %arg16[%124, %c0_64, %c0_65] : memref<8x8x256xf32, #tpu.memory_space<vmem>>, vector<1x8x256xf32>
    %126 = vector.shape_cast %125 : vector<1x8x256xf32> to vector<8x256xf32>
    %c0_66 = arith.constant 0 : index
    %c0_67 = arith.constant 0 : index
    %127 = vector.load %arg17[%c0_66, %c0_67] : memref<8x64xf32, #tpu.memory_space<vmem>>, vector<8x64xf32>
    %128 = arith.truncf %127 : vector<8x64xf32> to vector<8x64xbf16>
    %cst_68 = arith.constant dense<0.000000e+00> : vector<8x256xf32>
    %129 = tpu.matmul %128, %29, %cst_68 {dimension_numbers = #tpu.dot_dimension_numbers<[1], [0], [0], [1], [0, 0, 1, 1], [], []>} : vector<8x64xbf16>, vector<64x256xbf16>, vector<8x256xf32> -> vector<8x256xf32>
    %130 = arith.addf %126, %129 : vector<8x256xf32>
    %131 = vector.extract_strided_slice %130 {offsets = [0, 0], sizes = [8, 192], strides = [1, 1]} : vector<8x256xf32> to vector<8x192xf32>
    %132 = arith.negf %131 : vector<8x192xf32>
    %133 = math.exp %132 : vector<8x192xf32>
    %cst_69 = arith.constant 1.000000e+00 : f32
    %134 = vector.broadcast %cst_69 : f32 to vector<8x192xf32>
    %135 = arith.addf %134, %133 : vector<8x192xf32>
    %136 = arith.divf %134, %135 : vector<8x192xf32>
    %137 = vector.extract_strided_slice %130 {offsets = [0, 192], sizes = [8, 64], strides = [1, 1]} : vector<8x256xf32> to vector<8x64xf32>
    %138 = math.tanh %137 : vector<8x64xf32>
    %139 = vector.extract_strided_slice %136 {offsets = [0, 0], sizes = [8, 64], strides = [1, 1]} : vector<8x192xf32> to vector<8x64xf32>
    %140 = vector.extract_strided_slice %136 {offsets = [0, 64], sizes = [8, 64], strides = [1, 1]} : vector<8x192xf32> to vector<8x64xf32>
    %141 = vector.extract_strided_slice %136 {offsets = [0, 128], sizes = [8, 64], strides = [1, 1]} : vector<8x192xf32> to vector<8x64xf32>
    %c0_70 = arith.constant 0 : index
    %c0_71 = arith.constant 0 : index
    %142 = vector.load %arg18[%c0_70, %c0_71] : memref<8x64xf32, #tpu.memory_space<vmem>>, vector<8x64xf32>
    %143 = arith.mulf %140, %142 : vector<8x64xf32>
    %144 = arith.mulf %139, %138 : vector<8x64xf32>
    %145 = arith.addf %143, %144 : vector<8x64xf32>
    %146 = math.tanh %145 : vector<8x64xf32>
    %147 = arith.mulf %141, %146 : vector<8x64xf32>
    %c0_72 = arith.constant 0 : index
    %c0_73 = arith.constant 0 : index
    %148 = vector.load %arg18[%c0_72, %c0_73] : memref<8x64xf32, #tpu.memory_space<vmem>>, vector<8x64xf32>
    tpu.vector_store %arg18[%c0_72, %c0_73], %145 {strides = array<i32>} : memref<8x64xf32, #tpu.memory_space<vmem>>, vector<8x64xf32>,
    %c0_74 = arith.constant 0 : index
    %c0_75 = arith.constant 0 : index
    %149 = vector.load %arg17[%c0_74, %c0_75] : memref<8x64xf32, #tpu.memory_space<vmem>>, vector<8x64xf32>
    tpu.vector_store %arg17[%c0_74, %c0_75], %147 {strides = array<i32>} : memref<8x64xf32, #tpu.memory_space<vmem>>, vector<8x64xf32>,
    %150 = arith.index_cast %c3_i32 : i32 to index
    %c0_76 = arith.constant 0 : index
    %c0_77 = arith.constant 0 : index
    %151 = vector.load %arg19[%150, %c0_76, %c0_77] : memref<8x8x64xf32, #tpu.memory_space<vmem>>, vector<1x8x64xf32>
    %152 = vector.shape_cast %151 : vector<1x8x64xf32> to vector<8x64xf32>
    %153 = vector.shape_cast %147 : vector<8x64xf32> to vector<1x8x64xf32>
    tpu.vector_store %arg19[%150, %c0_76, %c0_77], %153 {strides = array<i32>} : memref<8x8x64xf32, #tpu.memory_space<vmem>>, vector<1x8x64xf32>,
    %c4_i32 = arith.constant 4 : i32
    %154 = arith.index_cast %c4_i32 : i32 to index
    %c0_78 = arith.constant 0 : index
    %c0_79 = arith.constant 0 : index
    %155 = vector.load %arg16[%154, %c0_78, %c0_79] : memref<8x8x256xf32, #tpu.memory_space<vmem>>, vector<1x8x256xf32>
    %156 = vector.shape_cast %155 : vector<1x8x256xf32> to vector<8x256xf32>
    %c0_80 = arith.constant 0 : index
    %c0_81 = arith.constant 0 : index
    %157 = vector.load %arg17[%c0_80, %c0_81] : memref<8x64xf32, #tpu.memory_space<vmem>>, vector<8x64xf32>
    %158 = arith.truncf %157 : vector<8x64xf32> to vector<8x64xbf16>
    %cst_82 = arith.constant dense<0.000000e+00> : vector<8x256xf32>
    %159 = tpu.matmul %158, %29, %cst_82 {dimension_numbers = #tpu.dot_dimension_numbers<[1], [0], [0], [1], [0, 0, 1, 1], [], []>} : vector<8x64xbf16>, vector<64x256xbf16>, vector<8x256xf32> -> vector<8x256xf32>
    %160 = arith.addf %156, %159 : vector<8x256xf32>
    %161 = vector.extract_strided_slice %160 {offsets = [0, 0], sizes = [8, 192], strides = [1, 1]} : vector<8x256xf32> to vector<8x192xf32>
    %162 = arith.negf %161 : vector<8x192xf32>
    %163 = math.exp %162 : vector<8x192xf32>
    %cst_83 = arith.constant 1.000000e+00 : f32
    %164 = vector.broadcast %cst_83 : f32 to vector<8x192xf32>
    %165 = arith.addf %164, %163 : vector<8x192xf32>
    %166 = arith.divf %164, %165 : vector<8x192xf32>
    %167 = vector.extract_strided_slice %160 {offsets = [0, 192], sizes = [8, 64], strides = [1, 1]} : vector<8x256xf32> to vector<8x64xf32>
    %168 = math.tanh %167 : vector<8x64xf32>
    %169 = vector.extract_strided_slice %166 {offsets = [0, 0], sizes = [8, 64], strides = [1, 1]} : vector<8x192xf32> to vector<8x64xf32>
    %170 = vector.extract_strided_slice %166 {offsets = [0, 64], sizes = [8, 64], strides = [1, 1]} : vector<8x192xf32> to vector<8x64xf32>
    %171 = vector.extract_strided_slice %166 {offsets = [0, 128], sizes = [8, 64], strides = [1, 1]} : vector<8x192xf32> to vector<8x64xf32>
    %c0_84 = arith.constant 0 : index
    %c0_85 = arith.constant 0 : index
    %172 = vector.load %arg18[%c0_84, %c0_85] : memref<8x64xf32, #tpu.memory_space<vmem>>, vector<8x64xf32>
    %173 = arith.mulf %170, %172 : vector<8x64xf32>
    %174 = arith.mulf %169, %168 : vector<8x64xf32>
    %175 = arith.addf %173, %174 : vector<8x64xf32>
    %176 = math.tanh %175 : vector<8x64xf32>
    %177 = arith.mulf %171, %176 : vector<8x64xf32>
    %c0_86 = arith.constant 0 : index
    %c0_87 = arith.constant 0 : index
    %178 = vector.load %arg18[%c0_86, %c0_87] : memref<8x64xf32, #tpu.memory_space<vmem>>, vector<8x64xf32>
    tpu.vector_store %arg18[%c0_86, %c0_87], %175 {strides = array<i32>} : memref<8x64xf32, #tpu.memory_space<vmem>>, vector<8x64xf32>,
    %c0_88 = arith.constant 0 : index
    %c0_89 = arith.constant 0 : index
    %179 = vector.load %arg17[%c0_88, %c0_89] : memref<8x64xf32, #tpu.memory_space<vmem>>, vector<8x64xf32>
    tpu.vector_store %arg17[%c0_88, %c0_89], %177 {strides = array<i32>} : memref<8x64xf32, #tpu.memory_space<vmem>>, vector<8x64xf32>,
    %180 = arith.index_cast %c4_i32 : i32 to index
    %c0_90 = arith.constant 0 : index
    %c0_91 = arith.constant 0 : index
    %181 = vector.load %arg19[%180, %c0_90, %c0_91] : memref<8x8x64xf32, #tpu.memory_space<vmem>>, vector<1x8x64xf32>
    %182 = vector.shape_cast %181 : vector<1x8x64xf32> to vector<8x64xf32>
    %183 = vector.shape_cast %177 : vector<8x64xf32> to vector<1x8x64xf32>
    tpu.vector_store %arg19[%180, %c0_90, %c0_91], %183 {strides = array<i32>} : memref<8x8x64xf32, #tpu.memory_space<vmem>>, vector<1x8x64xf32>,
    %c5_i32 = arith.constant 5 : i32
    %184 = arith.index_cast %c5_i32 : i32 to index
    %c0_92 = arith.constant 0 : index
    %c0_93 = arith.constant 0 : index
    %185 = vector.load %arg16[%184, %c0_92, %c0_93] : memref<8x8x256xf32, #tpu.memory_space<vmem>>, vector<1x8x256xf32>
    %186 = vector.shape_cast %185 : vector<1x8x256xf32> to vector<8x256xf32>
    %c0_94 = arith.constant 0 : index
    %c0_95 = arith.constant 0 : index
    %187 = vector.load %arg17[%c0_94, %c0_95] : memref<8x64xf32, #tpu.memory_space<vmem>>, vector<8x64xf32>
    %188 = arith.truncf %187 : vector<8x64xf32> to vector<8x64xbf16>
    %cst_96 = arith.constant dense<0.000000e+00> : vector<8x256xf32>
    %189 = tpu.matmul %188, %29, %cst_96 {dimension_numbers = #tpu.dot_dimension_numbers<[1], [0], [0], [1], [0, 0, 1, 1], [], []>} : vector<8x64xbf16>, vector<64x256xbf16>, vector<8x256xf32> -> vector<8x256xf32>
    %190 = arith.addf %186, %189 : vector<8x256xf32>
    %191 = vector.extract_strided_slice %190 {offsets = [0, 0], sizes = [8, 192], strides = [1, 1]} : vector<8x256xf32> to vector<8x192xf32>
    %192 = arith.negf %191 : vector<8x192xf32>
    %193 = math.exp %192 : vector<8x192xf32>
    %cst_97 = arith.constant 1.000000e+00 : f32
    %194 = vector.broadcast %cst_97 : f32 to vector<8x192xf32>
    %195 = arith.addf %194, %193 : vector<8x192xf32>
    %196 = arith.divf %194, %195 : vector<8x192xf32>
    %197 = vector.extract_strided_slice %190 {offsets = [0, 192], sizes = [8, 64], strides = [1, 1]} : vector<8x256xf32> to vector<8x64xf32>
    %198 = math.tanh %197 : vector<8x64xf32>
    %199 = vector.extract_strided_slice %196 {offsets = [0, 0], sizes = [8, 64], strides = [1, 1]} : vector<8x192xf32> to vector<8x64xf32>
    %200 = vector.extract_strided_slice %196 {offsets = [0, 64], sizes = [8, 64], strides = [1, 1]} : vector<8x192xf32> to vector<8x64xf32>
    %201 = vector.extract_strided_slice %196 {offsets = [0, 128], sizes = [8, 64], strides = [1, 1]} : vector<8x192xf32> to vector<8x64xf32>
    %c0_98 = arith.constant 0 : index
    %c0_99 = arith.constant 0 : index
    %202 = vector.load %arg18[%c0_98, %c0_99] : memref<8x64xf32, #tpu.memory_space<vmem>>, vector<8x64xf32>
    %203 = arith.mulf %200, %202 : vector<8x64xf32>
    %204 = arith.mulf %199, %198 : vector<8x64xf32>
    %205 = arith.addf %203, %204 : vector<8x64xf32>
    %206 = math.tanh %205 : vector<8x64xf32>
    %207 = arith.mulf %201, %206 : vector<8x64xf32>
    %c0_100 = arith.constant 0 : index
    %c0_101 = arith.constant 0 : index
    %208 = vector.load %arg18[%c0_100, %c0_101] : memref<8x64xf32, #tpu.memory_space<vmem>>, vector<8x64xf32>
    tpu.vector_store %arg18[%c0_100, %c0_101], %205 {strides = array<i32>} : memref<8x64xf32, #tpu.memory_space<vmem>>, vector<8x64xf32>,
    %c0_102 = arith.constant 0 : index
    %c0_103 = arith.constant 0 : index
    %209 = vector.load %arg17[%c0_102, %c0_103] : memref<8x64xf32, #tpu.memory_space<vmem>>, vector<8x64xf32>
    tpu.vector_store %arg17[%c0_102, %c0_103], %207 {strides = array<i32>} : memref<8x64xf32, #tpu.memory_space<vmem>>, vector<8x64xf32>,
    %210 = arith.index_cast %c5_i32 : i32 to index
    %c0_104 = arith.constant 0 : index
    %c0_105 = arith.constant 0 : index
    %211 = vector.load %arg19[%210, %c0_104, %c0_105] : memref<8x8x64xf32, #tpu.memory_space<vmem>>, vector<1x8x64xf32>
    %212 = vector.shape_cast %211 : vector<1x8x64xf32> to vector<8x64xf32>
    %213 = vector.shape_cast %207 : vector<8x64xf32> to vector<1x8x64xf32>
    tpu.vector_store %arg19[%210, %c0_104, %c0_105], %213 {strides = array<i32>} : memref<8x8x64xf32, #tpu.memory_space<vmem>>, vector<1x8x64xf32>,
    %c6_i32 = arith.constant 6 : i32
    %214 = arith.index_cast %c6_i32 : i32 to index
    %c0_106 = arith.constant 0 : index
    %c0_107 = arith.constant 0 : index
    %215 = vector.load %arg16[%214, %c0_106, %c0_107] : memref<8x8x256xf32, #tpu.memory_space<vmem>>, vector<1x8x256xf32>
    %216 = vector.shape_cast %215 : vector<1x8x256xf32> to vector<8x256xf32>
    %c0_108 = arith.constant 0 : index
    %c0_109 = arith.constant 0 : index
    %217 = vector.load %arg17[%c0_108, %c0_109] : memref<8x64xf32, #tpu.memory_space<vmem>>, vector<8x64xf32>
    %218 = arith.truncf %217 : vector<8x64xf32> to vector<8x64xbf16>
    %cst_110 = arith.constant dense<0.000000e+00> : vector<8x256xf32>
    %219 = tpu.matmul %218, %29, %cst_110 {dimension_numbers = #tpu.dot_dimension_numbers<[1], [0], [0], [1], [0, 0, 1, 1], [], []>} : vector<8x64xbf16>, vector<64x256xbf16>, vector<8x256xf32> -> vector<8x256xf32>
    %220 = arith.addf %216, %219 : vector<8x256xf32>
    %221 = vector.extract_strided_slice %220 {offsets = [0, 0], sizes = [8, 192], strides = [1, 1]} : vector<8x256xf32> to vector<8x192xf32>
    %222 = arith.negf %221 : vector<8x192xf32>
    %223 = math.exp %222 : vector<8x192xf32>
    %cst_111 = arith.constant 1.000000e+00 : f32
    %224 = vector.broadcast %cst_111 : f32 to vector<8x192xf32>
    %225 = arith.addf %224, %223 : vector<8x192xf32>
    %226 = arith.divf %224, %225 : vector<8x192xf32>
    %227 = vector.extract_strided_slice %220 {offsets = [0, 192], sizes = [8, 64], strides = [1, 1]} : vector<8x256xf32> to vector<8x64xf32>
    %228 = math.tanh %227 : vector<8x64xf32>
    %229 = vector.extract_strided_slice %226 {offsets = [0, 0], sizes = [8, 64], strides = [1, 1]} : vector<8x192xf32> to vector<8x64xf32>
    %230 = vector.extract_strided_slice %226 {offsets = [0, 64], sizes = [8, 64], strides = [1, 1]} : vector<8x192xf32> to vector<8x64xf32>
    %231 = vector.extract_strided_slice %226 {offsets = [0, 128], sizes = [8, 64], strides = [1, 1]} : vector<8x192xf32> to vector<8x64xf32>
    %c0_112 = arith.constant 0 : index
    %c0_113 = arith.constant 0 : index
    %232 = vector.load %arg18[%c0_112, %c0_113] : memref<8x64xf32, #tpu.memory_space<vmem>>, vector<8x64xf32>
    %233 = arith.mulf %230, %232 : vector<8x64xf32>
    %234 = arith.mulf %229, %228 : vector<8x64xf32>
    %235 = arith.addf %233, %234 : vector<8x64xf32>
    %236 = math.tanh %235 : vector<8x64xf32>
    %237 = arith.mulf %231, %236 : vector<8x64xf32>
    %c0_114 = arith.constant 0 : index
    %c0_115 = arith.constant 0 : index
    %238 = vector.load %arg18[%c0_114, %c0_115] : memref<8x64xf32, #tpu.memory_space<vmem>>, vector<8x64xf32>
    tpu.vector_store %arg18[%c0_114, %c0_115], %235 {strides = array<i32>} : memref<8x64xf32, #tpu.memory_space<vmem>>, vector<8x64xf32>,
    %c0_116 = arith.constant 0 : index
    %c0_117 = arith.constant 0 : index
    %239 = vector.load %arg17[%c0_116, %c0_117] : memref<8x64xf32, #tpu.memory_space<vmem>>, vector<8x64xf32>
    tpu.vector_store %arg17[%c0_116, %c0_117], %237 {strides = array<i32>} : memref<8x64xf32, #tpu.memory_space<vmem>>, vector<8x64xf32>,
    %240 = arith.index_cast %c6_i32 : i32 to index
    %c0_118 = arith.constant 0 : index
    %c0_119 = arith.constant 0 : index
    %241 = vector.load %arg19[%240, %c0_118, %c0_119] : memref<8x8x64xf32, #tpu.memory_space<vmem>>, vector<1x8x64xf32>
    %242 = vector.shape_cast %241 : vector<1x8x64xf32> to vector<8x64xf32>
    %243 = vector.shape_cast %237 : vector<8x64xf32> to vector<1x8x64xf32>
    tpu.vector_store %arg19[%240, %c0_118, %c0_119], %243 {strides = array<i32>} : memref<8x8x64xf32, #tpu.memory_space<vmem>>, vector<1x8x64xf32>,
    %c7_i32 = arith.constant 7 : i32
    %244 = arith.index_cast %c7_i32 : i32 to index
    %c0_120 = arith.constant 0 : index
    %c0_121 = arith.constant 0 : index
    %245 = vector.load %arg16[%244, %c0_120, %c0_121] : memref<8x8x256xf32, #tpu.memory_space<vmem>>, vector<1x8x256xf32>
    %246 = vector.shape_cast %245 : vector<1x8x256xf32> to vector<8x256xf32>
    %c0_122 = arith.constant 0 : index
    %c0_123 = arith.constant 0 : index
    %247 = vector.load %arg17[%c0_122, %c0_123] : memref<8x64xf32, #tpu.memory_space<vmem>>, vector<8x64xf32>
    %248 = arith.truncf %247 : vector<8x64xf32> to vector<8x64xbf16>
    %cst_124 = arith.constant dense<0.000000e+00> : vector<8x256xf32>
    %249 = tpu.matmul %248, %29, %cst_124 {dimension_numbers = #tpu.dot_dimension_numbers<[1], [0], [0], [1], [0, 0, 1, 1], [], []>} : vector<8x64xbf16>, vector<64x256xbf16>, vector<8x256xf32> -> vector<8x256xf32>
    %250 = arith.addf %246, %249 : vector<8x256xf32>
    %251 = vector.extract_strided_slice %250 {offsets = [0, 0], sizes = [8, 192], strides = [1, 1]} : vector<8x256xf32> to vector<8x192xf32>
    %252 = arith.negf %251 : vector<8x192xf32>
    %253 = math.exp %252 : vector<8x192xf32>
    %cst_125 = arith.constant 1.000000e+00 : f32
    %254 = vector.broadcast %cst_125 : f32 to vector<8x192xf32>
    %255 = arith.addf %254, %253 : vector<8x192xf32>
    %256 = arith.divf %254, %255 : vector<8x192xf32>
    %257 = vector.extract_strided_slice %250 {offsets = [0, 192], sizes = [8, 64], strides = [1, 1]} : vector<8x256xf32> to vector<8x64xf32>
    %258 = math.tanh %257 : vector<8x64xf32>
    %259 = vector.extract_strided_slice %256 {offsets = [0, 0], sizes = [8, 64], strides = [1, 1]} : vector<8x192xf32> to vector<8x64xf32>
    %260 = vector.extract_strided_slice %256 {offsets = [0, 64], sizes = [8, 64], strides = [1, 1]} : vector<8x192xf32> to vector<8x64xf32>
    %261 = vector.extract_strided_slice %256 {offsets = [0, 128], sizes = [8, 64], strides = [1, 1]} : vector<8x192xf32> to vector<8x64xf32>
    %c0_126 = arith.constant 0 : index
    %c0_127 = arith.constant 0 : index
    %262 = vector.load %arg18[%c0_126, %c0_127] : memref<8x64xf32, #tpu.memory_space<vmem>>, vector<8x64xf32>
    %263 = arith.mulf %260, %262 : vector<8x64xf32>
    %264 = arith.mulf %259, %258 : vector<8x64xf32>
    %265 = arith.addf %263, %264 : vector<8x64xf32>
    %266 = math.tanh %265 : vector<8x64xf32>
    %267 = arith.mulf %261, %266 : vector<8x64xf32>
    %c0_128 = arith.constant 0 : index
    %c0_129 = arith.constant 0 : index
    %268 = vector.load %arg18[%c0_128, %c0_129] : memref<8x64xf32, #tpu.memory_space<vmem>>, vector<8x64xf32>
    tpu.vector_store %arg18[%c0_128, %c0_129], %265 {strides = array<i32>} : memref<8x64xf32, #tpu.memory_space<vmem>>, vector<8x64xf32>,
    %c0_130 = arith.constant 0 : index
    %c0_131 = arith.constant 0 : index
    %269 = vector.load %arg17[%c0_130, %c0_131] : memref<8x64xf32, #tpu.memory_space<vmem>>, vector<8x64xf32>
    tpu.vector_store %arg17[%c0_130, %c0_131], %267 {strides = array<i32>} : memref<8x64xf32, #tpu.memory_space<vmem>>, vector<8x64xf32>,
    %270 = arith.index_cast %c7_i32 : i32 to index
    %c0_132 = arith.constant 0 : index
    %c0_133 = arith.constant 0 : index
    %271 = vector.load %arg19[%270, %c0_132, %c0_133] : memref<8x8x64xf32, #tpu.memory_space<vmem>>, vector<1x8x64xf32>
    %272 = vector.shape_cast %271 : vector<1x8x64xf32> to vector<8x64xf32>
    %273 = vector.shape_cast %267 : vector<8x64xf32> to vector<1x8x64xf32>
    tpu.vector_store %arg19[%270, %c0_132, %c0_133], %273 {strides = array<i32>} : memref<8x8x64xf32, #tpu.memory_space<vmem>>, vector<1x8x64xf32>,
    %c8_i32 = arith.constant 8 : i32
    %c0_134 = arith.constant 0 : index
    %c0_135 = arith.constant 0 : index
    %c0_136 = arith.constant 0 : index
    %274 = vector.load %arg19[%c0_134, %c0_135, %c0_136] : memref<8x8x64xf32, #tpu.memory_space<vmem>>, vector<8x8x64xf32>
    %275 = vector.extract_strided_slice %274 {offsets = [0, 0, 0], sizes = [8, 8, 32], strides = [1, 1, 1]} : vector<8x8x64xf32> to vector<8x8x32xf32>
    %276 = vector.shape_cast %275 : vector<8x8x32xf32> to vector<64x32xf32>
    %277 = vector.extract_strided_slice %274 {offsets = [0, 0, 32], sizes = [8, 8, 32], strides = [1, 1, 1]} : vector<8x8x64xf32> to vector<8x8x32xf32>
    %278 = vector.shape_cast %277 : vector<8x8x32xf32> to vector<64x32xf32>
    %279 = arith.truncf %276 : vector<64x32xf32> to vector<64x32xbf16>
    %280 = arith.truncf %278 : vector<64x32xf32> to vector<64x32xbf16>
    %cst_137 = arith.constant dense<0.000000e+00> : vector<64x64xf32>
    %281 = tpu.matmul %279, %280, %cst_137 {dimension_numbers = #tpu.dot_dimension_numbers<[1], [1], [0], [0], [0, 0, 1, 0], [], []>} : vector<64x32xbf16>, vector<64x32xbf16>, vector<64x64xf32> -> vector<64x64xf32>
    %c0_138 = arith.constant 0 : index
    %c0_139 = arith.constant 0 : index
    %282 = vector.load %arg12[%c0_138, %c0_139] : memref<64x64xf32, #tpu.memory_space<vmem>>, vector<64x64xf32>
    %283 = arith.addf %281, %282 : vector<64x64xf32>
    %cst_140 = arith.constant dense<0xFF800000> : vector<64xf32>
    %284 = vector.multi_reduction <maximumf>, %283, %cst_140 [1] : vector<64x64xf32> to vector<64xf32>
    %cst_141 = arith.constant 0xFF800000 : f32
    %285 = vector.broadcast %cst_141 : f32 to vector<64xf32>
    %286 = arith.maximumf %285, %284 : vector<64xf32>
    %287 = vector.shape_cast %286 : vector<64xf32> to vector<64x1xf32>
    %288 = vector.broadcast %287 : vector<64x1xf32> to vector<64x64xf32>
    %289 = arith.subf %283, %288 : vector<64x64xf32>
    %290 = math.exp %289 : vector<64x64xf32>
    %cst_142 = arith.constant dense<0.000000e+00> : vector<64xf32>
    %291 = vector.multi_reduction <add>, %290, %cst_142 [1] : vector<64x64xf32> to vector<64xf32>
    %292 = vector.shape_cast %291 : vector<64xf32> to vector<64x1xf32>
    %293 = vector.broadcast %292 : vector<64x1xf32> to vector<64x64xf32>
    %294 = arith.divf %290, %293 : vector<64x64xf32>
    %295 = tpu.transpose %283, [1, 0] : vector<64x64xf32> -> vector<64x64xf32>
    %cst_143 = arith.constant dense<0xFF800000> : vector<64xf32>
    %296 = vector.multi_reduction <maximumf>, %295, %cst_143 [1] : vector<64x64xf32> to vector<64xf32>
    %cst_144 = arith.constant 0xFF800000 : f32
    %297 = vector.broadcast %cst_144 : f32 to vector<64xf32>
    %298 = arith.maximumf %297, %296 : vector<64xf32>
    %299 = vector.shape_cast %298 : vector<64xf32> to vector<64x1xf32>
    %300 = vector.broadcast %299 : vector<64x1xf32> to vector<64x64xf32>
    %301 = arith.subf %295, %300 : vector<64x64xf32>
    %302 = math.exp %301 : vector<64x64xf32>
    %cst_145 = arith.constant dense<0.000000e+00> : vector<64xf32>
    %303 = vector.multi_reduction <add>, %302, %cst_145 [1] : vector<64x64xf32> to vector<64xf32>
    %304 = vector.shape_cast %303 : vector<64xf32> to vector<64x1xf32>
    %305 = vector.broadcast %304 : vector<64x1xf32> to vector<64x64xf32>
    %306 = arith.divf %302, %305 : vector<64x64xf32>
    %307 = arith.truncf %294 : vector<64x64xf32> to vector<64x64xbf16>
    %cst_146 = arith.constant dense<0.000000e+00> : vector<64x32xf32>
    %308 = tpu.matmul %307, %280, %cst_146 {dimension_numbers = #tpu.dot_dimension_numbers<[1], [0], [0], [1], [0, 0, 1, 1], [], []>} : vector<64x64xbf16>, vector<64x32xbf16>, vector<64x32xf32> -> vector<64x32xf32>
    %309 = arith.truncf %306 : vector<64x64xf32> to vector<64x64xbf16>
    %cst_147 = arith.constant dense<0.000000e+00> : vector<64x32xf32>
    %310 = tpu.matmul %309, %279, %cst_147 {dimension_numbers = #tpu.dot_dimension_numbers<[1], [0], [0], [1], [0, 0, 1, 1], [], []>} : vector<64x64xbf16>, vector<64x32xbf16>, vector<64x32xf32> -> vector<64x32xf32>
    %311 = vector.shape_cast %308 : vector<64x32xf32> to vector<8x8x32xf32>
    %cst_148 = arith.constant dense<0xFF800000> : vector<8x32xf32>
    %312 = vector.multi_reduction <maximumf>, %311, %cst_148 [0] : vector<8x8x32xf32> to vector<8x32xf32>
    %313 = vector.shape_cast %310 : vector<64x32xf32> to vector<8x8x32xf32>
    %cst_149 = arith.constant dense<0xFF800000> : vector<8x32xf32>
    %314 = vector.multi_reduction <maximumf>, %313, %cst_149 [0] : vector<8x8x32xf32> to vector<8x32xf32>
    %315 = tpu.concatenate %312, %314 in 1 : vector<8x32xf32>, vector<8x32xf32> -> vector<8x64xf32>
    %c0_150 = arith.constant 0 : index
    %c0_151 = arith.constant 0 : index
    %316 = vector.load %arg8[%c0_150, %c0_151] : memref<1x64xf32, #tpu.memory_space<vmem>>, vector<1x64xf32>
    %317 = vector.broadcast %316 : vector<1x64xf32> to vector<8x64xf32>
    %318 = arith.mulf %315, %317 : vector<8x64xf32>
    %cst_152 = arith.constant dense<0.000000e+00> : vector<8xf32>
    %319 = vector.multi_reduction <add>, %318, %cst_152 [1] : vector<8x64xf32> to vector<8xf32>
    %320 = vector.shape_cast %319 : vector<8xf32> to vector<8x1xf32>
    %c0_153 = arith.constant 0 : index
    %c0_154 = arith.constant 0 : index
    %321 = vector.load %arg9[%c0_153, %c0_154] : memref<1x1xf32, #tpu.memory_space<vmem>>, vector<1x1xf32>
    %322 = vector.broadcast %321 : vector<1x1xf32> to vector<8x1xf32>
    %323 = arith.addf %320, %322 : vector<8x1xf32>
    %c0_155 = arith.constant 0 : index
    %c0_156 = arith.constant 0 : index
    %324 = vector.load %arg13[%c0_155, %c0_156] : memref<2x8xf32, #tpu.memory_space<vmem>>, vector<2x8xf32>
    %c0_157 = arith.constant 0 : index
    %c0_158 = arith.constant 0 : index
    %325 = vector.load %arg10[%c0_157, %c0_158] : memref<8x16xf32, #tpu.memory_space<vmem>>, vector<8x16xf32>
    %326 = vector.broadcast %323 : vector<8x1xf32> to vector<8x16xf32>
    %327 = arith.mulf %326, %325 : vector<8x16xf32>
    %cst_159 = arith.constant dense<0.000000e+00> : vector<2x16xf32>
    %328 = tpu.matmul %324, %327, %cst_159 {dimension_numbers = #tpu.dot_dimension_numbers<[1], [0], [0], [1], [0, 0, 1, 1], [], []>} : vector<2x8xf32>, vector<8x16xf32>, vector<2x16xf32> -> vector<2x16xf32>
    %c0_160 = arith.constant 0 : index
    %c0_161 = arith.constant 0 : index
    %329 = vector.load %arg11[%c0_160, %c0_161] : memref<1x16xf32, #tpu.memory_space<vmem>>, vector<1x16xf32>
    %330 = vector.broadcast %329 : vector<1x16xf32> to vector<2x16xf32>
    %331 = arith.addf %328, %330 : vector<2x16xf32>
    %c0_162 = arith.constant 0 : index
    %c0_163 = arith.constant 0 : index
    %332 = vector.load %arg14[%c0_162, %c0_163] : memref<2x16xf32, #tpu.memory_space<vmem>>, vector<2x16xf32>
    tpu.vector_store %arg14[%c0_162, %c0_163], %331 {strides = array<i32>} : memref<2x16xf32, #tpu.memory_space<vmem>>, vector<2x16xf32>,
    %cst_164 = arith.constant dense<0xFF800000> : vector<2xf32>
    %333 = vector.multi_reduction <maximumf>, %331, %cst_164 [1] : vector<2x16xf32> to vector<2xf32>
    %334 = vector.shape_cast %333 : vector<2xf32> to vector<2x1xf32>
    %335 = vector.broadcast %334 : vector<2x1xf32> to vector<2x16xf32>
    %336 = arith.subf %331, %335 : vector<2x16xf32>
    %337 = math.exp %336 : vector<2x16xf32>
    %cst_165 = arith.constant dense<0.000000e+00> : vector<2xf32>
    %338 = vector.multi_reduction <add>, %337, %cst_165 [1] : vector<2x16xf32> to vector<2xf32>
    %339 = vector.shape_cast %338 : vector<2xf32> to vector<2x1xf32>
    %340 = math.log %339 : vector<2x1xf32>
    %341 = arith.addf %334, %340 : vector<2x1xf32>
    %342 = tpu.iota {dimensions = array<i32: 1>} : vector<2x16xi32>
    %c0_166 = arith.constant 0 : index
    %c0_167 = arith.constant 0 : index
    %343 = vector.load %arg3[%c0_166, %c0_167] : memref<2x1xi32, #tpu.memory_space<vmem>>, vector<2x1xi32>
    %344 = vector.broadcast %343 : vector<2x1xi32> to vector<2x16xi32>
    %345 = arith.cmpi eq, %342, %344 : vector<2x16xi32>
    %346 = arith.extui %345 : vector<2x16xi1> to vector<2x16xi32>
    %347 = arith.sitofp %346 : vector<2x16xi32> to vector<2x16xf32>
    %348 = arith.mulf %331, %347 : vector<2x16xf32>
    %cst_168 = arith.constant dense<0.000000e+00> : vector<2xf32>
    %349 = vector.multi_reduction <add>, %348, %cst_168 [1] : vector<2x16xf32> to vector<2xf32>
    %350 = vector.shape_cast %349 : vector<2xf32> to vector<2x1xf32>
    %351 = arith.subf %341, %350 : vector<2x1xf32>
    %352 = vector.shape_cast %351 : vector<2x1xf32> to vector<1x2x1xf32>
    %cst_169 = arith.constant dense<0.000000e+00> : vector<1xf32>
    %353 = vector.multi_reduction <add>, %352, %cst_169 [1, 2] : vector<1x2x1xf32> to vector<1xf32>
    %354 = vector.shape_cast %353 : vector<1xf32> to vector<1x1x1xf32>
    %355 = vector.extract %354[0, 0, 0] : f32 from vector<1x1x1xf32>
    %cst_170 = arith.constant 2.000000e+00 : f32
    %356 = arith.divf %355, %cst_170 : f32
    %357 = vector.broadcast %356 : f32 to vector<1x1xf32>
    %c0_171 = arith.constant 0 : index
    %c0_172 = arith.constant 0 : index
    %358 = vector.load %arg15[%c0_171, %c0_172] : memref<1x1xf32, #tpu.memory_space<vmem>>, vector<1x1xf32>
    tpu.vector_store %arg15[%c0_171, %c0_172], %357 {strides = array<i32>} : memref<1x1xf32, #tpu.memory_space<vmem>>, vector<1x1xf32>,
    return
  }
  func.func @transform_0(%arg0: i32) -> (i32, i32) {
    %c0_i32 = arith.constant 0 : i32
    %c0_i32_0 = arith.constant 0 : i32
    %c0_i32_1 = arith.constant 0 : i32
    return %c0_i32, %c0_i32_0 : i32, i32
  }
  func.func @transform_1(%arg0: i32) -> (i32, i32) {
    %c0_i32 = arith.constant 0 : i32
    %c0_i32_0 = arith.constant 0 : i32
    %c0_i32_1 = arith.constant 0 : i32
    return %c0_i32, %c0_i32_0 : i32, i32
  }
  func.func @transform_2(%arg0: i32) -> (i32, i32) {
    %c0_i32 = arith.constant 0 : i32
    %c0_i32_0 = arith.constant 0 : i32
    %c0_i32_1 = arith.constant 0 : i32
    return %c0_i32, %c0_i32_0 : i32, i32
  }
  func.func @transform_3(%arg0: i32) -> (i32, i32) {
    %c0_i32 = arith.constant 0 : i32
    %c0_i32_0 = arith.constant 0 : i32
    %c0_i32_1 = arith.constant 0 : i32
    return %c0_i32, %c0_i32_0 : i32, i32
  }
  func.func @transform_4(%arg0: i32) -> (i32, i32) {
    %c0_i32 = arith.constant 0 : i32
    %c0_i32_0 = arith.constant 0 : i32
    %c0_i32_1 = arith.constant 0 : i32
    return %c0_i32, %c0_i32_0 : i32, i32
  }
  func.func @transform_5(%arg0: i32) -> (i32, i32) {
    %c0_i32 = arith.constant 0 : i32
    %c0_i32_0 = arith.constant 0 : i32
    %c0_i32_1 = arith.constant 0 : i32
    return %c0_i32, %c0_i32_0 : i32, i32
  }
  func.func @transform_6(%arg0: i32) -> (i32, i32) {
    %c0_i32 = arith.constant 0 : i32
    %c0_i32_0 = arith.constant 0 : i32
    %c0_i32_1 = arith.constant 0 : i32
    return %c0_i32, %c0_i32_0 : i32, i32
  }
  func.func @transform_7(%arg0: i32) -> (i32, i32) {
    %c0_i32 = arith.constant 0 : i32
    %c0_i32_0 = arith.constant 0 : i32
    %c0_i32_1 = arith.constant 0 : i32
    return %c0_i32, %c0_i32_0 : i32, i32
  }
  func.func @transform_8(%arg0: i32) -> (i32, i32) {
    %c0_i32 = arith.constant 0 : i32
    %c0_i32_0 = arith.constant 0 : i32
    %c0_i32_1 = arith.constant 0 : i32
    return %c0_i32, %c0_i32_0 : i32, i32
  }
  func.func @transform_9(%arg0: i32) -> (i32, i32) {
    %c0_i32 = arith.constant 0 : i32
    %c0_i32_0 = arith.constant 0 : i32
    %c0_i32_1 = arith.constant 0 : i32
    return %c0_i32, %c0_i32_0 : i32, i32
  }
  func.func @transform_10(%arg0: i32) -> (i32, i32) {
    %c0_i32 = arith.constant 0 : i32
    %c0_i32_0 = arith.constant 0 : i32
    %c0_i32_1 = arith.constant 0 : i32
    return %c0_i32, %c0_i32_0 : i32, i32
  }
  func.func @transform_11(%arg0: i32) -> (i32, i32) {
    %c0_i32 = arith.constant 0 : i32
    %c0_i32_0 = arith.constant 0 : i32
    %c0_i32_1 = arith.constant 0 : i32
    return %c0_i32, %c0_i32_0 : i32, i32
  }
  func.func @transform_12(%arg0: i32) -> (i32, i32) {
    %c0_i32 = arith.constant 0 : i32
    %c0_i32_0 = arith.constant 0 : i32
    %c0_i32_1 = arith.constant 0 : i32
    return %c0_i32, %c0_i32_0 : i32, i32
  }
  func.func @transform_13(%arg0: i32) -> (i32, i32) {
    %c0_i32 = arith.constant 0 : i32
    %c0_i32_0 = arith.constant 0 : i32
    %c0_i32_1 = arith.constant 0 : i32
    return %c0_i32, %c0_i32_0 : i32, i32
  }
  func.func @transform_14(%arg0: i32) -> (i32, i32) {
    %c0_i32 = arith.constant 0 : i32
    %c0_i32_0 = arith.constant 0 : i32
    %c0_i32_1 = arith.constant 0 : i32
    return %c0_i32, %c0_i32_0 : i32, i32
  }
}

</mosaic_0001>

<bundles_post_ra>
// kernel: forward.1
= control target key start
LH: loop header
LB: loop body
LE: loop exit
PB: predicated region body
PF: predicated region fallthrough
CT: control target
= control target key end

     0   :  { %s3357_s0 = inlined_call_operand.vmem [shape: s32[8,8], index: 0, kind: input, shape index: {}]   ;;  %s3358_s1 = inlined_call_operand.vmem [shape: s32[8,8], index: 1, kind: input, shape index: {}]   ;;  %s3359_s2 = inlined_call_operand.vmem [shape: s32[2,1], index: 2, kind: input, shape index: {}]   ;;  %s3360_s3 = inlined_call_operand.vmem [shape: f32[64,32], index: 3, kind: input, shape index: {}]   ;;  %s3361_s4 = inlined_call_operand.vmem [shape: f32[64,256], index: 4, kind: input, shape index: {}]   ;;  %s3362_s5 = inlined_call_operand.hbm [shape: f32[64,256], index: 5, kind: input, shape index: {}]   ;;  %s3363_s6 = inlined_call_operand.vmem [shape: f32[1,256], index: 6, kind: input, shape index: {}]   ;;  %s3364_s7 = inlined_call_operand.vmem [shape: f32[1,64], index: 7, kind: input, shape index: {}]   ;;  %s3365_s8 = inlined_call_operand.<no memory space> [shape: f32[1,1], index: 8, kind: input, shape index: {}]   ;;  %s3366_s9 = inlined_call_operand.vmem [shape: f32[8,16], index: 9, kind: input, shape index: {}]   ;;  %s3367_s10 = inlined_call_operand.vmem [shape: f32[1,16], index: 10, kind: input, shape index: {}]   ;;  %s3368_s11 = inlined_call_operand.vmem [shape: f32[64,64], index: 11, kind: input, shape index: {}]   ;;  %s3369_s12 = inlined_call_operand.vmem [shape: f32[2,8], index: 12, kind: input, shape index: {}]   ;;  %s3370_s13 = inlined_call_operand.hbm [shape: f32[2,16], index: 13, kind: output, shape index: {0}]   ;;  %s3371_s14 = inlined_call_operand.hbm [shape: f32[1,1], index: 14, kind: output, shape index: {1}]  }
   0x1   :  { %v20_v0 = vstv %s3365_s8 }
   0x2   :  { %21 = vst [vmem:[#allocation6] sm:$0x1] %v20_v0 }
   0x3   :  { %22 = vsyncpa [#allocation8], 0 }
   0x4   :  { %23 = vsyncpa [#allocation9], 0 }
   0x5   :  { %24 = vsyncpa [#allocation12], 0  ;;  %s39_s17 = sshll.u32 %s3362_s5, 4  ;;  %s2537_s18 = smov [#allocation7]   ;;  %s40_s17 = int_to_ptr.hbm [resolvable:$true] %s39_s17 }
   0x6   :  { %s41_s19 = sshll.u32 %s2537_s18, 4  ;;  %s2538_s20 = smov 256   ;;  %s42_s19 = int_to_ptr.vmem [resolvable:$true] %s41_s19 }
   0x7   :  { %s2539_s21 = smov 16  }
   0x8   :  { %47 = dma.hbm_to_vmem [thread:$0]  %s40_s17, 2048, %s42_s19, [#allocation8], %s2538_s20, %s2538_s20, %s2539_s21  }
   0x9   :  { %2531 = dma.done.wait [#allocation8], 2048  }
   0xa   :  { %2532 = vsyncadd [#allocation8], 4294965248  ;;  %v75_v1 = vlaneseq  ;;  %v2633_v3 = vld [vmem:[%s3358_s1] sm:$0xff]  ;;  %v74_v11 = vld [vmem:[%s3360_s3 + $0x38] sm:$0xff]  ;;  %vm239_vm0 = vcmask 523264   ;;  %v2540_v26 = vmov 0.0  }
   0xb   :  { %v77_v4 = vld [vmem:[%s3357_s0] sm:$0xff]  ;;  %v159_v5 = vperm.slane %v2633_v3, 0  ;;  %v166_v8 = vperm.slane %v2633_v3, 1  ;;  %v73_v12 = vld [vmem:[%s3360_s3 + $0x30] sm:$0xff]  ;;  %2242 = vmatpush.msra.mxu3 %v74_v11  ;;  %337 = vmatpush.msra.mxu1 %v74_v11  ;;  %v72_v13 = vld [vmem:[%s3360_s3 + $0x28] sm:$0xff]  ;;  %v173_v21 = vperm.slane %v2633_v3, 2 }
   0xc   :  { %v80_v2 = vshrl.u32 %v75_v1, 7  ;;  %v78_v6 = vperm.slane %v77_v4, 0  ;;  %v92_v7 = vperm.slane %v77_v4, 2  ;;  %v85_v9 = vperm.slane %v77_v4, 1  ;;  %272 = vmatpush.msra.mxu0 %v74_v11  ;;  %v71_v16 = vld [vmem:[%s3360_s3 + $0x20] sm:$0xff]  ;;  %v70_v18 = vld [vmem:[%s3360_s3 + $0x18] sm:$0xff] }
   0xd   :  { %v99_v10 = vperm.slane %v77_v4, 3  ;;  %2243 = vmatpush.msra.mxu3 %v73_v12  ;;  %v106_v14 = vperm.slane %v77_v4, 4  ;;  %v113_v15 = vperm.slane %v77_v4, 5  ;;  %338 = vmatpush.msra.mxu1 %v73_v12  ;;  %v120_v17 = vperm.slane %v77_v4, 6  ;;  %v69_v19 = vld [vmem:[%s3360_s3 + $0x10] sm:$0xff]  ;;  %v68_v24 = vld [vmem:[%s3360_s3 + $0x8] sm:$0xff] }
   0xe   :  { %2265 = vset.pattern.permute.xlu0 %v80_v2  ;;  %2266 = vset.pattern.permute.xlu1 %v80_v2  ;;  %v127_v20 = vperm.slane %v77_v4, 7  ;;  %v180_v22 = vperm.slane %v2633_v3, 3  ;;  %v201_v23 = vperm.slane %v2633_v3, 6  ;;  %v67_v25 = vld [vmem:[%s3360_s3] sm:$0xff]  ;;  %555 = vst.msk [vmem:[#allocation3] sm:$0xff] %vm239_vm0, %v2540_v26  ;;  %v2672_v27 = vand.u32 127, %v75_v1 }
   0xf   :  { %2267 = vset.pattern.permute.xlu2 %v80_v2  ;;  %273 = vmatpush.msra.mxu0 %v73_v12  ;;  %556 = vst.msk [vmem:[#allocation4] sm:$0xff] %vm239_vm0, %v2540_v26  ;;  %v194_v42 = vperm.slane %v2633_v3, 5  ;;  %s2541_s3 = smov 32   ;;  %v428_v56 = vld [vmem:[%s3361_s4 + $0x68] sm:$0xff]  ;;  %v430_v57 = vld [vmem:[%s3361_s4 + $0x78] sm:$0xff]  ;;  %v187_v59 = vperm.slane %v2633_v3, 4 }
  0x10   :  { %2244 = vmatpush.msra.mxu3 %v72_v13  ;;  %339 = vmatpush.msra.mxu1 %v72_v13  ;;  %v543_v58 = vld [vmem:[#allocation7 + $0x60] sm:$0xff]  ;;  %v438_v60 = vpack.c.bf16 %v430_v57, %v428_v56  ;;  %v545_v61 = vld [vmem:[#allocation7 + $0x70] sm:$0xff]  ;;  %v544_v11 = vld [vmem:[#allocation7 + $0x68] sm:$0xff]  ;;  %vm402_vm13 = vcmask 261120   ;;  %s2130_s18 = sshll.u32 %s3370_s13, 4  ;;  %s2547_s13 = smov [#allocation11]   ;;  %s2131_s18 = int_to_ptr.hbm [resolvable:$true] %s2130_s18 }
  0x11   :  { %274 = vmatpush.msra.mxu0 %v72_v13  ;;  %v539_v62 = vld [vmem:[#allocation7 + $0x40] sm:$0xff]  ;;  %v541_v63 = vld [vmem:[#allocation7 + $0x50] sm:$0xff]  ;;  %v2719_v0 = vpack.c.bf16 %v545_v61, %v543_v58  ;;  %v546_v12 = vld [vmem:[#allocation7 + $0x78] sm:$0xff]  ;;  %s2141_s8 = sshll.u32 %s3371_s14, 4  ;;  %s2142_s8 = int_to_ptr.hbm [resolvable:$true] %s2141_s8 }
  0x12   :  { %2245 = vmatpush.msra.mxu3 %v71_v16  ;;  %340 = vmatpush.msra.mxu1 %v71_v16  ;;  %v424_v1 = vld [vmem:[%s3361_s4 + $0x48] sm:$0xff]  ;;  %v535_v2 = vld [vmem:[#allocation7 + $0x20] sm:$0xff]  ;;  %v423_v13 = vld [vmem:[%s3361_s4 + $0x40] sm:$0xff] }
  0x13   :  { %275 = vmatpush.msra.mxu0 %v71_v16  ;;  %v426_v4 = vld [vmem:[%s3361_s4 + $0x58] sm:$0xff] }
  0x14   :  { %2246 = vmatpush.msra.mxu3 %v70_v18  ;;  %341 = vmatpush.msra.mxu1 %v70_v18  ;;  %v540_v16 = vld [vmem:[#allocation7 + $0x48] sm:$0xff] }
  0x15   :  { %276 = vmatpush.msra.mxu0 %v70_v18  ;;  %v542_v18 = vld [vmem:[#allocation7 + $0x58] sm:$0xff] }
  0x16   :  { %164 = vperm.xlu0 %2265, %v159_v5   ;;  %83 = vperm.xlu1 %2266, %v78_v6   ;;  %v2728_v5 = vpack.c.bf16 %v541_v63, %v539_v62  ;;  %v537_v6 = vld [vmem:[#allocation7 + $0x30] sm:$0xff] }
  0x17   :  { %97 = vperm.xlu2 %2267, %v92_v7   ;;  %2247 = vmatpush.msra.mxu3 %v69_v19  ;;  %v436_v7 = vpack.c.bf16 %v426_v4, %v424_v1 }
  0x18   :  { %342 = vmatpush.msra.mxu1 %v69_v19  ;;  %277 = vmatpush.msra.mxu0 %v69_v19  ;;  %v420_v19 = vld [vmem:[%s3361_s4 + $0x28] sm:$0xff] }
  0x19   :  { %2248 = vmatpush.msra.mxu3 %v68_v24 }
  0x1a   :  { %343 = vmatpush.msra.mxu1 %v68_v24  ;;  %278 = vmatpush.msra.mxu0 %v68_v24  ;;  %v421_v24 = vld [vmem:[%s3361_s4 + $0x30] sm:$0xff] }
  0x1b   :  { %2249 = vmatpush.msra.mxu3 %v67_v25 }
  0x1c   :  { %344 = vmatpush.msra.mxu1 %v67_v25  ;;  %279 = vmatpush.msra.mxu0 %v67_v25  ;;  %v208_v25 = vperm.slane %v2633_v3, 7 }
  0x1d   :  { %490 = vmatpush.bf16.msrb.mxu3 %v438_v60 }
  0x1e   :  { %171 = vperm.xlu0 %2265, %v166_v8   ;;  %90 = vperm.xlu1 %2266, %v85_v9   ;;  %v427_v8 = vld [vmem:[%s3361_s4 + $0x60] sm:$0xff]  ;;  %v429_v9 = vld [vmem:[%s3361_s4 + $0x70] sm:$0xff] }
  0x1f   :  { %104 = vperm.xlu2 %2267, %v99_v10   ;;  %568 = vmatpush.bf16.msrb.mxu0 %v2719_v0  ;;  %v437_v10 = vpack.c.bf16 %v429_v9, %v427_v8 }
  0x21   :  { %491 = vmatpush.bf16.msrb.mxu3 %v436_v7  ;;  %461 = vmatpush.bf16.msra.mxu2 %v437_v10 }
  0x23   :  { %569 = vmatpush.bf16.msrb.mxu0 %v2728_v5 }
  0x26   :  { %111 = vperm.xlu0 %2265, %v106_v14   ;;  %118 = vperm.xlu1 %2266, %v113_v15   ;;  %v2739_v14 = vpack.c.bf16 %v546_v12, %v544_v11  ;;  %v425_v15 = vld [vmem:[%s3361_s4 + $0x50] sm:$0xff] }
  0x27   :  { %125 = vperm.xlu2 %2267, %v120_v17   ;;  %v435_v17 = vpack.c.bf16 %v425_v15, %v423_v13  ;;  %v439_v15 = vld [vmem:[%s3363_s6] sm:$0x3]  ;;  %s2543_s6 = smov 96  }
  0x28   :  { %790 = vmatpush.bf16.msrb.mxu1 %v2739_v14 }
  0x29   :  { %462 = vmatpush.bf16.msra.mxu2 %v435_v17 }
  0x2e   :  { %132 = vperm.xlu0 %2265, %v127_v20   ;;  %v422_v20 = vld [vmem:[%s3361_s4 + $0x38] sm:$0xff] }
  0x2f   :  { %178 = vperm.xlu2 %2267, %v173_v21   ;;  %v2751_v21 = vpack.c.bf16 %v537_v6, %v535_v2 }
  0x31   :  { %570 = vmatpush.bf16.msrb.mxu0 %v2751_v21 }
  0x36   :  { %185 = vperm.xlu0 %2265, %v180_v22   ;;  %v434_v22 = vpack.c.bf16 %v422_v20, %v420_v19 }
  0x37   :  { %199 = vperm.xlu2 %2267, %v194_v42   ;;  %v532_v42 = vld [vmem:[#allocation7 + $0x8] sm:$0xff] }
  0x38   :  { %492 = vmatpush.bf16.msrb.mxu3 %v434_v22 }
  0x3e   :  { %206 = vperm.xlu0 %2265, %v201_v23   ;;  %v419_v23 = vld [vmem:[%s3361_s4 + $0x20] sm:$0xff] }
  0x71   :  { %v98_v28 = vpop.permute.xlu2 %97 }
  0x72   :  { %vm136_vm1 = vcmp.eq.s32.totalorder %v98_v28, %v2672_v27  ;;  %v531_v28 = vld [vmem:[#allocation7] sm:$0xff] }
  0x73   :  { %v2158_v29 = vsel %vm136_vm1, 1.0, %v2540_v26 }
  0x74   :  { %2174 = vmatmul.msk.f32.vlgmr.msra.gmra.mxu3 %vm239_vm0, %v2158_v29  ;;  %v533_v29 = vld [vmem:[#allocation7 + $0x10] sm:$0xff] }
  0x79   :  { %v105_v30 = vpop.permute.xlu2 %104 }
  0x7a   :  { %vm137_vm2 = vcmp.eq.s32.totalorder %v105_v30, %v2672_v27  ;;  %v2761_v30 = vpack.c.bf16 %v542_v18, %v540_v16  ;;  %v2848_v16 = vperm.slane %v439_v15, 1 }
  0x7b   :  { %v2159_v31 = vsel %vm137_vm2, 1.0, %v2540_v26 }
  0x7c   :  { %2175 = vmatmul.msk.f32.gmra.mxu3 %vm239_vm0, %v2159_v31  ;;  %v433_v31 = vpack.c.bf16 %v421_v24, %v419_v23  ;;  %791 = vmatpush.bf16.msrb.mxu1 %v2761_v30 }
  0x7e   :  { %463 = vmatpush.bf16.msra.mxu2 %v433_v31 }
  0x81   :  { %v126_v32 = vpop.permute.xlu2 %125 }
  0x82   :  { %vm140_vm10 = vcmp.eq.s32.totalorder %v126_v32, %v2672_v27  ;;  %v536_v32 = vld [vmem:[#allocation7 + $0x28] sm:$0xff] }
  0x83   :  { %v2162_v49 = vsel %vm140_vm10, 1.0, %v2540_v26 }
  0x88   :  { %v165_v33 = vpop.permute.xlu0 %164  ;;  %v84_v34 = vpop.permute.xlu1 %83 }
  0x89   :  { %vm215_vm3 = vcmp.eq.s32.totalorder %v165_v33, %v2672_v27  ;;  %vm134_vm4 = vcmp.eq.s32.totalorder %v84_v34, %v2672_v27  ;;  %v179_v41 = vpop.permute.xlu2 %178  ;;  %v538_v33 = vld [vmem:[#allocation7 + $0x38] sm:$0xff]  ;;  %v2764_v34 = vpack.c.bf16 %v533_v29, %v531_v28  ;;  %v2857_v28 = vperm.slane %v439_v15, 0 }
  0x8a   :  { %v2164_v35 = vsel %vm215_vm3, 1.0, %v2540_v26  ;;  %v2156_v36 = vsel %vm134_vm4, 1.0, %v2540_v26  ;;  %vm217_vm7 = vcmp.eq.s32.totalorder %v179_v41, %v2672_v27  ;;  %v418_v41 = vld [vmem:[%s3361_s4 + $0x18] sm:$0xff] }
  0x8b   :  { %2180 = vmatmul.msk.f32.vlgmr.msra.gmra.mxu1 %vm239_vm0, %v2164_v35  ;;  %2172 = vmatmul.msk.f32.vlgmr.msra.gmra.mxu0 %vm239_vm0, %v2156_v36  ;;  %v2166_v44 = vsel %vm217_vm7, 1.0, %v2540_v26  ;;  %v559_v35 = vld [vmem:[#allocation3] sm:$0xff]  ;;  %v2767_v36 = vpack.c.bf16 %v538_v33, %v536_v32 }
  0x8c   :  { %v560_v3 = vpack.c.bf16 %v559_v35, %v559_v35  ;;  %571 = vmatpush.bf16.msrb.mxu0 %v2764_v34 }
  0x8d   :  { %792 = vmatpush.bf16.msrb.mxu1 %v2767_v36 }
  0x90   :  { %v172_v37 = vpop.permute.xlu0 %171  ;;  %v91_v38 = vpop.permute.xlu1 %90  ;;  %581 = vmatpush.bf16.msra.mxu0 %v2739_v14 }
  0x91   :  { %vm216_vm5 = vcmp.eq.s32.totalorder %v172_v37, %v2672_v27  ;;  %vm135_vm6 = vcmp.eq.s32.totalorder %v91_v38, %v2672_v27  ;;  %v415_v37 = vld [vmem:[%s3361_s4] sm:$0xff]  ;;  %v417_v38 = vld [vmem:[%s3361_s4 + $0x10] sm:$0xff]  ;;  %v200_v57 = vpop.permute.xlu2 %199 }
  0x92   :  { %v2165_v39 = vsel %vm216_vm5, 1.0, %v2540_v26  ;;  %v2157_v40 = vsel %vm135_vm6, 1.0, %v2540_v26  ;;  %vm220_vm15 = vcmp.eq.s32.totalorder %v200_v57, %v2672_v27 }
  0x93   :  { %2181 = vmatmul.msk.f32.gmra.mxu1 %vm239_vm0, %v2165_v39  ;;  %2173 = vmatmul.msk.f32.gmra.mxu0 %vm239_vm0, %v2157_v40  ;;  %v416_v39 = vld [vmem:[%s3361_s4 + $0x8] sm:$0xff]  ;;  %v431_v40 = vpack.c.bf16 %v417_v38, %v415_v37  ;;  %s2542_s4 = smov 64   ;;  %v2169_v58 = vsel %vm220_vm15, 1.0, %v2540_v26 }
  0x94   :  { %582 = vmatpush.bf16.msra.mxu0 %v2761_v30 }
  0x95   :  { %464 = vmatpush.bf16.msra.mxu2 %v431_v40 }
  0x98   :  { %v112_v43 = vpop.permute.xlu0 %111  ;;  %v119_v46 = vpop.permute.xlu1 %118  ;;  %583 = vmatpush.bf16.msra.mxu0 %v2767_v36 }
  0x99   :  { %vm138_vm8 = vcmp.eq.s32.totalorder %v112_v43, %v2672_v27  ;;  %vm139_vm9 = vcmp.eq.s32.totalorder %v119_v46, %v2672_v27  ;;  %v534_v43 = vld [vmem:[#allocation7 + $0x18] sm:$0xff]  ;;  %672 = vmatpush.bf16.msrb.mxu2 %v2719_v0 }
  0x9a   :  { %v2160_v45 = vsel %vm138_vm8, 1.0, %v2540_v26  ;;  %v2161_v48 = vsel %vm139_vm9, 1.0, %v2540_v26 }
  0x9b   :  { %2176 = vmatmul.msk.f32.gmra.mxu3 %vm239_vm0, %v2160_v45  ;;  %2182 = vmatmul.msk.f32.gmra.mxu1 %vm239_vm0, %v2166_v44  ;;  %v432_v44 = vpack.c.bf16 %v418_v41, %v416_v39  ;;  %v2787_v45 = vpack.c.bf16 %v534_v43, %v532_v42 }
  0x9c   :  { %2196 = vmatmul.msk.bf16.vlgmr.msrb.gmra.mxu0 %vm239_vm0, %v560_v3 }
  0x9d   :  { %493 = vmatpush.bf16.msrb.mxu3 %v432_v44  ;;  %584 = vmatpush.bf16.msra.mxu0 %v2787_v45 }
  0x9e   :  { %793 = vmatpush.bf16.msrb.mxu1 %v2787_v45  ;;  %673 = vmatpush.bf16.msrb.mxu2 %v2728_v5 }
  0xa0   :  { %v133_v47 = vpop.permute.xlu0 %132 }
  0xa1   :  { %vm141_vm12 = vcmp.eq.s32.totalorder %v133_v47, %v2672_v27  ;;  %685 = vmatpush.bf16.msra.mxu3 %v2739_v14  ;;  %777 = vmatpush.bf16.msrb.mxu0 %v2719_v0 }
  0xa2   :  { %v2163_v52 = vsel %vm141_vm12, 1.0, %v2540_v26  ;;  %1000 = vmatpush.bf16.msra.mxu1 %v2739_v14  ;;  %674 = vmatpush.bf16.msrb.mxu2 %v2751_v21 }
  0xa3   :  { %2177 = vmatmul.msk.f32.gmra.mxu3 %vm239_vm0, %v2161_v48 }
  0xa5   :  { %686 = vmatpush.bf16.msra.mxu3 %v2761_v30  ;;  %778 = vmatpush.bf16.msrb.mxu0 %v2728_v5 }
  0xa6   :  { %1001 = vmatpush.bf16.msra.mxu1 %v2761_v30  ;;  %675 = vmatpush.bf16.msrb.mxu2 %v2764_v34 }
  0xa8   :  { %v186_v50 = vpop.permute.xlu0 %185 }
  0xa9   :  { %vm218_vm11 = vcmp.eq.s32.totalorder %v186_v50, %v2672_v27  ;;  %687 = vmatpush.bf16.msra.mxu3 %v2767_v36  ;;  %779 = vmatpush.bf16.msrb.mxu0 %v2751_v21 }
  0xaa   :  { %v2167_v51 = vsel %vm218_vm11, 1.0, %v2540_v26  ;;  %1002 = vmatpush.bf16.msra.mxu1 %v2767_v36 }
  0xab   :  { %2178 = vmatmul.msk.f32.gmra.mxu3 %vm239_vm0, %v2162_v49  ;;  %2183 = vmatmul.msk.f32.gmra.mxu1 %vm239_vm0, %v2167_v51 }
  0xac   :  { %2197 = vmatmul.msk.bf16.vlgmr.msra.gmra.mxu0 %vm239_vm0, %v560_v3 }
  0xad   :  { %688 = vmatpush.bf16.msra.mxu3 %v2787_v45  ;;  %780 = vmatpush.bf16.msrb.mxu0 %v2764_v34 }
  0xae   :  { %1003 = vmatpush.bf16.msra.mxu1 %v2787_v45 }
  0xb1   :  { %987 = vmatpush.bf16.msra.mxu0 %v2719_v0 }
  0xb3   :  { %2179 = vmatmul.msk.f32.gmra.mxu3 %vm239_vm0, %v2163_v52 }
  0xb5   :  { %988 = vmatpush.bf16.msra.mxu0 %v2728_v5 }
  0xb9   :  { %989 = vmatpush.bf16.msra.mxu0 %v2751_v21 }
  0xbd   :  { %990 = vmatpush.bf16.msra.mxu0 %v2764_v34 }
  0xf7   :  { %v287_v2 = vpop.f32.mrf.mxu3 }
  0xff   :  { %v290_v4 = vpop.f32.mrf.mxu3 }
 0x108   :  { %v346_v53 = vpop.f32.mrf.mxu1  ;;  %v281_v46 = vpop.f32.mrf.mxu0 }
 0x110   :  { %v349_v54 = vpop.f32.mrf.mxu1  ;;  %v284_v50 = vpop.f32.mrf.mxu0 }
 0x111   :  { %v2268_v55 = vpack.i.bf16 %v349_v54, %v346_v53  ;;  %v631_v53 = vld [vmem:[#allocation4] sm:$0xff] }
 0x112   :  { %633 = vrot.lane.b32.xlu0 %v631_v53, %s2542_s4 }
 0x113   :  { %2269 = vrot.lane.b32.xlu1 %v2268_v55, %s2541_s3 }
 0x118   :  { %v352_v10 = vpop.f32.mrf.mxu1 }
 0x119   :  { %v573_v62 = vpop.f32.mrf.mxu0 }
 0x11b   :  { %192 = vperm.xlu1 %2266, %v187_v59   ;;  %v207_v59 = vpop.permute.xlu0 %206 }
 0x11c   :  { %vm221_vm1 = vcmp.eq.s32.totalorder %v207_v59, %v2672_v27 }
 0x11d   :  { %v2170_v60 = vsel %vm221_vm1, 1.0, %v2540_v26 }
 0x11e   :  { %v2837_v6 = vpop.f32.mrf.mxu3 }
 0x121   :  { %v575_v1 = vpop.f32.mrf.mxu0 }
 0x123   :  { %213 = vperm.xlu1 %2266, %v208_v25  }
 0x126   :  { %v2839_v9 = vpop.f32.mrf.mxu3 }
 0x128   :  { %v355_v12 = vpop.f32.mrf.mxu1 }
 0x129   :  { %v586_v7 = vpop.f32.mrf.mxu0  ;;  %v2273_v25 = vpack.i.bf16 %v355_v12, %v352_v10 }
 0x12e   :  { %v2841_v11 = vpop.f32.mrf.mxu3 }
 0x131   :  { %v588_v8 = vpop.f32.mrf.mxu0 }
 0x136   :  { %v2843_v13 = vpop.f32.mrf.mxu3 }
 0x184   :  { %v634_v59 = vpop.permute.xlu0 %633 }
 0x185   :  { %v2270_v47 = vpop.permute.xlu1 %2269 }
 0x186   :  { %v2272_v48 = vunpack.i.h.bf16 %v2270_v47  ;;  %v2271_v49 = vunpack.i.l.bf16 %v2270_v47 }
 0x188   :  { %v403_v51 = vsel %vm402_vm13, %v281_v46, %v2271_v49  ;;  %v404_v52 = vsel %vm402_vm13, %v284_v50, %v2272_v48 }
 0x189   :  { %v411_v54 = vpack.c.bf16 %v404_v52, %v403_v51 }
 0x18b   :  { %2188 = vmatmul.msk.bf16.vlgmr.msra.gmra.mxu2 %vm239_vm0, %v411_v54  ;;  %2192 = vmatmul.msk.bf16.vlgmr.msrb.gmra.mxu3 %vm239_vm0, %v411_v54 }
 0x18c   :  { %882 = vmatpush.bf16.msra.mxu2 %v2719_v0  ;;  %895 = vmatpush.bf16.msrb.mxu3 %v2739_v14 }
 0x18d   :  { %v193_v55 = vpop.permute.xlu1 %192 }
 0x18e   :  { %vm219_vm14 = vcmp.eq.s32.totalorder %v193_v55, %v2672_v27 }
 0x18f   :  { %v2168_v56 = vsel %vm219_vm14, 1.0, %v2540_v26 }
 0x190   :  { %2184 = vmatmul.msk.f32.gmra.mxu1 %vm239_vm0, %v2168_v56  ;;  %883 = vmatpush.bf16.msra.mxu2 %v2728_v5 }
 0x191   :  { %896 = vmatpush.bf16.msrb.mxu3 %v2761_v30 }
 0x194   :  { %884 = vmatpush.bf16.msra.mxu2 %v2751_v21 }
 0x195   :  { %897 = vmatpush.bf16.msrb.mxu3 %v2767_v36  ;;  %v214_v61 = vpop.permute.xlu1 %213 }
 0x196   :  { %vm222_vm2 = vcmp.eq.s32.totalorder %v214_v61, %v2672_v27 }
 0x197   :  { %v2171_v63 = vsel %vm222_vm2, 1.0, %v2540_v26 }
 0x198   :  { %2185 = vmatmul.msk.f32.gmra.mxu1 %vm239_vm0, %v2169_v58  ;;  %885 = vmatpush.bf16.msra.mxu2 %v2764_v34 }
 0x199   :  { %898 = vmatpush.bf16.msrb.mxu3 %v2787_v45 }
 0x1a0   :  { %2186 = vmatmul.msk.f32.gmra.mxu1 %vm239_vm0, %v2170_v60 }
 0x1a8   :  { %2187 = vmatmul.msk.f32.gmra.mxu1 %vm239_vm0, %v2171_v63 }
 0x20d   :  { %v358_v17 = vpop.f32.mrf.mxu1 }
 0x20e   :  { %v495_v18 = vpop.f32.mrf.mxu3  ;;  %v466_v29 = vpop.f32.mrf.mxu2 }
 0x20f   :  { %v496_v19 = vadd.f32 %v495_v18, %v2848_v16  ;;  %v467_v31 = vadd.f32 %v466_v29, %v2857_v28 }
 0x211   :  { %v2851_v20 = vadd.f32 %v586_v7, %v496_v19  ;;  %v590_v32 = vadd.f32 %v573_v62, %v467_v31 }
 0x213   :  { %2293 = vtanh.f32 %v2851_v20  ;;  %v2198_v33 = vmul.f32 -1.442695, %v590_v32  ;;  %v2199_v19 = vmul.f32 -1.442695, %v2851_v20 }
 0x215   :  { %v361_v22 = vpop.f32.mrf.mxu1  ;;  %2295 = vpow2.f32 %v2198_v33 }
 0x216   :  { %v2278_v23 = vpack.i.bf16 %v361_v22, %v358_v17 }
 0x218   :  { %2279 = vrot.lane.b32.xlu0 %v2278_v23, %s2541_s3 }
 0x219   :  { %v2294_v24 = vpop.eup %2293 }
 0x21a   :  { %638 = vrot.lane.b32.xlu2 %v2294_v24, %s2542_s4 }
 0x21b   :  { %v2296_v35 = vpop.eup %2295 }
 0x21c   :  { %v598_v3 = vadd.f32 1.0, %v2296_v35 }
 0x21d   :  { %v364_v44 = vpop.f32.mrf.mxu1 }
 0x21e   :  { %2297 = vrcp.f32 %v598_v3  ;;  %v611_v42 = vand.u32 2147483648, %v598_v3  ;;  %vm605_vm4 = vweird.f32 %v598_v3  ;;  %v609_v43 = vand.u32 2147483647, %v598_v3 }
 0x220   :  { %v612_v47 = vor.u32 1.1754944e-38, %v611_v42  ;;  %vm610_vm6 = vcmp.eq.f32.partialorder %v609_v43, 8.507059e+37  ;;  %v468_v42 = vpop.f32.mrf.mxu2  ;;  %v497_v43 = vpop.f32.mrf.mxu3 }
 0x222   :  { %2274 = vrot.lane.b32.xlu2 %v2273_v25, %s2541_s3 }
 0x224   :  { %v2298_v37 = vpop.eup %2297 }
 0x225   :  { %v601_v38 = vmul.f32 %v2298_v37, %v598_v3  ;;  %vm606_vm3 = vweird.f32 %v2298_v37  ;;  %v367_v51 = vpop.f32.mrf.mxu1 }
 0x226   :  { %vm607_vm5 = vmor %vm605_vm4, %vm606_vm3  ;;  %v2283_v53 = vpack.i.bf16 %v367_v51, %v364_v44 }
 0x227   :  { %v602_v39 = vsub.f32 1.0, %v601_v38 }
 0x229   :  { %v603_v40 = vmul.f32 %v2298_v37, %v602_v39 }
 0x22b   :  { %v604_v41 = vadd.f32 %v2298_v37, %v603_v40 }
 0x22d   :  { %v608_v46 = vsel %vm607_vm5, %v2298_v37, %v604_v41 }
 0x22e   :  { %v613_v48 = vsel %vm610_vm6, %v612_v47, %v608_v46 }
 0x274   :  { %v639_v49 = vpop.permute.xlu2 %638 }
 0x275   :  { %v641_v50 = vmul.f32 %v639_v49, %v613_v48 }
 0x277   :  { %643 = vrot.lane.b32.xlu1 %v641_v50, %s2542_s4 }
 0x27c   :  { %v2275_v52 = vpop.permute.xlu2 %2274 }
 0x27d   :  { %v2277_v54 = vunpack.i.h.bf16 %v2275_v52  ;;  %v2276_v55 = vunpack.i.l.bf16 %v2275_v52 }
 0x27f   :  { %2284 = vrot.lane.b32.xlu1 %v2283_v53, %s2541_s3  ;;  %v405_v56 = vsel %vm402_vm13, %v287_v2, %v2276_v55  ;;  %v406_v57 = vsel %vm402_vm13, %v290_v4, %v2277_v54  ;;  %v636_v2 = vmul.f32 %v634_v59, %v613_v48 }
 0x280   :  { %v412_v58 = vpack.c.bf16 %v406_v57, %v405_v56  ;;  %v498_v57 = vadd.f32 %v497_v43, %v2848_v16 }
 0x282   :  { %2189 = vmatmul.msk.bf16.gmra.mxu2 %vm239_vm0, %v412_v58  ;;  %2193 = vmatmul.msk.bf16.gmra.mxu3 %vm239_vm0, %v412_v58 }
 0x28a   :  { %v2280_v60 = vpop.permute.xlu0 %2279 }
 0x28b   :  { %v2282_v61 = vunpack.i.h.bf16 %v2280_v60  ;;  %v2281_v62 = vunpack.i.l.bf16 %v2280_v60 }
 0x28d   :  { %v407_v63 = vsel %vm402_vm13, %v2837_v6, %v2281_v62  ;;  %v408_v1 = vsel %vm402_vm13, %v2839_v9, %v2282_v61 }
 0x28e   :  { %v413_v7 = vpack.c.bf16 %v408_v1, %v407_v63  ;;  %v469_v1 = vadd.f32 %v468_v42, %v2857_v28 }
 0x292   :  { %2190 = vmatmul.msk.bf16.gmra.mxu2 %vm239_vm0, %v413_v7  ;;  %2194 = vmatmul.msk.bf16.gmra.mxu3 %vm239_vm0, %v413_v7 }
 0x2e9   :  { %v644_v4 = vpop.permute.xlu1 %643 }
 0x2ea   :  { %v646_v8 = vadd.f32 %v644_v4, %v636_v2 }
 0x2ec   :  { %2299 = vtanh.f32 %v646_v8  ;;  %654 = vrot.lane.b32.xlu0 %v646_v8, %s2542_s4 }
 0x2ed   :  { %2301 = vpow2.f32 %v2199_v19 }
 0x2f1   :  { %v2285_v10 = vpop.permute.xlu1 %2284 }
 0x2f2   :  { %v2300_v12 = vpop.eup %2299  ;;  %v2287_v15 = vunpack.i.h.bf16 %v2285_v10  ;;  %v2286_v17 = vunpack.i.l.bf16 %v2285_v10 }
 0x2f3   :  { %649 = vrot.lane.b32.xlu2 %v2300_v12, %s2542_s4  ;;  %v2302_v22 = vpop.eup %2301 }
 0x2f4   :  { %v409_v6 = vsel %vm402_vm13, %v2841_v11, %v2286_v17  ;;  %v410_v9 = vsel %vm402_vm13, %v2843_v13, %v2287_v15  ;;  %v599_v23 = vadd.f32 1.0, %v2302_v22 }
 0x2f5   :  { %v414_v18 = vpack.c.bf16 %v410_v9, %v409_v6 }
 0x2f6   :  { %2303 = vrcp.f32 %v599_v23  ;;  %v626_v11 = vand.u32 2147483648, %v599_v23  ;;  %vm620_vm8 = vweird.f32 %v599_v23  ;;  %v624_v13 = vand.u32 2147483647, %v599_v23 }
 0x2f7   :  { %2191 = vmatmul.msk.bf16.gmra.mxu2 %vm239_vm0, %v414_v18  ;;  %2195 = vmatmul.msk.bf16.gmra.mxu3 %vm239_vm0, %v414_v18 }
 0x2f8   :  { %v627_v35 = vor.u32 1.1754944e-38, %v626_v11  ;;  %vm625_vm10 = vcmp.eq.f32.partialorder %v624_v13, 8.507059e+37 }
 0x2fc   :  { %v2304_v24 = vpop.eup %2303 }
 0x2fd   :  { %v616_v25 = vmul.f32 %v2304_v24, %v599_v23  ;;  %vm621_vm7 = vweird.f32 %v2304_v24 }
 0x2fe   :  { %vm622_vm9 = vmor %vm620_vm8, %vm621_vm7 }
 0x2ff   :  { %v617_v29 = vsub.f32 1.0, %v616_v25 }
 0x301   :  { %v618_v31 = vmul.f32 %v2304_v24, %v617_v29 }
 0x303   :  { %v619_v32 = vadd.f32 %v2304_v24, %v618_v31 }
 0x305   :  { %v623_v33 = vsel %vm622_vm9, %v2304_v24, %v619_v32  ;;  %v2895_v44 = vpop.f32.mrf.mxu2  ;;  %v2897_v46 = vpop.f32.mrf.mxu3 }
 0x306   :  { %v628_v3 = vsel %vm625_vm10, %v627_v35, %v623_v33 }
 0x30d   :  { %v2899_v47 = vpop.f32.mrf.mxu2  ;;  %v2901_v48 = vpop.f32.mrf.mxu3 }
 0x315   :  { %v2903_v49 = vpop.f32.mrf.mxu2  ;;  %v2905_v50 = vpop.f32.mrf.mxu3 }
 0x31d   :  { %v2907_v51 = vpop.f32.mrf.mxu2  ;;  %v2909_v52 = vpop.f32.mrf.mxu3 }
 0x34d   :  { %v650_v37 = vpop.permute.xlu2 %649 }
 0x34e   :  { %v652_v20 = vmul.f32 %v650_v37, %v628_v3 }
 0x350   :  { %658 = vst.msk [vmem:[#allocation3] sm:$0xff] %vm239_vm0, %v652_v20 }
 0x351   :  { %659 = vst.msk [vmem:[#allocation5] sm:$0xff] %vm239_vm0, %v652_v20 }
 0x357   :  { %v663_v38 = vld [vmem:[#allocation3] sm:$0xff] }
 0x358   :  { %v664_v39 = vpack.c.bf16 %v663_v38, %v663_v38 }
 0x35a   :  { %2200 = vmatmul.msk.bf16.vlgmr.msrb.gmra.mxu2 %vm239_vm0, %v664_v39  ;;  %2201 = vmatmul.msk.bf16.vlgmr.msra.gmra.mxu3 %vm239_vm0, %v664_v39 }
 0x35b   :  { %1092 = vmatpush.bf16.msrb.mxu2 %v2719_v0  ;;  %1105 = vmatpush.bf16.msra.mxu3 %v2739_v14 }
 0x35e   :  { %v655_v40 = vpop.permute.xlu0 %654 }
 0x35f   :  { %657 = vst.msk [vmem:[#allocation4] sm:$0xff] %vm239_vm0, %v655_v40  ;;  %1093 = vmatpush.bf16.msrb.mxu2 %v2728_v5  ;;  %1106 = vmatpush.bf16.msra.mxu3 %v2761_v30 }
 0x363   :  { %1094 = vmatpush.bf16.msrb.mxu2 %v2751_v21  ;;  %1107 = vmatpush.bf16.msra.mxu3 %v2767_v36 }
 0x366   :  { %v735_v41 = vld [vmem:[#allocation4] sm:$0xff] }
 0x367   :  { %737 = vrot.lane.b32.xlu2 %v735_v41, %s2542_s4  ;;  %1095 = vmatpush.bf16.msrb.mxu2 %v2764_v34 }
 0x368   :  { %1108 = vmatpush.bf16.msra.mxu3 %v2787_v45 }
 0x37a   :  { %v2911_v53 = vpop.f32.mrf.mxu2  ;;  %v2913_v54 = vpop.f32.mrf.mxu3 }
 0x382   :  { %v2915_v55 = vpop.f32.mrf.mxu2  ;;  %v2917_v56 = vpop.f32.mrf.mxu3 }
 0x3c1   :  { %v738_v29 = vpop.permute.xlu2 %737 }
 0x3dd   :  { %v677_v58 = vpop.f32.mrf.mxu2  ;;  %v690_v59 = vpop.f32.mrf.mxu3 }
 0x3de   :  { %v695_v60 = vadd.f32 %v690_v59, %v498_v57  ;;  %v694_v7 = vadd.f32 %v677_v58, %v469_v1 }
 0x3e0   :  { %2305 = vtanh.f32 %v695_v60  ;;  %v2202_v2 = vmul.f32 -1.442695, %v694_v7  ;;  %v2203_v33 = vmul.f32 -1.442695, %v695_v60  ;;  %v472_v7 = vadd.f32 %v2895_v44, %v2857_v28 }
 0x3e2   :  { %2307 = vpow2.f32 %v2202_v2  ;;  %v501_v2 = vadd.f32 %v2897_v46, %v2848_v16 }
 0x3e5   :  { %v679_v61 = vpop.f32.mrf.mxu2  ;;  %v692_v62 = vpop.f32.mrf.mxu3 }
 0x3e6   :  { %v2306_v63 = vpop.eup %2305 }
 0x3e7   :  { %742 = vrot.lane.b32.xlu1 %v2306_v63, %s2542_s4 }
 0x3e8   :  { %v2308_v4 = vpop.eup %2307 }
 0x3e9   :  { %v702_v8 = vadd.f32 1.0, %v2308_v4 }
 0x3eb   :  { %2309 = vrcp.f32 %v702_v8  ;;  %v715_v9 = vand.u32 2147483648, %v702_v8  ;;  %vm709_vm12 = vweird.f32 %v702_v8  ;;  %v713_v18 = vand.u32 2147483647, %v702_v8 }
 0x3ed   :  { %v716_v22 = vor.u32 1.1754944e-38, %v715_v9  ;;  %vm714_vm15 = vcmp.eq.f32.partialorder %v713_v18, 8.507059e+37 }
 0x3f1   :  { %v2310_v10 = vpop.eup %2309 }
 0x3f2   :  { %v705_v12 = vmul.f32 %v2310_v10, %v702_v8  ;;  %vm710_vm11 = vweird.f32 %v2310_v10 }
 0x3f3   :  { %vm711_vm14 = vmor %vm709_vm12, %vm710_vm11 }
 0x3f4   :  { %v706_v15 = vsub.f32 1.0, %v705_v12 }
 0x3f6   :  { %v707_v17 = vmul.f32 %v2310_v10, %v706_v15 }
 0x3f8   :  { %v708_v6 = vadd.f32 %v2310_v10, %v707_v17 }
 0x3fa   :  { %v712_v19 = vsel %vm711_vm14, %v2310_v10, %v708_v6 }
 0x3fb   :  { %v717_v24 = vsel %vm714_vm15, %v716_v22, %v712_v19 }
 0x3fc   :  { %v740_v31 = vmul.f32 %v738_v29, %v717_v24 }
 0x459   :  { %v743_v23 = vpop.permute.xlu1 %742 }
 0x45a   :  { %v745_v25 = vmul.f32 %v743_v23, %v717_v24 }
 0x45c   :  { %747 = vrot.lane.b32.xlu0 %v745_v25, %s2542_s4 }
 0x4ce   :  { %v748_v32 = vpop.permute.xlu0 %747 }
 0x4cf   :  { %v750_v11 = vadd.f32 %v748_v32, %v740_v31 }
 0x4d1   :  { %2311 = vtanh.f32 %v750_v11  ;;  %758 = vrot.lane.b32.xlu2 %v750_v11, %s2542_s4 }
 0x4d2   :  { %2313 = vpow2.f32 %v2203_v33 }
 0x4d7   :  { %v2312_v13 = vpop.eup %2311 }
 0x4d8   :  { %753 = vrot.lane.b32.xlu1 %v2312_v13, %s2542_s4  ;;  %v2314_v35 = vpop.eup %2313 }
 0x4d9   :  { %v703_v3 = vadd.f32 1.0, %v2314_v35 }
 0x4db   :  { %2315 = vrcp.f32 %v703_v3  ;;  %v730_v43 = vand.u32 2147483648, %v703_v3  ;;  %vm724_vm2 = vweird.f32 %v703_v3  ;;  %v728_v57 = vand.u32 2147483647, %v703_v3 }
 0x4dd   :  { %v731_v59 = vor.u32 1.1754944e-38, %v730_v43  ;;  %vm729_vm4 = vcmp.eq.f32.partialorder %v728_v57, 8.507059e+37 }
 0x4e1   :  { %v2316_v38 = vpop.eup %2315 }
 0x4e2   :  { %v720_v39 = vmul.f32 %v2316_v38, %v703_v3  ;;  %vm725_vm1 = vweird.f32 %v2316_v38 }
 0x4e3   :  { %vm726_vm3 = vmor %vm724_vm2, %vm725_vm1 }
 0x4e4   :  { %v721_v40 = vsub.f32 1.0, %v720_v39 }
 0x4e6   :  { %v722_v41 = vmul.f32 %v2316_v38, %v721_v40 }
 0x4e8   :  { %v723_v42 = vadd.f32 %v2316_v38, %v722_v41 }
 0x4ea   :  { %v727_v58 = vsel %vm726_vm3, %v2316_v38, %v723_v42 }
 0x4eb   :  { %v732_v60 = vsel %vm729_vm4, %v731_v59, %v727_v58 }
 0x52b   :  { %v759_v37 = vpop.permute.xlu2 %758 }
 0x52c   :  { %761 = vst.msk [vmem:[#allocation4] sm:$0xff] %vm239_vm0, %v759_v37 }
 0x533   :  { %v840_v20 = vld [vmem:[#allocation4] sm:$0xff] }
 0x534   :  { %842 = vrot.lane.b32.xlu1 %v840_v20, %s2542_s4 }
 0x54a   :  { %v754_v61 = vpop.permute.xlu1 %753 }
 0x54b   :  { %v756_v62 = vmul.f32 %v754_v61, %v732_v60 }
 0x54d   :  { %762 = vst.msk [vmem:[#allocation3] sm:$0xff] %vm239_vm0, %v756_v62 }
 0x54e   :  { %764 = vst.msk [vmem:[#allocation5 + $0x8] sm:$0xff] %vm239_vm0, %v756_v62 }
 0x554   :  { %v768_v63 = vld [vmem:[#allocation3] sm:$0xff] }
 0x555   :  { %v769_v1 = vpack.c.bf16 %v768_v63, %v768_v63 }
 0x557   :  { %2204 = vmatmul.msk.bf16.vlgmr.msrb.gmra.mxu0 %vm239_vm0, %v769_v1  ;;  %2205 = vmatmul.msk.bf16.vlgmr.msrb.gmra.mxu1 %vm239_vm0, %v769_v1 }
 0x558   :  { %1197 = vmatpush.bf16.msrb.mxu0 %v2719_v0  ;;  %1210 = vmatpush.bf16.msrb.mxu1 %v2739_v14 }
 0x55c   :  { %1198 = vmatpush.bf16.msrb.mxu0 %v2728_v5  ;;  %1211 = vmatpush.bf16.msrb.mxu1 %v2761_v30 }
 0x560   :  { %1199 = vmatpush.bf16.msrb.mxu0 %v2751_v21  ;;  %1212 = vmatpush.bf16.msrb.mxu1 %v2767_v36 }
 0x564   :  { %1200 = vmatpush.bf16.msrb.mxu0 %v2764_v34  ;;  %1213 = vmatpush.bf16.msrb.mxu1 %v2787_v45 }
 0x5a6   :  { %v843_v35 = vpop.permute.xlu1 %842 }
 0x5d4   :  { %v782_v4 = vpop.f32.mrf.mxu0  ;;  %v795_v8 = vpop.f32.mrf.mxu1 }
 0x5d5   :  { %v799_v10 = vadd.f32 %v782_v4, %v472_v7  ;;  %v800_v12 = vadd.f32 %v795_v8, %v501_v2 }
 0x5d7   :  { %2317 = vtanh.f32 %v800_v12  ;;  %v2206_v9 = vmul.f32 -1.442695, %v799_v10  ;;  %v2207_v39 = vmul.f32 -1.442695, %v800_v12 }
 0x5d9   :  { %2319 = vpow2.f32 %v2206_v9 }
 0x5dc   :  { %v784_v15 = vpop.f32.mrf.mxu0  ;;  %v797_v17 = vpop.f32.mrf.mxu1 }
 0x5dd   :  { %v2318_v6 = vpop.eup %2317  ;;  %v474_v15 = vadd.f32 %v2899_v47, %v2857_v28 }
 0x5de   :  { %847 = vrot.lane.b32.xlu0 %v2318_v6, %s2542_s4 }
 0x5df   :  { %v2320_v18 = vpop.eup %2319 }
 0x5e0   :  { %v807_v19 = vadd.f32 1.0, %v2320_v18 }
 0x5e2   :  { %2321 = vrcp.f32 %v807_v19  ;;  %v820_v25 = vand.u32 2147483648, %v807_v19  ;;  %vm814_vm6 = vweird.f32 %v807_v19  ;;  %v818_v29 = vand.u32 2147483647, %v807_v19 }
 0x5e4   :  { %v821_v32 = vor.u32 1.1754944e-38, %v820_v25  ;;  %vm819_vm8 = vcmp.eq.f32.partialorder %v818_v29, 8.507059e+37 }
 0x5e8   :  { %v2322_v22 = vpop.eup %2321 }
 0x5e9   :  { %v810_v44 = vmul.f32 %v2322_v22, %v807_v19  ;;  %vm815_vm5 = vweird.f32 %v2322_v22 }
 0x5ea   :  { %vm816_vm7 = vmor %vm814_vm6, %vm815_vm5 }
 0x5eb   :  { %v811_v23 = vsub.f32 1.0, %v810_v44 }
 0x5ed   :  { %v812_v24 = vmul.f32 %v2322_v22, %v811_v23 }
 0x5ef   :  { %v813_v46 = vadd.f32 %v2322_v22, %v812_v24 }
 0x5f1   :  { %v817_v31 = vsel %vm816_vm7, %v2322_v22, %v813_v46 }
 0x5f2   :  { %v822_v13 = vsel %vm819_vm8, %v821_v32, %v817_v31 }
 0x5f3   :  { %v845_v3 = vmul.f32 %v843_v35, %v822_v13 }
 0x650   :  { %v848_v11 = vpop.permute.xlu0 %847 }
 0x651   :  { %v850_v33 = vmul.f32 %v848_v11, %v822_v13 }
 0x653   :  { %852 = vrot.lane.b32.xlu2 %v850_v33, %s2542_s4 }
 0x6ad   :  { %v853_v37 = vpop.permute.xlu2 %852 }
 0x6ae   :  { %v855_v20 = vadd.f32 %v853_v37, %v845_v3 }
 0x6b0   :  { %2323 = vtanh.f32 %v855_v20  ;;  %863 = vrot.lane.b32.xlu1 %v855_v20, %s2542_s4 }
 0x6b1   :  { %2325 = vpow2.f32 %v2207_v39 }
 0x6b6   :  { %v2324_v38 = vpop.eup %2323 }
 0x6b7   :  { %858 = vrot.lane.b32.xlu0 %v2324_v38, %s2542_s4  ;;  %v2326_v40 = vpop.eup %2325 }
 0x6b8   :  { %v808_v41 = vadd.f32 1.0, %v2326_v40 }
 0x6ba   :  { %2327 = vrcp.f32 %v808_v41  ;;  %v835_v61 = vand.u32 2147483648, %v808_v41  ;;  %vm829_vm10 = vweird.f32 %v808_v41  ;;  %v833_v62 = vand.u32 2147483647, %v808_v41 }
 0x6bc   :  { %v836_v1 = vor.u32 1.1754944e-38, %v835_v61  ;;  %vm834_vm12 = vcmp.eq.f32.partialorder %v833_v62, 8.507059e+37 }
 0x6c0   :  { %v2328_v42 = vpop.eup %2327 }
 0x6c1   :  { %v825_v43 = vmul.f32 %v2328_v42, %v808_v41  ;;  %vm830_vm9 = vweird.f32 %v2328_v42 }
 0x6c2   :  { %vm831_vm11 = vmor %vm829_vm10, %vm830_vm9 }
 0x6c3   :  { %v826_v57 = vsub.f32 1.0, %v825_v43 }
 0x6c5   :  { %v827_v58 = vmul.f32 %v2328_v42, %v826_v57 }
 0x6c7   :  { %v828_v60 = vadd.f32 %v2328_v42, %v827_v58 }
 0x6c9   :  { %v832_v63 = vsel %vm831_vm11, %v2328_v42, %v828_v60 }
 0x6ca   :  { %v837_v7 = vsel %vm834_vm12, %v836_v1, %v832_v63 }
 0x722   :  { %v864_v59 = vpop.permute.xlu1 %863 }
 0x723   :  { %866 = vst.msk [vmem:[#allocation4] sm:$0xff] %vm239_vm0, %v864_v59 }
 0x729   :  { %v859_v2 = vpop.permute.xlu0 %858 }
 0x72a   :  { %v861_v4 = vmul.f32 %v859_v2, %v837_v7  ;;  %v945_v8 = vld [vmem:[#allocation4] sm:$0xff] }
 0x72b   :  { %947 = vrot.lane.b32.xlu0 %v945_v8, %s2542_s4  ;;  %v506_v8 = vadd.f32 %v2905_v50, %v2848_v16 }
 0x72c   :  { %867 = vst.msk [vmem:[#allocation3] sm:$0xff] %vm239_vm0, %v861_v4 }
 0x72d   :  { %869 = vst.msk [vmem:[#allocation5 + $0x10] sm:$0xff] %vm239_vm0, %v861_v4  ;;  %v477_v4 = vadd.f32 %v2903_v49, %v2857_v28 }
 0x733   :  { %v873_v10 = vld [vmem:[#allocation3] sm:$0xff] }
 0x734   :  { %v874_v12 = vpack.c.bf16 %v873_v10, %v873_v10 }
 0x736   :  { %2208 = vmatmul.msk.bf16.vlgmr.msra.gmra.mxu2 %vm239_vm0, %v874_v12  ;;  %2209 = vmatmul.msk.bf16.vlgmr.msrb.gmra.mxu3 %vm239_vm0, %v874_v12 }
 0x737   :  { %1302 = vmatpush.bf16.msra.mxu2 %v2719_v0  ;;  %1315 = vmatpush.bf16.msrb.mxu3 %v2739_v14  ;;  %v503_v0 = vadd.f32 %v2901_v48, %v2848_v16 }
 0x73b   :  { %1303 = vmatpush.bf16.msra.mxu2 %v2728_v5  ;;  %1316 = vmatpush.bf16.msrb.mxu3 %v2761_v30 }
 0x73f   :  { %1304 = vmatpush.bf16.msra.mxu2 %v2751_v21  ;;  %1317 = vmatpush.bf16.msrb.mxu3 %v2767_v36 }
 0x743   :  { %1305 = vmatpush.bf16.msra.mxu2 %v2764_v34  ;;  %1318 = vmatpush.bf16.msrb.mxu3 %v2787_v45 }
 0x79d   :  { %v948_v32 = vpop.permute.xlu0 %947 }
 0x7b9   :  { %v887_v17 = vpop.f32.mrf.mxu2  ;;  %v900_v14 = vpop.f32.mrf.mxu3 }
 0x7ba   :  { %v904_v6 = vadd.f32 %v887_v17, %v474_v15  ;;  %v905_v5 = vadd.f32 %v900_v14, %v503_v0 }
 0x7bc   :  { %2329 = vtanh.f32 %v905_v5  ;;  %v2210_v36 = vmul.f32 -1.442695, %v904_v6  ;;  %v2211_v3 = vmul.f32 -1.442695, %v905_v5 }
 0x7be   :  { %2331 = vpow2.f32 %v2210_v36 }
 0x7c1   :  { %v889_v30 = vpop.f32.mrf.mxu2  ;;  %v902_v9 = vpop.f32.mrf.mxu3 }
 0x7c2   :  { %v2330_v21 = vpop.eup %2329 }
 0x7c3   :  { %952 = vrot.lane.b32.xlu2 %v2330_v21, %s2542_s4 }
 0x7c4   :  { %v2332_v34 = vpop.eup %2331 }
 0x7c5   :  { %v912_v45 = vadd.f32 1.0, %v2332_v34 }
 0x7c7   :  { %2333 = vrcp.f32 %v912_v45  ;;  %v925_v44 = vand.u32 2147483648, %v912_v45  ;;  %vm919_vm15 = vweird.f32 %v912_v45  ;;  %v923_v23 = vand.u32 2147483647, %v912_v45 }
 0x7c9   :  { %v926_v46 = vor.u32 1.1754944e-38, %v925_v44  ;;  %vm924_vm2 = vcmp.eq.f32.partialorder %v923_v23, 8.507059e+37 }
 0x7cd   :  { %v2334_v18 = vpop.eup %2333 }
 0x7ce   :  { %v915_v47 = vmul.f32 %v2334_v18, %v912_v45  ;;  %vm920_vm14 = vweird.f32 %v2334_v18 }
 0x7cf   :  { %vm921_vm1 = vmor %vm919_vm15, %vm920_vm14 }
 0x7d0   :  { %v916_v19 = vsub.f32 1.0, %v915_v47 }
 0x7d2   :  { %v917_v22 = vmul.f32 %v2334_v18, %v916_v19 }
 0x7d4   :  { %v918_v48 = vadd.f32 %v2334_v18, %v917_v22 }
 0x7d6   :  { %v922_v24 = vsel %vm921_vm1, %v2334_v18, %v918_v48 }
 0x7d7   :  { %v927_v29 = vsel %vm924_vm2, %v926_v46, %v922_v24 }
 0x7d8   :  { %v950_v11 = vmul.f32 %v948_v32, %v927_v29 }
 0x81d   :  { %v953_v25 = vpop.permute.xlu2 %952 }
 0x81e   :  { %v955_v31 = vmul.f32 %v953_v25, %v927_v29 }
 0x820   :  { %957 = vrot.lane.b32.xlu1 %v955_v31, %s2542_s4 }
 0x892   :  { %v958_v13 = vpop.permute.xlu1 %957 }
 0x893   :  { %v960_v33 = vadd.f32 %v958_v13, %v950_v11 }
 0x895   :  { %2335 = vtanh.f32 %v960_v33  ;;  %968 = vrot.lane.b32.xlu0 %v960_v33, %s2542_s4 }
 0x896   :  { %2337 = vpow2.f32 %v2211_v3 }
 0x89b   :  { %v2336_v35 = vpop.eup %2335 }
 0x89c   :  { %963 = vrot.lane.b32.xlu2 %v2336_v35, %s2542_s4  ;;  %v2338_v37 = vpop.eup %2337 }
 0x89d   :  { %v913_v20 = vadd.f32 1.0, %v2338_v37 }
 0x89f   :  { %2339 = vrcp.f32 %v913_v20  ;;  %v940_v43 = vand.u32 2147483648, %v913_v20  ;;  %vm934_vm4 = vweird.f32 %v913_v20  ;;  %v938_v57 = vand.u32 2147483647, %v913_v20 }
 0x8a1   :  { %v941_v59 = vor.u32 1.1754944e-38, %v940_v43  ;;  %vm939_vm6 = vcmp.eq.f32.partialorder %v938_v57, 8.507059e+37 }
 0x8a5   :  { %v2340_v38 = vpop.eup %2339 }
 0x8a6   :  { %v930_v39 = vmul.f32 %v2340_v38, %v913_v20  ;;  %vm935_vm3 = vweird.f32 %v2340_v38 }
 0x8a7   :  { %vm936_vm5 = vmor %vm934_vm4, %vm935_vm3 }
 0x8a8   :  { %v931_v40 = vsub.f32 1.0, %v930_v39 }
 0x8aa   :  { %v932_v41 = vmul.f32 %v2340_v38, %v931_v40 }
 0x8ac   :  { %v933_v42 = vadd.f32 %v2340_v38, %v932_v41 }
 0x8ae   :  { %v937_v58 = vsel %vm936_vm5, %v2340_v38, %v933_v42 }
 0x8af   :  { %v942_v60 = vsel %vm939_vm6, %v941_v59, %v937_v58 }
 0x8f6   :  { %v964_v61 = vpop.permute.xlu2 %963 }
 0x8f7   :  { %v966_v62 = vmul.f32 %v964_v61, %v942_v60  ;;  %v508_v61 = vadd.f32 %v2909_v52, %v2848_v16 }
 0x8f9   :  { %972 = vst.msk [vmem:[#allocation3] sm:$0xff] %vm239_vm0, %v966_v62 }
 0x8fa   :  { %974 = vst.msk [vmem:[#allocation5 + $0x18] sm:$0xff] %vm239_vm0, %v966_v62 }
 0x900   :  { %v978_v63 = vld [vmem:[#allocation3] sm:$0xff] }
 0x901   :  { %v979_v1 = vpack.c.bf16 %v978_v63, %v978_v63 }
 0x903   :  { %2212 = vmatmul.msk.bf16.vlgmr.msra.gmra.mxu0 %vm239_vm0, %v979_v1  ;;  %2213 = vmatmul.msk.bf16.vlgmr.msra.gmra.mxu1 %vm239_vm0, %v979_v1 }
 0x907   :  { %v969_v7 = vpop.permute.xlu0 %968 }
 0x908   :  { %971 = vst.msk [vmem:[#allocation4] sm:$0xff] %vm239_vm0, %v969_v7 }
 0x90f   :  { %v1050_v2 = vld [vmem:[#allocation4] sm:$0xff] }
 0x910   :  { %1052 = vrot.lane.b32.xlu2 %v1050_v2, %s2542_s4 }
 0x96a   :  { %v1053_v23 = vpop.permute.xlu2 %1052 }
 0x980   :  { %v992_v10 = vpop.f32.mrf.mxu0  ;;  %v1005_v12 = vpop.f32.mrf.mxu1 }
 0x981   :  { %v1009_v15 = vadd.f32 %v992_v10, %v477_v4  ;;  %v1010_v0 = vadd.f32 %v1005_v12, %v506_v8  ;;  %v479_v8 = vadd.f32 %v2907_v51, %v2857_v28 }
 0x983   :  { %2341 = vtanh.f32 %v1010_v0  ;;  %v2214_v5 = vmul.f32 -1.442695, %v1009_v15  ;;  %v2215_v31 = vmul.f32 -1.442695, %v1010_v0 }
 0x985   :  { %2343 = vpow2.f32 %v2214_v5 }
 0x988   :  { %v994_v17 = vpop.f32.mrf.mxu0  ;;  %v1007_v14 = vpop.f32.mrf.mxu1 }
 0x989   :  { %v2342_v6 = vpop.eup %2341 }
 0x98a   :  { %1057 = vrot.lane.b32.xlu1 %v2342_v6, %s2542_s4 }
 0x98b   :  { %v2344_v30 = vpop.eup %2343 }
 0x98c   :  { %v1017_v9 = vadd.f32 1.0, %v2344_v30 }
 0x98e   :  { %2345 = vrcp.f32 %v1017_v9  ;;  %v1030_v45 = vand.u32 2147483648, %v1017_v9  ;;  %vm1024_vm8 = vweird.f32 %v1017_v9  ;;  %v1028_v18 = vand.u32 2147483647, %v1017_v9 }
 0x990   :  { %v1031_v19 = vor.u32 1.1754944e-38, %v1030_v45  ;;  %vm1029_vm10 = vcmp.eq.f32.partialorder %v1028_v18, 8.507059e+37 }
 0x994   :  { %v2346_v21 = vpop.eup %2345 }
 0x995   :  { %v1020_v49 = vmul.f32 %v2346_v21, %v1017_v9  ;;  %vm1025_vm7 = vweird.f32 %v2346_v21 }
 0x996   :  { %vm1026_vm9 = vmor %vm1024_vm8, %vm1025_vm7 }
 0x997   :  { %v1021_v36 = vsub.f32 1.0, %v1020_v49 }
 0x999   :  { %v1022_v34 = vmul.f32 %v2346_v21, %v1021_v36 }
 0x99b   :  { %v1023_v50 = vadd.f32 %v2346_v21, %v1022_v34 }
 0x99d   :  { %v1027_v47 = vsel %vm1026_vm9, %v2346_v21, %v1023_v50 }
 0x99e   :  { %v1032_v48 = vsel %vm1029_vm10, %v1031_v19, %v1027_v47 }
 0x99f   :  { %v1055_v24 = vmul.f32 %v1053_v23, %v1032_v48 }
 0x9fc   :  { %v1058_v22 = vpop.permute.xlu1 %1057 }
 0x9fd   :  { %v1060_v44 = vmul.f32 %v1058_v22, %v1032_v48 }
 0x9ff   :  { %1062 = vrot.lane.b32.xlu0 %v1060_v44, %s2542_s4 }
 0xa71   :  { %v1063_v46 = vpop.permute.xlu0 %1062 }
 0xa72   :  { %v1065_v25 = vadd.f32 %v1063_v46, %v1055_v24 }
 0xa74   :  { %2347 = vtanh.f32 %v1065_v25  ;;  %1073 = vrot.lane.b32.xlu2 %v1065_v25, %s2542_s4 }
 0xa75   :  { %2349 = vpow2.f32 %v2215_v31 }
 0xa7a   :  { %v2348_v29 = vpop.eup %2347 }
 0xa7b   :  { %1068 = vrot.lane.b32.xlu1 %v2348_v29, %s2542_s4  ;;  %v2350_v32 = vpop.eup %2349 }
 0xa7c   :  { %v1018_v11 = vadd.f32 1.0, %v2350_v32 }
 0xa7e   :  { %2351 = vrcp.f32 %v1018_v11  ;;  %v1045_v39 = vand.u32 2147483648, %v1018_v11  ;;  %vm1039_vm12 = vweird.f32 %v1018_v11  ;;  %v1043_v40 = vand.u32 2147483647, %v1018_v11 }
 0xa80   :  { %v1046_v42 = vor.u32 1.1754944e-38, %v1045_v39  ;;  %vm1044_vm15 = vcmp.eq.f32.partialorder %v1043_v40, 8.507059e+37  ;;  %v482_v40 = vadd.f32 %v2911_v53, %v2857_v28 }
 0xa84   :  { %v2352_v35 = vpop.eup %2351 }
 0xa85   :  { %v1035_v3 = vmul.f32 %v2352_v35, %v1018_v11  ;;  %vm1040_vm11 = vweird.f32 %v2352_v35 }
 0xa86   :  { %vm1041_vm14 = vmor %vm1039_vm12, %vm1040_vm11 }
 0xa87   :  { %v1036_v37 = vsub.f32 1.0, %v1035_v3 }
 0xa89   :  { %v1037_v20 = vmul.f32 %v2352_v35, %v1036_v37 }
 0xa8b   :  { %v1038_v38 = vadd.f32 %v2352_v35, %v1037_v20 }
 0xa8d   :  { %v1042_v41 = vsel %vm1041_vm14, %v2352_v35, %v1038_v38 }
 0xa8e   :  { %v1047_v43 = vsel %vm1044_vm15, %v1046_v42, %v1042_v41  ;;  %v511_v41 = vadd.f32 %v2913_v54, %v2848_v16 }
 0xace   :  { %v1074_v13 = vpop.permute.xlu2 %1073 }
 0xacf   :  { %1076 = vst.msk [vmem:[#allocation4] sm:$0xff] %vm239_vm0, %v1074_v13 }
 0xad6   :  { %v1155_v33 = vld [vmem:[#allocation4] sm:$0xff] }
 0xad7   :  { %1157 = vrot.lane.b32.xlu1 %v1155_v33, %s2542_s4 }
 0xaed   :  { %v1069_v57 = vpop.permute.xlu1 %1068 }
 0xaee   :  { %v1071_v58 = vmul.f32 %v1069_v57, %v1047_v43 }
 0xaf0   :  { %1077 = vst.msk [vmem:[#allocation3] sm:$0xff] %vm239_vm0, %v1071_v58 }
 0xaf1   :  { %1079 = vst.msk [vmem:[#allocation5 + $0x20] sm:$0xff] %vm239_vm0, %v1071_v58 }
 0xaf7   :  { %v1083_v59 = vld [vmem:[#allocation3] sm:$0xff] }
 0xaf8   :  { %v1084_v60 = vpack.c.bf16 %v1083_v59, %v1083_v59 }
 0xafa   :  { %2216 = vmatmul.msk.bf16.vlgmr.msrb.gmra.mxu2 %vm239_vm0, %v1084_v60  ;;  %2217 = vmatmul.msk.bf16.vlgmr.msra.gmra.mxu3 %vm239_vm0, %v1084_v60 }
 0xb49   :  { %v1158_v50 = vpop.permute.xlu1 %1157 }
 0xb7d   :  { %v1097_v62 = vpop.f32.mrf.mxu2  ;;  %v1110_v63 = vpop.f32.mrf.mxu3 }
 0xb7e   :  { %v1115_v1 = vadd.f32 %v1110_v63, %v508_v61  ;;  %v1114_v10 = vadd.f32 %v1097_v62, %v479_v8 }
 0xb80   :  { %2353 = vtanh.f32 %v1115_v1  ;;  %v2218_v12 = vmul.f32 -1.442695, %v1114_v10  ;;  %v2219_v22 = vmul.f32 -1.442695, %v1115_v1 }
 0xb82   :  { %2355 = vpow2.f32 %v2218_v12 }
 0xb85   :  { %v1099_v7 = vpop.f32.mrf.mxu2  ;;  %v1112_v2 = vpop.f32.mrf.mxu3 }
 0xb86   :  { %v2354_v4 = vpop.eup %2353 }
 0xb87   :  { %1162 = vrot.lane.b32.xlu0 %v2354_v4, %s2542_s4 }
 0xb88   :  { %v2356_v15 = vpop.eup %2355 }
 0xb89   :  { %v1122_v0 = vadd.f32 1.0, %v2356_v15 }
 0xb8b   :  { %2357 = vrcp.f32 %v1122_v0  ;;  %v1135_v30 = vand.u32 2147483648, %v1122_v0  ;;  %vm1129_vm2 = vweird.f32 %v1122_v0  ;;  %v1133_v9 = vand.u32 2147483647, %v1122_v0 }
 0xb8d   :  { %v1136_v49 = vor.u32 1.1754944e-38, %v1135_v30  ;;  %vm1134_vm4 = vcmp.eq.f32.partialorder %v1133_v9, 8.507059e+37 }
 0xb91   :  { %v2358_v17 = vpop.eup %2357 }
 0xb92   :  { %v1125_v52 = vmul.f32 %v2358_v17, %v1122_v0  ;;  %vm1130_vm1 = vweird.f32 %v2358_v17 }
 0xb93   :  { %vm1131_vm3 = vmor %vm1129_vm2, %vm1130_vm1 }
 0xb94   :  { %v1126_v14 = vsub.f32 1.0, %v1125_v52 }
 0xb96   :  { %v1127_v6 = vmul.f32 %v2358_v17, %v1126_v14 }
 0xb98   :  { %v1128_v5 = vadd.f32 %v2358_v17, %v1127_v6 }
 0xb9a   :  { %v1132_v21 = vsel %vm1131_vm3, %v2358_v17, %v1128_v5 }
 0xb9b   :  { %v1137_v36 = vsel %vm1134_vm4, %v1136_v49, %v1132_v21 }
 0xb9c   :  { %v1160_v45 = vmul.f32 %v1158_v50, %v1137_v36 }
 0xbf9   :  { %v1163_v51 = vpop.permute.xlu0 %1162 }
 0xbfa   :  { %v1165_v34 = vmul.f32 %v1163_v51, %v1137_v36 }
 0xbfc   :  { %1167 = vrot.lane.b32.xlu2 %v1165_v34, %s2542_s4 }
 0xc56   :  { %v1168_v18 = vpop.permute.xlu2 %1167 }
 0xc57   :  { %v1170_v47 = vadd.f32 %v1168_v18, %v1160_v45 }
 0xc59   :  { %2359 = vtanh.f32 %v1170_v47  ;;  %1178 = vrot.lane.b32.xlu1 %v1170_v47, %s2542_s4 }
 0xc5a   :  { %2361 = vpow2.f32 %v2219_v22 }
 0xc5f   :  { %v2360_v19 = vpop.eup %2359 }
 0xc60   :  { %1173 = vrot.lane.b32.xlu0 %v2360_v19, %s2542_s4  ;;  %v2362_v48 = vpop.eup %2361 }
 0xc61   :  { %v1123_v44 = vadd.f32 1.0, %v2362_v48 }
 0xc63   :  { %2363 = vrcp.f32 %v1123_v44  ;;  %v1150_v32 = vand.u32 2147483648, %v1123_v44  ;;  %vm1144_vm6 = vweird.f32 %v1123_v44  ;;  %v1148_v11 = vand.u32 2147483647, %v1123_v44 }
 0xc65   :  { %v1151_v33 = vor.u32 1.1754944e-38, %v1150_v32  ;;  %vm1149_vm8 = vcmp.eq.f32.partialorder %v1148_v11, 8.507059e+37  ;;  %v513_v32 = vadd.f32 %v2917_v56, %v2848_v16 }
 0xc69   :  { %v2364_v23 = vpop.eup %2363 }
 0xc6a   :  { %v1140_v24 = vmul.f32 %v2364_v23, %v1123_v44  ;;  %vm1145_vm5 = vweird.f32 %v2364_v23 }
 0xc6b   :  { %vm1146_vm7 = vmor %vm1144_vm6, %vm1145_vm5 }
 0xc6c   :  { %v1141_v46 = vsub.f32 1.0, %v1140_v24 }
 0xc6e   :  { %v1142_v25 = vmul.f32 %v2364_v23, %v1141_v46 }
 0xc70   :  { %v1143_v31 = vadd.f32 %v2364_v23, %v1142_v25 }
 0xc72   :  { %v1147_v13 = vsel %vm1146_vm7, %v2364_v23, %v1143_v31 }
 0xc73   :  { %v1152_v35 = vsel %vm1149_vm8, %v1151_v33, %v1147_v13 }
 0xccb   :  { %v1179_v29 = vpop.permute.xlu1 %1178 }
 0xccc   :  { %1181 = vst.msk [vmem:[#allocation4] sm:$0xff] %vm239_vm0, %v1179_v29 }
 0xcd2   :  { %v1174_v3 = vpop.permute.xlu0 %1173 }
 0xcd3   :  { %v1176_v37 = vmul.f32 %v1174_v3, %v1152_v35  ;;  %v1260_v20 = vld [vmem:[#allocation4] sm:$0xff] }
 0xcd4   :  { %1262 = vrot.lane.b32.xlu0 %v1260_v20, %s2542_s4  ;;  %v484_v20 = vadd.f32 %v2915_v55, %v2857_v28 }
 0xcd5   :  { %1182 = vst.msk [vmem:[#allocation3] sm:$0xff] %vm239_vm0, %v1176_v37 }
 0xcd6   :  { %1184 = vst.msk [vmem:[#allocation5 + $0x28] sm:$0xff] %vm239_vm0, %v1176_v37 }
 0xcdc   :  { %v1188_v38 = vld [vmem:[#allocation3] sm:$0xff] }
 0xcdd   :  { %v1189_v39 = vpack.c.bf16 %v1188_v38, %v1188_v38 }
 0xcdf   :  { %2220 = vmatmul.msk.bf16.vlgmr.msrb.gmra.mxu0 %vm239_vm0, %v1189_v39  ;;  %2221 = vmatmul.msk.bf16.vlgmr.msrb.gmra.mxu1 %vm239_vm0, %v1189_v39 }
 0xd46   :  { %v1263_v14 = vpop.permute.xlu0 %1262 }
 0xd5c   :  { %v1202_v42 = vpop.f32.mrf.mxu0  ;;  %v1215_v43 = vpop.f32.mrf.mxu1 }
 0xd5d   :  { %v1219_v57 = vadd.f32 %v1202_v42, %v482_v40  ;;  %v1220_v58 = vadd.f32 %v1215_v43, %v511_v41 }
 0xd5f   :  { %2365 = vtanh.f32 %v1220_v58  ;;  %v2222_v62 = vmul.f32 -1.442695, %v1219_v57  ;;  %v2223_v21 = vmul.f32 -1.442695, %v1220_v58 }
 0xd61   :  { %2367 = vpow2.f32 %v2222_v62 }
 0xd64   :  { %v1204_v59 = vpop.f32.mrf.mxu0  ;;  %v1217_v60 = vpop.f32.mrf.mxu1 }
 0xd65   :  { %v2366_v61 = vpop.eup %2365 }
 0xd66   :  { %1267 = vrot.lane.b32.xlu2 %v2366_v61, %s2542_s4 }
 0xd67   :  { %v2368_v63 = vpop.eup %2367 }
 0xd68   :  { %v1227_v1 = vadd.f32 1.0, %v2368_v63  ;;  %v1400_v63 = vld [vmem:[#allocation5 + $0x28] sm:$0xff] }
 0xd6a   :  { %2369 = vrcp.f32 %v1227_v1  ;;  %v1240_v8 = vand.u32 2147483648, %v1227_v1  ;;  %vm1234_vm10 = vweird.f32 %v1227_v1  ;;  %v1238_v10 = vand.u32 2147483647, %v1227_v1 }
 0xd6c   :  { %v1241_v15 = vor.u32 1.1754944e-38, %v1240_v8  ;;  %vm1239_vm12 = vcmp.eq.f32.partialorder %v1238_v10, 8.507059e+37  ;;  %v1398_v10 = vld [vmem:[#allocation5 + $0x18] sm:$0xff] }
 0xd70   :  { %v2370_v7 = vpop.eup %2369 }
 0xd71   :  { %v1230_v53 = vmul.f32 %v2370_v7, %v1227_v1  ;;  %vm1235_vm9 = vweird.f32 %v2370_v7  ;;  %v1399_v1 = vld [vmem:[#allocation5 + $0x20] sm:$0xff] }
 0xd72   :  { %vm1236_vm11 = vmor %vm1234_vm10, %vm1235_vm9 }
 0xd73   :  { %v1231_v2 = vsub.f32 1.0, %v1230_v53 }
 0xd75   :  { %v1232_v4 = vmul.f32 %v2370_v7, %v1231_v2 }
 0xd77   :  { %v1233_v54 = vadd.f32 %v2370_v7, %v1232_v4 }
 0xd79   :  { %v1237_v12 = vsel %vm1236_vm11, %v2370_v7, %v1233_v54  ;;  %v3023_v7 = vpack.c.bf16 %v1400_v63, %v1399_v1 }
 0xd7a   :  { %v1242_v17 = vsel %vm1239_vm12, %v1241_v15, %v1237_v12  ;;  %v1397_v12 = vld [vmem:[#allocation5 + $0x10] sm:$0xff] }
 0xd7b   :  { %v1265_v6 = vmul.f32 %v1263_v14, %v1242_v17  ;;  %v1404_v15 = vpack.c.bf16 %v1398_v10, %v1397_v12 }
 0xdc0   :  { %v1268_v0 = vpop.permute.xlu2 %1267 }
 0xdc1   :  { %v1270_v52 = vmul.f32 %v1268_v0, %v1242_v17 }
 0xdc3   :  { %1272 = vrot.lane.b32.xlu1 %v1270_v52, %s2542_s4 }
 0xe35   :  { %v1273_v5 = vpop.permute.xlu1 %1272 }
 0xe36   :  { %v1275_v30 = vadd.f32 %v1273_v5, %v1265_v6 }
 0xe38   :  { %2371 = vtanh.f32 %v1275_v30  ;;  %1283 = vrot.lane.b32.xlu0 %v1275_v30, %s2542_s4 }
 0xe39   :  { %2373 = vpow2.f32 %v2223_v21 }
 0xe3e   :  { %v2372_v9 = vpop.eup %2371 }
 0xe3f   :  { %1278 = vrot.lane.b32.xlu2 %v2372_v9, %s2542_s4  ;;  %v2374_v49 = vpop.eup %2373 }
 0xe40   :  { %v1228_v51 = vadd.f32 1.0, %v2374_v49 }
 0xe42   :  { %2375 = vrcp.f32 %v1228_v51  ;;  %v1255_v47 = vand.u32 2147483648, %v1228_v51  ;;  %vm1249_vm15 = vweird.f32 %v1228_v51  ;;  %v1253_v19 = vand.u32 2147483647, %v1228_v51 }
 0xe44   :  { %v1256_v48 = vor.u32 1.1754944e-38, %v1255_v47  ;;  %vm1254_vm2 = vcmp.eq.f32.partialorder %v1253_v19, 8.507059e+37 }
 0xe48   :  { %v2376_v36 = vpop.eup %2375 }
 0xe49   :  { %v1245_v34 = vmul.f32 %v2376_v36, %v1228_v51  ;;  %vm1250_vm14 = vweird.f32 %v2376_v36 }
 0xe4a   :  { %vm1251_vm1 = vmor %vm1249_vm15, %vm1250_vm14 }
 0xe4b   :  { %v1246_v50 = vsub.f32 1.0, %v1245_v34 }
 0xe4d   :  { %v1247_v45 = vmul.f32 %v2376_v36, %v1246_v50 }
 0xe4f   :  { %v1248_v18 = vadd.f32 %v2376_v36, %v1247_v45 }
 0xe51   :  { %v1252_v22 = vsel %vm1251_vm1, %v2376_v36, %v1248_v18 }
 0xe52   :  { %v1257_v44 = vsel %vm1254_vm2, %v1256_v48, %v1252_v22  ;;  %v1396_v22 = vld [vmem:[#allocation5 + $0x8] sm:$0xff]  ;;  %v1395_v48 = vld [vmem:[#allocation5] sm:$0xff] }
 0xe99   :  { %v1279_v23 = vpop.permute.xlu2 %1278 }
 0xe9a   :  { %v1281_v24 = vmul.f32 %v1279_v23, %v1257_v44  ;;  %v1403_v44 = vpack.c.bf16 %v1396_v22, %v1395_v48 }
 0xe9c   :  { %1287 = vst.msk [vmem:[#allocation3] sm:$0xff] %vm239_vm0, %v1281_v24 }
 0xe9d   :  { %1289 = vst.msk [vmem:[#allocation5 + $0x30] sm:$0xff] %vm239_vm0, %v1281_v24 }
 0xea3   :  { %v1293_v46 = vld [vmem:[#allocation3] sm:$0xff] }
 0xea4   :  { %v1294_v25 = vpack.c.bf16 %v1293_v46, %v1293_v46  ;;  %v1401_v18 = vld [vmem:[#allocation5 + $0x30] sm:$0xff] }
 0xea6   :  { %2224 = vmatmul.msk.bf16.vlgmr.msra.gmra.mxu2 %vm239_vm0, %v1294_v25  ;;  %2225 = vmatmul.msk.bf16.vlgmr.msrb.gmra.mxu3 %vm239_vm0, %v1294_v25 }
 0xeaa   :  { %v1284_v29 = vpop.permute.xlu0 %1283 }
 0xeab   :  { %1286 = vst.msk [vmem:[#allocation4] sm:$0xff] %vm239_vm0, %v1284_v29 }
 0xeb2   :  { %v1365_v31 = vld [vmem:[#allocation4] sm:$0xff] }
 0xeb3   :  { %1367 = vrot.lane.b32.xlu2 %v1365_v31, %s2542_s4 }
 0xf0d   :  { %v1368_v53 = vpop.permute.xlu2 %1367 }
 0xf29   :  { %v1307_v11 = vpop.f32.mrf.mxu2  ;;  %v1320_v13 = vpop.f32.mrf.mxu3 }
 0xf2a   :  { %v1325_v33 = vadd.f32 %v1320_v13, %v513_v32  ;;  %v1324_v38 = vadd.f32 %v1307_v11, %v484_v20  ;;  %v1407_v13 = vld [vmem:[%s3368_s11] sm:$0xff] }
 0xf2c   :  { %2377 = vtanh.f32 %v1325_v33  ;;  %v2226_v39 = vmul.f32 -1.442695, %v1324_v38  ;;  %v2227_v0 = vmul.f32 -1.442695, %v1325_v33  ;;  %v1409_v38 = vld [vmem:[%s3368_s11 + $0x10] sm:$0xff] }
 0xf2e   :  { %2379 = vpow2.f32 %v2226_v39 }
 0xf31   :  { %v1309_v35 = vpop.f32.mrf.mxu2  ;;  %v1322_v3 = vpop.f32.mrf.mxu3 }
 0xf32   :  { %v2378_v37 = vpop.eup %2377  ;;  %v1408_v3 = vld [vmem:[%s3368_s11 + $0x8] sm:$0xff] }
 0xf33   :  { %1372 = vrot.lane.b32.xlu1 %v2378_v37, %s2542_s4 }
 0xf34   :  { %v2380_v40 = vpop.eup %2379 }
 0xf35   :  { %v1332_v41 = vadd.f32 1.0, %v2380_v40 }
 0xf37   :  { %2381 = vrcp.f32 %v1332_v41  ;;  %v1345_v58 = vand.u32 2147483648, %v1332_v41  ;;  %vm1339_vm4 = vweird.f32 %v1332_v41  ;;  %v1343_v59 = vand.u32 2147483647, %v1332_v41 }
 0xf39   :  { %v1346_v61 = vor.u32 1.1754944e-38, %v1345_v58  ;;  %vm1344_vm6 = vcmp.eq.f32.partialorder %v1343_v59, 8.507059e+37  ;;  %v1412_v58 = vld [vmem:[%s3368_s11 + $0x28] sm:$0xff] }
 0xf3d   :  { %v2382_v42 = vpop.eup %2381 }
 0xf3e   :  { %v1335_v16 = vmul.f32 %v2382_v42, %v1332_v41  ;;  %vm1340_vm3 = vweird.f32 %v2382_v42  ;;  %v1410_v41 = vld [vmem:[%s3368_s11 + $0x18] sm:$0xff] }
 0xf3f   :  { %vm1341_vm5 = vmor %vm1339_vm4, %vm1340_vm3 }
 0xf40   :  { %v1336_v56 = vsub.f32 1.0, %v1335_v16 }
 0xf42   :  { %v1337_v43 = vmul.f32 %v2382_v42, %v1336_v56  ;;  %v1411_v56 = vld [vmem:[%s3368_s11 + $0x20] sm:$0xff] }
 0xf44   :  { %v1338_v57 = vadd.f32 %v2382_v42, %v1337_v43 }
 0xf46   :  { %v1342_v60 = vsel %vm1341_vm5, %v2382_v42, %v1338_v57 }
 0xf47   :  { %v1347_v55 = vsel %vm1344_vm6, %v1346_v61, %v1342_v60  ;;  %v1413_v61 = vld [vmem:[%s3368_s11 + $0x30] sm:$0xff] }
 0xf48   :  { %v1370_v2 = vmul.f32 %v1368_v53, %v1347_v55 }
 0xfa5   :  { %v1373_v28 = vpop.permute.xlu1 %1372 }
 0xfa6   :  { %v1375_v62 = vmul.f32 %v1373_v28, %v1347_v55 }
 0xfa8   :  { %1377 = vrot.lane.b32.xlu0 %v1375_v62, %s2542_s4  ;;  %v1414_v62 = vld [vmem:[%s3368_s11 + $0x38] sm:$0xff] }
 0xfb0   :  { %1423 = vrot.lane.b32.xlu0 %v3023_v7, %s2543_s6 }
0x101a   :  { %v1378_v4 = vpop.permute.xlu0 %1377 }
0x101b   :  { %v3027_v54 = vadd.f32 %v1378_v4, %v1370_v2 }
0x101d   :  { %2383 = vtanh.f32 %v3027_v54 }
0x101e   :  { %2385 = vpow2.f32 %v2227_v0 }
0x1022   :  { %v1424_v46 = vpop.permute.xlu0 %1423 }
0x1023   :  { %v2384_v8 = vpop.eup %2383  ;;  %v1446_v29 = vsel %vm402_vm13, %v1424_v46, 0 }
0x1024   :  { %1383 = vrot.lane.b32.xlu1 %v2384_v8, %s2542_s4  ;;  %v2386_v17 = vpop.eup %2385 }
0x1025   :  { %v1333_v52 = vadd.f32 1.0, %v2386_v17 }
0x1027   :  { %2387 = vrcp.f32 %v1333_v52  ;;  %v1360_v21 = vand.u32 2147483648, %v1333_v52  ;;  %vm1354_vm8 = vweird.f32 %v1333_v52  ;;  %v1358_v49 = vand.u32 2147483647, %v1333_v52 }
0x1029   :  { %v1361_v36 = vor.u32 1.1754944e-38, %v1360_v21  ;;  %vm1359_vm10 = vcmp.eq.f32.partialorder %v1358_v49, 8.507059e+37 }
0x102c   :  { %1421 = vrot.lane.b32.xlu1 %v1404_v15, %s2543_s6 }
0x102d   :  { %v2388_v14 = vpop.eup %2387 }
0x102e   :  { %v1350_v6 = vmul.f32 %v2388_v14, %v1333_v52  ;;  %vm1355_vm7 = vweird.f32 %v2388_v14 }
0x102f   :  { %vm1356_vm9 = vmor %vm1354_vm8, %vm1355_vm7 }
0x1030   :  { %v1351_v5 = vsub.f32 1.0, %v1350_v6 }
0x1032   :  { %v1352_v30 = vmul.f32 %v2388_v14, %v1351_v5 }
0x1034   :  { %v1353_v9 = vadd.f32 %v2388_v14, %v1352_v30 }
0x1036   :  { %v1357_v51 = vsel %vm1356_vm9, %v2388_v14, %v1353_v9 }
0x1037   :  { %v1362_v34 = vsel %vm1359_vm10, %v1361_v36, %v1357_v51 }
0x1096   :  { %v1384_v50 = vpop.permute.xlu1 %1383 }
0x1097   :  { %v1386_v45 = vmul.f32 %v1384_v50, %v1362_v34 }
0x1099   :  { %1392 = vst.msk [vmem:[#allocation3] sm:$0xff] %vm239_vm0, %v1386_v45 }
0x109a   :  { %1394 = vst.msk [vmem:[#allocation5 + $0x38] sm:$0xff] %vm239_vm0, %v1386_v45 }
0x109e   :  { %v1422_v25 = vpop.permute.xlu1 %1421 }
0x109f   :  { %v1443_v32 = vsel %vm402_vm13, %v1422_v25, 0 }
0x10a1   :  { %v1402_v47 = vld [vmem:[#allocation5 + $0x38] sm:$0xff] }
0x10a2   :  { %v1406_v19 = vpack.c.bf16 %v1402_v47, %v1401_v18 }
0x10a4   :  { %1425 = vrot.lane.b32.xlu2 %v1406_v19, %s2543_s6  ;;  %1965 = vmatpush.bf16.msrb.mxu2 %v1406_v19 }
0x10a8   :  { %1966 = vmatpush.bf16.msrb.mxu2 %v3023_v7 }
0x10ac   :  { %1419 = vrot.lane.b32.xlu2 %v1403_v44, %s2543_s6  ;;  %1967 = vmatpush.bf16.msrb.mxu2 %v1404_v15 }
0x10b0   :  { %1968 = vmatpush.bf16.msrb.mxu2 %v1403_v44 }
0x10fe   :  { %v1426_v23 = vpop.permute.xlu2 %1425 }
0x10ff   :  { %v1449_v24 = vsel %vm402_vm13, %v1426_v23, 0  ;;  %1920 = vmatpush.bf16.msra.mxu1 %v1426_v23 }
0x1100   :  { %1455 = vmatpush.bf16.xpose.msra.mxu0 %v1449_v24 }
0x1103   :  { %1921 = vmatpush.bf16.msra.mxu1 %v1424_v46 }
0x1106   :  { %v1420_v31 = vpop.permute.xlu2 %1419 }
0x1107   :  { %1922 = vmatpush.bf16.msra.mxu1 %v1422_v25  ;;  %v1440_v11 = vsel %vm402_vm13, %v1420_v31, 0 }
0x1108   :  { %1456 = vmatpush.bf16.xpose.msra.mxu0 %v1446_v29 }
0x110b   :  { %1923 = vmatpush.bf16.msra.mxu1 %v1420_v31 }
0x1110   :  { %1457 = vmatpush.bf16.xpose.msra.mxu0 %v1443_v32 }
0x1118   :  { %1458 = vmatpush.bf16.xpose.msra.mxu0 %v1440_v11 }
0x111f   :  { %2228 = vmatmul.msk.bf16.vlgmr.msra.gmra.mxu0 %vm402_vm13, %v1403_v44 }
0x112f   :  { %2229 = vmatmul.msk.bf16.gmra.mxu0 %vm402_vm13, %v1404_v15 }
0x113f   :  { %2230 = vmatmul.msk.bf16.gmra.mxu0 %vm402_vm13, %v3023_v7 }
0x114f   :  { %2231 = vmatmul.msk.bf16.gmra.mxu0 %vm402_vm13, %v1406_v19 }
0x119c   :  { %v1460_v33 = vpop.f32.mrf.mxu0 }
0x119d   :  { %v3049_v35 = vadd.f32 %v1460_v33, %v1407_v13 }
0x119f   :  { %1672 = vxpose.xlu0.b32.start [1/8] (short) (narrow) %v3049_v35, 64  ;;  %v1480_v0 = vsel %vm239_vm0, %v3049_v35, -inf }
0x11a4   :  { %v1462_v37 = vpop.f32.mrf.mxu0 }
0x11a5   :  { %v3055_v20 = vadd.f32 %v1462_v37, %v1408_v3 }
0x11a7   :  { %1673 = vxpose.xlu0.b32.cont [2/8] (short) (narrow) %v3055_v20, 64  ;;  %v1483_v9 = vsel %vm239_vm0, %v3055_v20, -inf }
0x11ac   :  { %v1465_v39 = vpop.f32.mrf.mxu0 }
0x11ad   :  { %v3061_v40 = vadd.f32 %v1465_v39, %v1409_v38 }
0x11af   :  { %1674 = vxpose.xlu0.b32.cont [3/8] (short) (narrow) %v3061_v40, 64  ;;  %v1486_v5 = vsel %vm239_vm0, %v3061_v40, -inf }
0x11b4   :  { %v1467_v42 = vpop.f32.mrf.mxu0 }
0x11b5   :  { %v3067_v16 = vadd.f32 %v1467_v42, %v1410_v41 }
0x11b7   :  { %1675 = vxpose.xlu0.b32.cont [4/8] (short) (narrow) %v3067_v16, 64  ;;  %v1489_v13 = vsel %vm239_vm0, %v3067_v16, -inf }
0x11bc   :  { %v1470_v43 = vpop.f32.mrf.mxu0 }
0x11bd   :  { %v3073_v57 = vadd.f32 %v1470_v43, %v1411_v56 }
0x11bf   :  { %1676 = vxpose.xlu0.b32.cont [5/8] (short) (narrow) %v3073_v57, 64  ;;  %v1492_v41 = vsel %vm239_vm0, %v3073_v57, -inf }
0x11c4   :  { %v1472_v59 = vpop.f32.mrf.mxu0 }
0x11c5   :  { %v3079_v60 = vadd.f32 %v1472_v59, %v1412_v58 }
0x11c7   :  { %1677 = vxpose.xlu0.b32.cont [6/8] (short) (narrow) %v3079_v60, 64  ;;  %v1495_v42 = vsel %vm239_vm0, %v3079_v60, -inf }
0x11cc   :  { %v1475_v28 = vpop.f32.mrf.mxu0 }
0x11cd   :  { %v3085_v55 = vadd.f32 %v1475_v28, %v1413_v61 }
0x11cf   :  { %1678 = vxpose.xlu0.b32.cont [7/8] (short) (narrow) %v3085_v55, 64 }
0x11d4   :  { %v1477_v63 = vpop.f32.mrf.mxu0 }
0x11d5   :  { %v3091_v1 = vadd.f32 %v1477_v63, %v1414_v62  ;;  %v1498_v62 = vsel %vm239_vm0, %v3085_v55, -inf }
0x11d7   :  { %1679 = vxpose.xlu0.b32.end [8/8] (short) (narrow) %v3091_v1, 64  ;;  %v1501_v63 = vsel %vm239_vm0, %v3091_v1, -inf }
0x1243   :  { %v1688_v7 = vpop.trf.xlu0 }
0x1244   :  { %v1704_v53 = vsel %vm239_vm0, %v1688_v7, -inf }
0x1245   :  { %1705 = vmax.xlane.f32.xlu1 %v1704_v53 }
0x124b   :  { %v1689_v2 = vpop.trf.xlu0 }
0x124c   :  { %v1707_v4 = vsel %vm239_vm0, %v1689_v2, -inf }
0x124d   :  { %1708 = vmax.xlane.f32.xlu2 %v1707_v4 }
0x1253   :  { %v1690_v8 = vpop.trf.xlu0 }
0x1254   :  { %v1710_v10 = vsel %vm239_vm0, %v1690_v8, -inf }
0x1255   :  { %1711 = vmax.xlane.f32.xlu2 %v1710_v10 }
0x125b   :  { %v1691_v12 = vpop.trf.xlu0 }
0x125c   :  { %v1713_v15 = vsel %vm239_vm0, %v1691_v12, -inf }
0x125d   :  { %1714 = vmax.xlane.f32.xlu1 %v1713_v15  ;;  %1481 = vmax.xlane.f32.xlu2 %v1480_v0 }
0x1263   :  { %v1692_v17 = vpop.trf.xlu0 }
0x1264   :  { %v1716_v52 = vsel %vm239_vm0, %v1692_v17, -inf }
0x1265   :  { %1717 = vmax.xlane.f32.xlu2 %v1716_v52 }
0x126b   :  { %v1693_v14 = vpop.trf.xlu0 }
0x126c   :  { %v1719_v6 = vsel %vm239_vm0, %v1693_v14, -inf }
0x126d   :  { %1720 = vmax.xlane.f32.xlu1 %v1719_v6  ;;  %1487 = vmax.xlane.f32.xlu2 %v1486_v5 }
0x1273   :  { %v3104_v30 = vpop.trf.xlu0 }
0x1274   :  { %v1722_v21 = vsel %vm239_vm0, %v3104_v30, -inf }
0x1275   :  { %1484 = vmax.xlane.f32.xlu1 %v1483_v9  ;;  %1723 = vmax.xlane.f32.xlu2 %v1722_v21 }
0x127b   :  { %v3110_v49 = vpop.trf.xlu0 }
0x127c   :  { %v1725_v51 = vsel %vm239_vm0, %v3110_v49, -inf }
0x127d   :  { %1726 = vmax.xlane.f32.xlu1 %v1725_v51 }
0x12b8   :  { %v1706_v36 = vpop.xlane.xlu1 %1705 }
0x12b9   :  { %v1728_v34 = vsub.f32 %v1688_v7, %v1706_v36 }
0x12bb   :  { %v1736_v50 = vmul.f32 1.442695, %v1728_v34 }
0x12bd   :  { %2389 = vpow2.f32 %v1736_v50 }
0x12c0   :  { %v1709_v45 = vpop.xlane.xlu2 %1708 }
0x12c1   :  { %v1729_v18 = vsub.f32 %v1689_v2, %v1709_v45 }
0x12c3   :  { %v3114_v47 = vpop.eup %2389  ;;  %v1738_v19 = vmul.f32 1.442695, %v1729_v18 }
0x12c4   :  { %v1752_v22 = vsel %vm239_vm0, %v3114_v47, 0.0 }
0x12c5   :  { %2391 = vpow2.f32 %v1738_v19  ;;  %1753 = vadd.xlane.f32.xlu2 %v1752_v22 }
0x12c8   :  { %v1712_v48 = vpop.xlane.xlu2 %1711 }
0x12c9   :  { %v1730_v44 = vsub.f32 %v1690_v8, %v1712_v48 }
0x12cb   :  { %v3118_v23 = vpop.eup %2391  ;;  %v1740_v24 = vmul.f32 1.442695, %v1730_v44 }
0x12cc   :  { %v1755_v46 = vsel %vm239_vm0, %v3118_v23, 0.0 }
0x12cd   :  { %2393 = vpow2.f32 %v1740_v24  ;;  %1756 = vadd.xlane.f32.xlu1 %v1755_v46 }
0x12d0   :  { %v1715_v25 = vpop.xlane.xlu1 %1714  ;;  %v1482_v29 = vpop.xlane.xlu2 %1481 }
0x12d1   :  { %v1731_v31 = vsub.f32 %v1691_v12, %v1715_v25  ;;  %v1504_v61 = vsub.f32 %v3049_v35, %v1482_v29 }
0x12d3   :  { %v3122_v32 = vpop.eup %2393  ;;  %v1742_v11 = vmul.f32 1.442695, %v1731_v31  ;;  %v1512_v7 = vmul.f32 1.442695, %v1504_v61 }
0x12d4   :  { %v1758_v33 = vsel %vm239_vm0, %v3122_v32, 0.0 }
0x12d5   :  { %2395 = vpow2.f32 %v1742_v11  ;;  %1490 = vmax.xlane.f32.xlu1 %v1489_v13  ;;  %1759 = vadd.xlane.f32.xlu2 %v1758_v33 }
0x12d8   :  { %v1718_v3 = vpop.xlane.xlu2 %1717 }
0x12d9   :  { %v1732_v38 = vsub.f32 %v1692_v17, %v1718_v3 }
0x12db   :  { %v3128_v37 = vpop.eup %2395  ;;  %v1744_v56 = vmul.f32 1.442695, %v1732_v38 }
0x12dc   :  { %v1761_v39 = vsel %vm239_vm0, %v3128_v37, 0.0 }
0x12dd   :  { %1762 = vadd.xlane.f32.xlu0 %v1761_v39  ;;  %1493 = vmax.xlane.f32.xlu1 %v1492_v41  ;;  %2397 = vpow2.f32 %v1744_v56 }
0x12de   :  { %1496 = vmax.xlane.f32.xlu2 %v1495_v42 }
0x12e0   :  { %v1721_v43 = vpop.xlane.xlu1 %1720  ;;  %v1488_v58 = vpop.xlane.xlu2 %1487 }
0x12e1   :  { %v1733_v59 = vsub.f32 %v1693_v14, %v1721_v43  ;;  %v1506_v5 = vsub.f32 %v3061_v40, %v1488_v58 }
0x12e3   :  { %v1746_v28 = vmul.f32 1.442695, %v1733_v59  ;;  %v3141_v4 = vpop.eup %2397  ;;  %v1516_v51 = vmul.f32 1.442695, %v1506_v5 }
0x12e4   :  { %v1764_v0 = vsel %vm239_vm0, %v3141_v4, 0.0 }
0x12e5   :  { %2399 = vpow2.f32 %v1746_v28  ;;  %1499 = vmax.xlane.f32.xlu1 %v1498_v62 }
0x12e6   :  { %1502 = vmax.xlane.f32.xlu2 %v1501_v63  ;;  %2401 = vpow2.f32 %v1512_v7 }
0x12e8   :  { %v1485_v53 = vpop.xlane.xlu1 %1484  ;;  %v1724_v2 = vpop.xlane.xlu2 %1723 }
0x12e9   :  { %v1505_v8 = vsub.f32 %v3055_v20, %v1485_v53  ;;  %v1734_v12 = vsub.f32 %v3104_v30, %v1724_v2 }
0x12eb   :  { %v3144_v10 = vpop.eup %2399  ;;  %v1514_v35 = vmul.f32 1.442695, %v1505_v8  ;;  %v1748_v17 = vmul.f32 1.442695, %v1734_v12 }
0x12ec   :  { %v1767_v15 = vsel %vm239_vm0, %v3144_v10, 0.0  ;;  %v3151_v14 = vpop.eup %2401 }
0x12ed   :  { %2403 = vpow2.f32 %v1514_v35  ;;  %1765 = vadd.xlane.f32.xlu1 %v1764_v0  ;;  %v1528_v21 = vsel %vm239_vm0, %v3151_v14, 0.0 }
0x12ee   :  { %1768 = vadd.xlane.f32.xlu2 %v1767_v15  ;;  %2405 = vpow2.f32 %v1748_v17 }
0x12f0   :  { %v1727_v52 = vpop.xlane.xlu1 %1726 }
0x12f1   :  { %v1735_v20 = vsub.f32 %v3110_v49, %v1727_v52 }
0x12f3   :  { %v3154_v6 = vpop.eup %2403  ;;  %v1750_v30 = vmul.f32 1.442695, %v1735_v20 }
0x12f4   :  { %v1531_v9 = vsel %vm239_vm0, %v3154_v6, 0.0  ;;  %v3161_v36 = vpop.eup %2405 }
0x12f5   :  { %2407 = vpow2.f32 %v1750_v30  ;;  %1529 = vadd.xlane.f32.xlu1 %v1528_v21  ;;  %v1770_v49 = vsel %vm239_vm0, %v3161_v36, 0.0 }
0x12f6   :  { %1532 = vadd.xlane.f32.xlu2 %v1531_v9  ;;  %2409 = vpow2.f32 %v1516_v51 }
0x12fb   :  { %v3163_v34 = vpop.eup %2407 }
0x12fc   :  { %v1773_v40 = vsel %vm239_vm0, %v3163_v34, 0.0  ;;  %v3169_v50 = vpop.eup %2409 }
0x12fd   :  { %1771 = vadd.xlane.f32.xlu1 %v1770_v49  ;;  %v1534_v45 = vsel %vm239_vm0, %v3169_v50, 0.0 }
0x12fe   :  { %1774 = vadd.xlane.f32.xlu2 %v1773_v40 }
0x1305   :  { %1535 = vadd.xlane.f32.xlu1 %v1534_v45 }
0x1338   :  { %v1754_v18 = vpop.xlane.xlu2 %1753 }
0x1339   :  { %2411 = vrcp.f32 %v1754_v18  ;;  %v1787_v33 = vand.u32 2147483648, %v1754_v18  ;;  %vm1781_vm12 = vweird.f32 %v1754_v18  ;;  %v1785_v38 = vand.u32 2147483647, %v1754_v18 }
0x133b   :  { %v1788_v58 = vor.u32 1.1754944e-38, %v1787_v33  ;;  %vm1786_vm2 = vcmp.eq.f32.partialorder %v1785_v38, 8.507059e+37 }
0x133f   :  { %v2412_v19 = vpop.eup %2411 }
0x1340   :  { %v1777_v22 = vmul.f32 %v2412_v19, %v1754_v18  ;;  %v1757_v48 = vpop.xlane.xlu1 %1756  ;;  %vm1782_vm11 = vweird.f32 %v2412_v19 }
0x1341   :  { %2413 = vrcp.f32 %v1757_v48  ;;  %v1802_v39 = vand.u32 2147483648, %v1757_v48  ;;  %vm1783_vm14 = vmor %vm1781_vm12, %vm1782_vm11  ;;  %v1800_v56 = vand.u32 2147483647, %v1757_v48  ;;  %vm1796_vm1 = vweird.f32 %v1757_v48 }
0x1342   :  { %v1778_v44 = vsub.f32 1.0, %v1777_v22 }
0x1343   :  { %vm1801_vm4 = vcmp.eq.f32.partialorder %v1800_v56, 8.507059e+37 }
0x1344   :  { %v1779_v24 = vmul.f32 %v2412_v19, %v1778_v44 }
0x1346   :  { %v1780_v11 = vadd.f32 %v2412_v19, %v1779_v24 }
0x1347   :  { %v2414_v46 = vpop.eup %2413 }
0x1348   :  { %v1792_v25 = vmul.f32 %v2414_v46, %v1757_v48  ;;  %v1491_v29 = vpop.xlane.xlu1 %1490  ;;  %v3173_v31 = vpop.xlane.xlu2 %1759  ;;  %vm1797_vm15 = vweird.f32 %v2414_v46  ;;  %v1784_v43 = vsel %vm1783_vm14, %v2412_v19, %v1780_v11 }
0x1349   :  { %v1507_v13 = vsub.f32 %v3067_v16, %v1491_v29  ;;  %2415 = vrcp.f32 %v3173_v31  ;;  %vm1798_vm3 = vmor %vm1796_vm1, %vm1797_vm15  ;;  %v1803_v16 = vor.u32 1.1754944e-38, %v1802_v39  ;;  %v1789_v28 = vsel %vm1786_vm2, %v1788_v58, %v1784_v43 }
0x134a   :  { %v1793_v3 = vsub.f32 1.0, %v1792_v25  ;;  %v1790_v17 = vmul.f32 %v3114_v47, %v1789_v28  ;;  %vm1811_vm6 = vweird.f32 %v3173_v31  ;;  %v1815_v19 = vand.u32 2147483647, %v3173_v31 }
0x134b   :  { %v1518_v41 = vmul.f32 1.442695, %v1507_v13  ;;  %v1817_v22 = vand.u32 2147483648, %v3173_v31 }
0x134c   :  { %v1794_v42 = vmul.f32 %v2414_v46, %v1793_v3  ;;  %vm1816_vm11 = vcmp.eq.f32.partialorder %v1815_v19, 8.507059e+37 }
0x134d   :  { %2417 = vpow2.f32 %v1518_v41  ;;  %v1818_v33 = vor.u32 1.1754944e-38, %v1817_v22 }
0x134e   :  { %v1795_v59 = vadd.f32 %v2414_v46, %v1794_v42 }
0x134f   :  { %v3177_v61 = vpop.eup %2415 }
0x1350   :  { %v1799_v62 = vsel %vm1798_vm3, %v2414_v46, %v1795_v59  ;;  %v1807_v63 = vmul.f32 %v3177_v61, %v3173_v31  ;;  %v1494_v7 = vpop.xlane.xlu1 %1493  ;;  %v1763_v53 = vpop.xlane.xlu0 %1762  ;;  %vm1812_vm5 = vweird.f32 %v3177_v61 }
0x1351   :  { %v1804_v2 = vsel %vm1801_vm4, %v1803_v16, %v1799_v62  ;;  %v1508_v8 = vsub.f32 %v3073_v57, %v1494_v7  ;;  %2419 = vrcp.f32 %v1763_v53  ;;  %v1497_v35 = vpop.xlane.xlu2 %1496  ;;  %vm3204_vm8 = vmor %vm1811_vm6, %vm1812_vm5  ;;  %vm1826_vm9 = vweird.f32 %v1763_v53 }
0x1352   :  { %v1805_v12 = vmul.f32 %v3118_v23, %v1804_v2  ;;  %v1808_v15 = vsub.f32 1.0, %v1807_v63  ;;  %v1509_v20 = vsub.f32 %v3079_v60, %v1497_v35  ;;  %v1832_v29 = vand.u32 2147483648, %v1763_v53 }
0x1353   :  { %v3183_v0 = vpop.eup %2417  ;;  %v1520_v52 = vmul.f32 1.442695, %v1508_v8 }
0x1354   :  { %v1537_v5 = vsel %vm239_vm0, %v3183_v0, 0.0  ;;  %v1522_v30 = vmul.f32 1.442695, %v1509_v20  ;;  %v1945_v9 = vpack.c.bf16 %v1805_v12, %v1790_v17  ;;  %v1809_v57 = vmul.f32 %v3177_v61, %v1808_v15 }
0x1355   :  { %2421 = vpow2.f32 %v1520_v52  ;;  %1538 = vadd.xlane.f32.xlu2 %v1537_v5  ;;  %v1833_v39 = vor.u32 1.1754944e-38, %v1832_v29 }
0x1356   :  { %2423 = vpow2.f32 %v1522_v30  ;;  %2236 = vmatmul.msk.bf16.vlgmr.msrb.gmra.mxu2 %vm239_vm0, %v1945_v9  ;;  %v1810_v60 = vadd.f32 %v3177_v61, %v1809_v57 }
0x1357   :  { %v2420_v21 = vpop.eup %2419 }
0x1358   :  { %v1822_v23 = vmul.f32 %v2420_v21, %v1763_v53  ;;  %v1500_v51 = vpop.xlane.xlu1 %1499  ;;  %vm1827_vm7 = vweird.f32 %v2420_v21  ;;  %v1814_v13 = vsel %vm3204_vm8, %v3177_v61, %v1810_v60 }
0x1359   :  { %v1510_v47 = vsub.f32 %v3085_v55, %v1500_v51  ;;  %v1503_v40 = vpop.xlane.xlu2 %1502  ;;  %vm1828_vm10 = vmor %vm1826_vm9, %vm1827_vm7  ;;  %v1819_v42 = vsel %vm1816_vm11, %v1818_v33, %v1814_v13 }
0x135a   :  { %v1823_v49 = vsub.f32 1.0, %v1822_v23  ;;  %v1511_v45 = vsub.f32 %v3091_v1, %v1503_v40  ;;  %v1830_v1 = vand.u32 2147483647, %v1763_v53  ;;  %v1820_v61 = vmul.f32 %v3122_v32, %v1819_v42 }
0x135b   :  { %v3195_v18 = vpop.eup %2421  ;;  %v1524_v48 = vmul.f32 1.442695, %v1510_v47 }
0x135c   :  { %v1824_v44 = vmul.f32 %v2420_v21, %v1823_v49  ;;  %v1526_v55 = vmul.f32 1.442695, %v1511_v45  ;;  %v1540_v24 = vsel %vm239_vm0, %v3195_v18, 0.0  ;;  %v3202_v46 = vpop.eup %2423  ;;  %vm1831_vm12 = vcmp.eq.f32.partialorder %v1830_v1, 8.507059e+37 }
0x135d   :  { %2425 = vpow2.f32 %v1524_v48  ;;  %1541 = vadd.xlane.f32.xlu1 %v1540_v24  ;;  %v1543_v31 = vsel %vm239_vm0, %v3202_v46, 0.0 }
0x135e   :  { %v1825_v11 = vadd.f32 %v2420_v21, %v1824_v44  ;;  %2427 = vpow2.f32 %v1526_v55  ;;  %1544 = vadd.xlane.f32.xlu2 %v1543_v31 }
0x1360   :  { %v1766_v3 = vpop.xlane.xlu1 %1765  ;;  %v1829_v38 = vsel %vm1828_vm10, %v2420_v21, %v1825_v11 }
0x1361   :  { %2429 = vrcp.f32 %v1766_v3  ;;  %v1769_v41 = vpop.xlane.xlu2 %1768  ;;  %v1834_v43 = vsel %vm1831_vm12, %v1833_v39, %v1829_v38  ;;  %v1847_v17 = vand.u32 2147483648, %v1766_v3  ;;  %vm1841_vm15 = vweird.f32 %v1766_v3 }
0x1362   :  { %2431 = vrcp.f32 %v1769_v41  ;;  %v1835_v16 = vmul.f32 %v3128_v37, %v1834_v43  ;;  %v1845_v37 = vand.u32 2147483647, %v1766_v3  ;;  %v1860_v52 = vand.u32 2147483647, %v1769_v41 }
0x1363   :  { %v3214_v56 = vpop.eup %2425  ;;  %v1862_v9 = vand.u32 2147483648, %v1769_v41  ;;  %v1848_v51 = vor.u32 1.1754944e-38, %v1847_v17  ;;  %vm1856_vm3 = vweird.f32 %v1769_v41 }
0x1364   :  { %v3216_v58 = vpop.eup %2427  ;;  %v1546_v59 = vsel %vm239_vm0, %v3214_v56, 0.0  ;;  %v1946_v62 = vpack.c.bf16 %v1835_v16, %v1820_v61  ;;  %vm3229_vm2 = vcmp.eq.f32.partialorder %v1845_v37, 8.507059e+37  ;;  %vm3235_vm4 = vcmp.eq.f32.partialorder %v1860_v52, 8.507059e+37 }
0x1365   :  { %1547 = vadd.xlane.f32.xlu1 %v1546_v59  ;;  %v1549_v28 = vsel %vm239_vm0, %v3216_v58, 0.0  ;;  %v1863_v44 = vor.u32 1.1754944e-38, %v1862_v9 }
0x1366   :  { %1550 = vadd.xlane.f32.xlu2 %v1549_v28  ;;  %2237 = vmatmul.msk.bf16.gmra.mxu2 %vm239_vm0, %v1946_v62 }
0x1367   :  { %v2430_v63 = vpop.eup %2429 }
0x1368   :  { %v2432_v7 = vpop.eup %2431  ;;  %v1837_v53 = vmul.f32 %v2430_v63, %v1766_v3  ;;  %v1530_v2 = vpop.xlane.xlu1 %1529  ;;  %vm1842_vm14 = vweird.f32 %v2430_v63 }
0x1369   :  { %v1852_v8 = vmul.f32 %v2432_v7, %v1769_v41  ;;  %2433 = vrcp.f32 %v1530_v2  ;;  %v1533_v35 = vpop.xlane.xlu2 %1532  ;;  %vm3225_vm1 = vmor %vm1841_vm15, %vm1842_vm14  ;;  %vm1857_vm5 = vweird.f32 %v2432_v7  ;;  %v1561_v55 = vand.u32 2147483647, %v1530_v2 }
0x136a   :  { %v1838_v12 = vsub.f32 1.0, %v1837_v53  ;;  %2435 = vrcp.f32 %v1533_v35  ;;  %v1563_v24 = vand.u32 2147483648, %v1530_v2  ;;  %v1578_v29 = vand.u32 2147483648, %v1533_v35  ;;  %vm1858_vm7 = vmor %vm1856_vm3, %vm1857_vm5 }
0x136b   :  { %v1853_v32 = vsub.f32 1.0, %v1852_v8  ;;  %vm1557_vm8 = vweird.f32 %v1530_v2  ;;  %v1576_v13 = vand.u32 2147483647, %v1533_v35  ;;  %vm1572_vm10 = vweird.f32 %v1533_v35 }
0x136c   :  { %v1839_v15 = vmul.f32 %v2430_v63, %v1838_v12  ;;  %vm1562_vm12 = vcmp.eq.f32.partialorder %v1561_v55, 8.507059e+37  ;;  %v1564_v42 = vor.u32 1.1754944e-38, %v1563_v24  ;;  %v1579_v16 = vor.u32 1.1754944e-38, %v1578_v29 }
0x136d   :  { %v1854_v5 = vmul.f32 %v2432_v7, %v1853_v32  ;;  %vm1577_vm15 = vcmp.eq.f32.partialorder %v1576_v13, 8.507059e+37 }
0x136e   :  { %v1840_v20 = vadd.f32 %v2430_v63, %v1839_v15 }
0x136f   :  { %v2434_v30 = vpop.eup %2433  ;;  %v1855_v22 = vadd.f32 %v2432_v7, %v1854_v5 }
0x1370   :  { %v2436_v57 = vpop.eup %2435  ;;  %v1553_v47 = vmul.f32 %v2434_v30, %v1530_v2  ;;  %v3233_v40 = vpop.xlane.xlu1 %1771  ;;  %v1844_v19 = vsel %vm3225_vm1, %v2430_v63, %v1840_v20  ;;  %vm1558_vm6 = vweird.f32 %v2434_v30 }
0x1371   :  { %v1568_v49 = vmul.f32 %v2436_v57, %v1533_v35  ;;  %2437 = vrcp.f32 %v3233_v40  ;;  %v3240_v45 = vpop.xlane.xlu2 %1774  ;;  %v1849_v11 = vsel %vm3229_vm2, %v1848_v51, %v1844_v19  ;;  %vm1573_vm9 = vweird.f32 %v2436_v57  ;;  %vm1559_vm11 = vmor %vm1557_vm8, %vm1558_vm6 }
0x1372   :  { %v1554_v48 = vsub.f32 1.0, %v1553_v47  ;;  %2439 = vrcp.f32 %v3240_v45  ;;  %v1850_v3 = vmul.f32 %v3141_v4, %v1849_v11  ;;  %v1859_v38 = vsel %vm1858_vm7, %v2432_v7, %v1855_v22  ;;  %vm1574_vm14 = vmor %vm1572_vm10, %vm1573_vm9 }
0x1373   :  { %v1569_v25 = vsub.f32 1.0, %v1568_v49  ;;  %v1864_v59 = vsel %vm3235_vm4, %v1863_v44, %v1859_v38  ;;  %v1877_v32 = vand.u32 2147483648, %v3233_v40  ;;  %v1875_v17 = vand.u32 2147483647, %v3233_v40 }
0x1374   :  { %v1555_v1 = vmul.f32 %v2434_v30, %v1554_v48  ;;  %v1865_v62 = vmul.f32 %v3144_v10, %v1864_v59  ;;  %v1892_v10 = vand.u32 2147483648, %v3240_v45  ;;  %vm1871_vm3 = vweird.f32 %v3233_v40 }
0x1375   :  { %v1570_v31 = vmul.f32 %v2436_v57, %v1569_v25  ;;  %vm1886_vm5 = vweird.f32 %v3240_v45  ;;  %vm1876_vm6 = vcmp.eq.f32.partialorder %v1875_v17, 8.507059e+37 }
0x1376   :  { %v1556_v33 = vadd.f32 %v2434_v30, %v1555_v1  ;;  %v1947_v35 = vpack.c.bf16 %v1865_v62, %v1850_v3  ;;  %v1893_v9 = vor.u32 1.1754944e-38, %v1892_v10 }
0x1377   :  { %v2438_v39 = vpop.eup %2437  ;;  %v1571_v43 = vadd.f32 %v2436_v57, %v1570_v31 }
0x1378   :  { %v2440_v61 = vpop.eup %2439  ;;  %v1560_v41 = vsel %vm1559_vm11, %v2434_v30, %v1556_v33  ;;  %v1867_v28 = vmul.f32 %v2438_v39, %v3233_v40  ;;  %vm1872_vm1 = vweird.f32 %v2438_v39  ;;  %2238 = vmatmul.msk.bf16.gmra.mxu2 %vm239_vm0, %v1947_v35  ;;  %v1536_v49 = vpop.xlane.xlu1 %1535 }
0x1379   :  { %v1565_v63 = vsel %vm1562_vm12, %v1564_v42, %v1560_v41  ;;  %v1575_v53 = vsel %vm1574_vm14, %v2436_v57, %v1571_v43  ;;  %v1882_v4 = vmul.f32 %v2440_v61, %v3240_v45  ;;  %vm1887_vm2 = vweird.f32 %v2440_v61  ;;  %vm1873_vm4 = vmor %vm1871_vm3, %vm1872_vm1 }
0x137a   :  { %v1566_v7 = vmul.f32 %v3151_v14, %v1565_v63  ;;  %v1580_v2 = vsel %vm1577_vm15, %v1579_v16, %v1575_v53  ;;  %v1868_v8 = vsub.f32 1.0, %v1867_v28  ;;  %v1890_v14 = vand.u32 2147483647, %v3240_v45  ;;  %vm1888_vm7 = vmor %vm1886_vm5, %vm1887_vm2 }
0x137b   :  { %v1581_v12 = vmul.f32 %v3154_v6, %v1580_v2  ;;  %v1883_v15 = vsub.f32 1.0, %v1882_v4  ;;  %v1878_v6 = vor.u32 1.1754944e-38, %v1877_v32  ;;  %2441 = vrcp.f32 %v1536_v49 }
0x137c   :  { %v1869_v37 = vmul.f32 %v2438_v39, %v1868_v8  ;;  %vm1891_vm8 = vcmp.eq.f32.partialorder %v1890_v14, 8.507059e+37  ;;  %v1593_v29 = vand.u32 2147483648, %v1536_v49  ;;  %vm1587_vm11 = vweird.f32 %v1536_v49 }
0x137d   :  { %v1884_v52 = vmul.f32 %v2440_v61, %v1883_v15  ;;  %v1896_v20 = vpack.c.bf16 %v1581_v12, %v1566_v7  ;;  %v1591_v13 = vand.u32 2147483647, %v1536_v49 }
0x137e   :  { %v1870_v5 = vadd.f32 %v2438_v39, %v1869_v37  ;;  %v1594_v59 = vor.u32 1.1754944e-38, %v1593_v29 }
0x137f   :  { %v1885_v30 = vadd.f32 %v2440_v61, %v1884_v52  ;;  %2232 = vmatmul.msk.bf16.vlgmr.msra.gmra.mxu1 %vm239_vm0, %v1896_v20  ;;  %vm1592_vm1 = vcmp.eq.f32.partialorder %v1591_v13, 8.507059e+37 }
0x1380   :  { %v1874_v57 = vsel %vm1873_vm4, %v2438_v39, %v1870_v5 }
0x1381   :  { %v1879_v21 = vsel %vm1876_vm6, %v1878_v6, %v1874_v57  ;;  %v1889_v23 = vsel %vm1888_vm7, %v2440_v61, %v1885_v30  ;;  %v2442_v45 = vpop.eup %2441 }
0x1382   :  { %v1894_v51 = vsel %vm1891_vm8, %v1893_v9, %v1889_v23  ;;  %v1880_v47 = vmul.f32 %v3161_v36, %v1879_v21  ;;  %v1583_v19 = vmul.f32 %v2442_v45, %v1536_v49  ;;  %vm1588_vm9 = vweird.f32 %v2442_v45 }
0x1383   :  { %v1895_v60 = vmul.f32 %v3163_v34, %v1894_v51  ;;  %vm3270_vm12 = vmor %vm1587_vm11, %vm1588_vm9 }
0x1384   :  { %v1584_v48 = vsub.f32 1.0, %v1583_v19 }
0x1385   :  { %v1948_v40 = vpack.c.bf16 %v1895_v60, %v1880_v47 }
0x1386   :  { %v1585_v55 = vmul.f32 %v2442_v45, %v1584_v48 }
0x1388   :  { %2239 = vmatmul.msk.bf16.gmra.mxu2 %vm239_vm0, %v1948_v40  ;;  %v1586_v34 = vadd.f32 %v2442_v45, %v1585_v55 }
0x138a   :  { %v1590_v43 = vsel %vm3270_vm12, %v2442_v45, %v1586_v34 }
0x138b   :  { %v1595_v2 = vsel %vm1592_vm1, %v1594_v59, %v1590_v43 }
0x138c   :  { %v1596_v32 = vmul.f32 %v3169_v50, %v1595_v2 }
0x13c8   :  { %v1539_v22 = vpop.xlane.xlu2 %1538 }
0x13c9   :  { %2443 = vrcp.f32 %v1539_v22  ;;  %v1608_v31 = vand.u32 2147483648, %v1539_v22  ;;  %v1606_v33 = vand.u32 2147483647, %v1539_v22  ;;  %vm1602_vm14 = vweird.f32 %v1539_v22 }
0x13cb   :  { %v1609_v61 = vor.u32 1.1754944e-38, %v1608_v31  ;;  %vm1607_vm2 = vcmp.eq.f32.partialorder %v1606_v33, 8.507059e+37 }
0x13cf   :  { %v2444_v44 = vpop.eup %2443 }
0x13d0   :  { %v1598_v24 = vmul.f32 %v2444_v44, %v1539_v22  ;;  %v3267_v25 = vpop.xlane.xlu1 %1541  ;;  %vm1603_vm10 = vweird.f32 %v2444_v44 }
0x13d1   :  { %2445 = vrcp.f32 %v3267_v25  ;;  %v1545_v1 = vpop.xlane.xlu2 %1544  ;;  %vm3274_vm15 = vmor %vm1602_vm14, %vm1603_vm10  ;;  %vm1617_vm5 = vweird.f32 %v3267_v25  ;;  %v1623_v5 = vand.u32 2147483648, %v3267_v25  ;;  %v1621_v50 = vand.u32 2147483647, %v3267_v25 }
0x13d2   :  { %v1599_v36 = vsub.f32 1.0, %v1598_v24  ;;  %2447 = vrcp.f32 %v1545_v1  ;;  %v1638_v6 = vand.u32 2147483648, %v1545_v1  ;;  %vm1632_vm7 = vweird.f32 %v1545_v1 }
0x13d3   :  { %v1624_v51 = vor.u32 1.1754944e-38, %v1623_v5  ;;  %vm1622_vm9 = vcmp.eq.f32.partialorder %v1621_v50, 8.507059e+37 }
0x13d4   :  { %v1600_v11 = vmul.f32 %v2444_v44, %v1599_v36  ;;  %v1639_v47 = vor.u32 1.1754944e-38, %v1638_v6 }
0x13d6   :  { %v1601_v38 = vadd.f32 %v2444_v44, %v1600_v11 }
0x13d7   :  { %v2446_v39 = vpop.eup %2445 }
0x13d8   :  { %v1613_v41 = vmul.f32 %v2446_v39, %v3267_v25  ;;  %v3281_v16 = vpop.xlane.xlu1 %1547  ;;  %v1605_v28 = vsel %vm3274_vm15, %v2444_v44, %v1601_v38  ;;  %v2448_v62 = vpop.eup %2447  ;;  %vm1618_vm3 = vweird.f32 %v2446_v39 }
0x13d9   :  { %v1628_v53 = vmul.f32 %v2448_v62, %v1545_v1  ;;  %v3285_v4 = vpop.xlane.xlu2 %1550  ;;  %v3287_v7 = vpop.f32.mrf.mxu2  ;;  %v1610_v8 = vsel %vm1607_vm2, %v1609_v61, %v1605_v28  ;;  %2449 = vrcp.f32 %v3281_v16  ;;  %vm1633_vm4 = vweird.f32 %v2448_v62  ;;  %vm1619_vm6 = vmor %vm1617_vm5, %vm1618_vm3 }
0x13da   :  { %v1614_v63 = vsub.f32 1.0, %v1613_v41  ;;  %2451 = vrcp.f32 %v3285_v4  ;;  %v1611_v15 = vmul.f32 %v3183_v0, %v1610_v8  ;;  %v1636_v0 = vand.u32 2147483647, %v1545_v1  ;;  %vm1634_vm8 = vmor %vm1632_vm7, %vm1633_vm4 }
0x13db   :  { %v1629_v35 = vsub.f32 1.0, %v1628_v53  ;;  %vm1647_vm14 = vweird.f32 %v3281_v16  ;;  %v1653_v1 = vand.u32 2147483648, %v3281_v16  ;;  %v1668_v34 = vand.u32 2147483648, %v3285_v4 }
0x13dc   :  { %v1615_v12 = vmul.f32 %v2446_v39, %v1614_v63  ;;  %v1897_v17 = vpack.c.bf16 %v1611_v15, %v1596_v32  ;;  %vm1637_vm10 = vcmp.eq.f32.partialorder %v1636_v0, 8.507059e+37  ;;  %vm1662_vm1 = vweird.f32 %v3285_v4 }
0x13dd   :  { %v1630_v37 = vmul.f32 %v2448_v62, %v1629_v35  ;;  %v1654_v13 = vor.u32 1.1754944e-38, %v1653_v1  ;;  %v1669_v33 = vor.u32 1.1754944e-38, %v1668_v34  ;;  %v2544_v1 = vmov 0   ;;  %v2291_v34 = vld [vmem:[#allocation6] ss:$0 sm:$0xff] }
0x13de   :  { %v1616_v52 = vadd.f32 %v2446_v39, %v1615_v12  ;;  %2233 = vmatmul.msk.bf16.gmra.mxu1 %vm239_vm0, %v1897_v17  ;;  %2288 = vset.pattern.permute.xlu2 %v2544_v1  ;;  %vm2100_vm7 = vcmask 1024  }
0x13df   :  { %v2450_v10 = vpop.eup %2449  ;;  %v1631_v14 = vadd.f32 %v2448_v62, %v1630_v37  ;;  %2289 = vset.pattern.permute.xlu0 %v2544_v1 }
0x13e0   :  { %v2452_v20 = vpop.eup %2451  ;;  %v1643_v9 = vmul.f32 %v2450_v10, %v3281_v16  ;;  %v1620_v21 = vsel %vm1619_vm6, %v2446_v39, %v1616_v52  ;;  %vm1648_vm11 = vweird.f32 %v2450_v10  ;;  %vm2074_vm6 = vcmask 123904  }
0x13e1   :  { %v1972_v30 = vpop.f32.mrf.mxu2  ;;  %v1658_v57 = vmul.f32 %v2452_v20, %v3285_v4  ;;  %v1635_v23 = vsel %vm1634_vm8, %v2448_v62, %v1631_v14  ;;  %v1625_v60 = vsel %vm1622_vm9, %v1624_v51, %v1620_v21  ;;  %vm1663_vm12 = vweird.f32 %v2452_v20  ;;  %vm1649_vm15 = vmor %vm1647_vm14, %vm1648_vm11 }
0x13e2   :  { %v1640_v40 = vsel %vm1637_vm10, %v1639_v47, %v1635_v23  ;;  %v1644_v49 = vsub.f32 1.0, %v1643_v9  ;;  %v1626_v22 = vmul.f32 %v3195_v18, %v1625_v60  ;;  %v1651_v18 = vand.u32 2147483647, %v3281_v16  ;;  %vm1664_vm2 = vmor %vm1662_vm1, %vm1663_vm12 }
0x13e3   :  { %v1659_v45 = vsub.f32 1.0, %v1658_v57  ;;  %v1641_v48 = vmul.f32 %v3202_v46, %v1640_v40  ;;  %v1666_v46 = vand.u32 2147483647, %v3285_v4  ;;  %v2006_v28 = vsel %vm402_vm13, %v1972_v30, -inf }
0x13e4   :  { %v1645_v44 = vmul.f32 %v2450_v10, %v1644_v49  ;;  %vm1652_vm3 = vcmp.eq.f32.partialorder %v1651_v18, 8.507059e+37  ;;  %vm2121_vm9 = vcmask 0  }
0x13e5   :  { %v1660_v55 = vmul.f32 %v2452_v20, %v1659_v45  ;;  %v1898_v24 = vpack.c.bf16 %v1641_v48, %v1626_v22  ;;  %vm1667_vm4 = vcmp.eq.f32.partialorder %v1666_v46, 8.507059e+37 }
0x13e6   :  { %v1646_v25 = vadd.f32 %v2450_v10, %v1645_v44  ;;  %v2290_v44 = vld [vmem:[%s3364_s7] ss:$0 sm:$0xff] }
0x13e7   :  { %v1661_v36 = vadd.f32 %v2452_v20, %v1660_v55 }
0x13e8   :  { %v1650_v11 = vsel %vm1649_vm15, %v2450_v10, %v1646_v25 }
0x13e9   :  { %v1975_v19 = vpop.f32.mrf.mxu2  ;;  %v1665_v31 = vsel %vm1664_vm2, %v2452_v20, %v1661_v36  ;;  %v1655_v3 = vsel %vm1652_vm3, %v1654_v13, %v1650_v11  ;;  %v2039_v11 = vld [vmem:[%s3366_s9] sm:$0xff] }
0x13ea   :  { %v1670_v38 = vsel %vm1667_vm4, %v1669_v33, %v1665_v31  ;;  %v1656_v39 = vmul.f32 %v3214_v56, %v1655_v3  ;;  %v2005_v56 = vsel %vm402_vm13, %v3287_v7, -inf  ;;  %v2038_v33 = vld [vmem:[%s3369_s12] sm:$0x3] }
0x13eb   :  { %v1671_v42 = vmul.f32 %v3216_v58, %v1670_v38  ;;  %v2007_v58 = vsel %vm402_vm13, %v1975_v19, -inf  ;;  %v2292_v38 = vld [vmem:[%s3367_s10] ss:$0 sm:$0xff] }
0x13ed   :  { %v1899_v59 = vpack.c.bf16 %v1671_v42, %v1656_v39 }
0x13ee   :  { %2234 = vmatmul.msk.bf16.gmra.mxu1 %vm239_vm0, %v1898_v24 }
0x13f1   :  { %v1977_v29 = vpop.f32.mrf.mxu2 }
0x13f2   :  { %v2008_v2 = vsel %vm402_vm13, %v1977_v29, -inf  ;;  %v2088_v29 = vld [vmem:[%s3359_s2] sm:$0x3]  ;;  %s2545_s2 = smov [#allocation10]  }
0x13f3   :  { %s2128_s9 = sshll.u32 %s2545_s2, 4  ;;  %s2129_s9 = int_to_ptr.vmem [resolvable:$true] %s2128_s9 }
0x13fb   :  { %v1980_v43 = vpop.f32.mrf.mxu2 }
0x13fc   :  { %v2009_v62 = vsel %vm402_vm13, %v1980_v43, -inf  ;;  %v1925_v10 = vpop.f32.mrf.mxu1 }
0x13fd   :  { %v2010_v35 = vmax.f32 %v2005_v56, %v2009_v62  ;;  %v1990_v49 = vsel %vm402_vm13, %v1925_v10, -inf }
0x13fe   :  { %2235 = vmatmul.msk.bf16.gmra.mxu1 %vm239_vm0, %v1899_v59 }
0x1403   :  { %v1982_v61 = vpop.f32.mrf.mxu2 }
0x1404   :  { %v2011_v16 = vsel %vm402_vm13, %v1982_v61, -inf  ;;  %v1927_v52 = vpop.f32.mrf.mxu1 }
0x1405   :  { %v2012_v53 = vmax.f32 %v2006_v28, %v2011_v16  ;;  %v1991_v0 = vsel %vm402_vm13, %v1927_v52, -inf }
0x1407   :  { %v2017_v15 = vmax.f32 %v2010_v35, %v2012_v53  ;;  %v2546_v35 = vmov 2.0  }
0x140b   :  { %v1985_v41 = vpop.f32.mrf.mxu2 }
0x140c   :  { %v2013_v63 = vsel %vm402_vm13, %v1985_v41, -inf }
0x140d   :  { %v2014_v12 = vmax.f32 %v2007_v58, %v2013_v63 }
0x1413   :  { %v1987_v4 = vpop.f32.mrf.mxu2 }
0x1414   :  { %v2015_v8 = vsel %vm402_vm13, %v1987_v4, -inf }
0x1415   :  { %v2016_v32 = vmax.f32 %v2008_v2, %v2015_v8 }
0x1417   :  { %v2018_v37 = vmax.f32 %v2014_v12, %v2016_v32 }
0x1419   :  { %v2019_v17 = vmax.f32 %v2017_v15, %v2018_v37 }
0x141b   :  { %2021 = vrot.lane.b32.xlu1 %v2019_v17, %s2541_s3 }
0x145b   :  { %v1930_v14 = vpop.f32.mrf.mxu1 }
0x145c   :  { %v1992_v57 = vsel %vm402_vm13, %v1930_v14, -inf }
0x1463   :  { %v1932_v20 = vpop.f32.mrf.mxu1 }
0x1464   :  { %v1993_v21 = vsel %vm402_vm13, %v1932_v20, -inf }
0x146b   :  { %v1935_v5 = vpop.f32.mrf.mxu1 }
0x146c   :  { %v1994_v23 = vsel %vm402_vm13, %v1935_v5, -inf }
0x146d   :  { %v1995_v45 = vmax.f32 %v1990_v49, %v1994_v23 }
0x1473   :  { %v1937_v7 = vpop.f32.mrf.mxu1 }
0x1474   :  { %v1996_v30 = vsel %vm402_vm13, %v1937_v7, -inf }
0x1475   :  { %v1997_v47 = vmax.f32 %v1991_v0, %v1996_v30 }
0x1477   :  { %v2002_v22 = vmax.f32 %v1995_v45, %v1997_v47 }
0x147b   :  { %v1940_v6 = vpop.f32.mrf.mxu1 }
0x147c   :  { %v1998_v50 = vsel %vm402_vm13, %v1940_v6, -inf }
0x147d   :  { %v1999_v60 = vmax.f32 %v1992_v57, %v1998_v50 }
0x1483   :  { %v1942_v9 = vpop.f32.mrf.mxu1 }
0x1484   :  { %v2000_v51 = vsel %vm402_vm13, %v1942_v9, -inf }
0x1485   :  { %v2001_v40 = vmax.f32 %v1993_v21, %v2000_v51 }
0x1487   :  { %v2003_v19 = vmax.f32 %v1999_v60, %v2001_v40 }
0x1489   :  { %v2004_v48 = vmax.f32 %v2002_v22, %v2003_v19 }
0x148d   :  { %v2022_v55 = vpop.permute.xlu1 %2021 }
0x148e   :  { %v2024_v24 = vsel %vm402_vm13, %v2004_v48, %v2022_v55  ;;  %vm2050_vm13 = vcmask 64512  }
0x148f   :  { %v2029_v25 = vmul.f32 %v2290_v44, %v2024_v24 }
0x1491   :  { %v2030_v36 = vsel %vm239_vm0, %v2029_v25, 0.0 }
0x1492   :  { %2031 = vadd.xlane.f32.xlu2 %v2030_v36 }
0x1505   :  { %v2032_v18 = vpop.xlane.xlu2 %2031 }
0x1506   :  { %v2037_v46 = vadd.f32 %v2291_v34, %v2032_v18 }
0x1508   :  { %2042 = vperm.xlu2 %2288, %v2037_v46  }
0x1510   :  { %2090 = vperm.xlu2 %2288, %v2088_v29  }
0x1562   :  { %v2043_v31 = vpop.permute.xlu2 %2042 }
0x1563   :  { %v2045_v13 = vmul.f32 %v2043_v31, %v2039_v11 }
0x1565   :  { %2069 = vmatpush.msra.mxu3 %v2045_v13 }
0x1566   :  { %2240 = vmatmul.msk.f32.vlgmr.msra.gmra.mxu3 %vm2050_vm13, %v2038_v33 }
0x156a   :  { %v2091_v3 = vpop.permute.xlu2 %2090 }
0x156b   :  { %vm2092_vm5 = vcmp.eq.s32.totalorder %v2672_v27, %v2091_v3 }
0x156c   :  { %v2241_v43 = vsel %vm2092_vm5, 1.0, %v2540_v26 }
0x15e9   :  { %v2071_v39 = vpop.f32.mrf.mxu3 }
0x15ea   :  { %v2072_v42 = vadd.f32 %v2292_v38, %v2071_v39 }
0x15ec   :  { %v2076_v59 = vsel %vm2074_vm6, %v2072_v42, -inf  ;;  %2075 = vst.msk [vmem:[#allocation10] sm:$0x3] %vm2074_vm6, %v2072_v42  ;;  %v2095_v61 = vmul.f32 %v2241_v43, %v2072_v42 }
0x15ed   :  { %2077 = vmax.xlane.f32.xlu1 %v2076_v59  ;;  %2133 = dma.vmem_to_hbm [thread:$0]  %s2129_s9, 32, %s2131_s18, [#allocation9]  }
0x15ee   :  { %v2096_v41 = vsel %vm2074_vm6, %v2095_v61, 0.0 }
0x15ef   :  { %2097 = vadd.xlane.f32.xlu0 %v2096_v41 }
0x1660   :  { %v2078_v16 = vpop.xlane.xlu1 %2077 }
0x1661   :  { %v2079_v28 = vsub.f32 %v2072_v42, %v2078_v16 }
0x1662   :  { %v2098_v2 = vpop.xlane.xlu0 %2097 }
0x1663   :  { %v2080_v62 = vmul.f32 1.442695, %v2079_v28 }
0x1665   :  { %2453 = vpow2.f32 %v2080_v62 }
0x166b   :  { %v2454_v63 = vpop.eup %2453 }
0x166c   :  { %v2082_v53 = vsel %vm2074_vm6, %v2454_v63, 0.0 }
0x166d   :  { %2083 = vadd.xlane.f32.xlu2 %v2082_v53 }
0x16e0   :  { %v2084_v4 = vpop.xlane.xlu2 %2083 }
0x16e1   :  { %2455 = vlog2.f32 %v2084_v4 }
0x16e2   :  { %2457 = vrcp.f32 %v2546_v35 }
0x16e7   :  { %v2456_v27 = vpop.eup %2455 }
0x16e8   :  { %v2086_v56 = vmul.f32 0.6931472, %v2456_v27  ;;  %v2458_v12 = vpop.eup %2457 }
0x16e9   :  { %v2112_v32 = vmul.f32 2.0, %v2458_v12  ;;  %vm2116_vm8 = vweird.f32 %v2458_v12 }
0x16ea   :  { %v2087_v58 = vadd.f32 %v2086_v56, %v2078_v16 }
0x16eb   :  { %v2113_v15 = vsub.f32 1.0, %v2112_v32 }
0x16ec   :  { %v2099_v26 = vsub.f32 %v2087_v58, %v2098_v2 }
0x16ed   :  { %v2114_v52 = vmul.f32 %v2458_v12, %v2113_v15 }
0x16ee   :  { %v2101_v8 = vsel %vm2100_vm7, %v2099_v26, 0.0 }
0x16ef   :  { %2102 = vadd.xlane.f32.xlu0 %v2101_v8  ;;  %v2115_v20 = vadd.f32 %v2458_v12, %v2114_v52 }
0x16f1   :  { %v2117_v6 = vsel %vm2116_vm8, %v2458_v12, %v2115_v20 }
0x1703   :  { %1388 = vrot.lane.b32.xlu0 %v3027_v54, %s2542_s4  ;;  %s2139_s4 = sshll.u32 %s2547_s13, 4  ;;  %s2140_s4 = int_to_ptr.vmem [resolvable:$true] %s2139_s4 }
0x1762   :  { %v2103_v37 = vpop.xlane.xlu0 %2102 }
0x1763   :  { %v2104_v17 = vrot.slane %v2103_v37, 4 }
0x1765   :  { %v2105_v10 = vadd.f32 %v2104_v17, %v2103_v37 }
0x1767   :  { %v2106_v14 = vrot.slane %v2105_v10, 2 }
0x1769   :  { %v2107_v54 = vadd.f32 %v2106_v14, %v2105_v10 }
0x176b   :  { %v2108_v5 = vrot.slane %v2107_v54, 1 }
0x176d   :  { %v2109_v7 = vadd.f32 %v2108_v5, %v2107_v54 }
0x176f   :  { %2250 = vpush %v2109_v7 }
0x1770   :  { %2252 = vpush %v2117_v6 }
0x1775   :  { %v1389_v30 = vpop.permute.xlu0 %1388 }
0x1776   :  { %1391 = vst.msk [vmem:[#allocation4] sm:$0xff] %vm239_vm0, %v1389_v30 }
0x17a0   :  { %s2251_s19 = spop %2250 }
0x17a1   :  { %s2253_s22 = spop %2252 }
0x17a2   :  { %s2119_s5 = smul.f32 %s2253_s22, %s2251_s19 }
0x17a4   :  { %v2120_v50 = vstv %s2119_s5 }
0x17a5   :  { %2122 = vst.msk [vmem:[#allocation11] sm:$0x1] %vm2121_vm9, %v2120_v50 }
0x17a6   :  { %2144 = dma.vmem_to_hbm [thread:$0]  %s2140_s4, 16, %s2142_s8, [#allocation12]  }
0x17a7   :  { %2533 = dma.done.wait [#allocation9], 32  }
0x17a8   :  { %2534 = vsyncadd [#allocation9], 4294967264 }
0x17a9   :  { %2535 = dma.done.wait [#allocation12], 16  }
0x17aa   :  { %2536 = vsyncadd [#allocation12], 4294967280 }
0x17ab   :  { %2153 = vsyncpa [#allocation8], 1 }
0x17ac   :  { %2154 = vsyncpa [#allocation9], 1 }
0x17ad   :  { %2155 = vsyncpa [#allocation12], 1 }

</bundles_post_ra>
